<compile_context>
chip_gen: v5e
topology: v5e:2x2
jax: 0.10.0
libtpu: 0.0.40
codegen_flags: <defaults>
</compile_context>

<pallas_src>
import functools
import math

import jax
import jax.numpy as jnp
from jax import lax
from jax.experimental import pallas as pl
from jax.experimental.pallas import tpu as pltpu

F32 = jnp.float32
BF16 = jnp.bfloat16

_VMEM_LIMIT = 64 * 1024 * 1024   # cap only; per-step footprints stay far below
_ROW_TILE = 512                  # row tile for GEMM-style kernels
_LN_EPS = 1e-5
_BN_EPS = 1e-5


# --------------------------- small helpers ----------------------------------

def _round_up(n, m):
    return ((n + m - 1) // m) * m


def _mxu_dot(a, b):
    """MXU matmul: bf16 operands (weights already stored bf16), f32 accum."""
    return jnp.dot(a.astype(BF16), b.astype(BF16),
                   preferred_element_type=jnp.float32)


def _ln(x, g, b, eps):
    mu = jnp.mean(x, axis=-1, keepdims=True)
    var = jnp.mean(jnp.square(x - mu), axis=-1, keepdims=True)
    return (x - mu) * lax.rsqrt(var + eps) * g + b


def _tile_rows(m):
    return _ROW_TILE if m > _ROW_TILE else m


def _pad_rows(x, tm):
    m = x.shape[0]
    mp = _round_up(m, tm)
    if mp != m:
        x = jnp.pad(x, ((0, mp - m),) + ((0, 0),) * (x.ndim - 1))
    return x, mp


def _col_tile(n):
    """n is already a multiple of 128; largest 128-aligned tile <=1024 dividing n."""
    if n <= 1024:
        return n
    for t in range(1024, 0, -128):
        if n % t == 0:
            return t
    return n


def _chunk(n, cap=128):
    if n <= cap:
        return n
    for t in range(cap, 0, -1):
        if n % t == 0:
            return t
    return n


def _params(n_parallel, n_arbitrary=0):
    return pltpu.CompilerParams(
        dimension_semantics=("parallel",) * n_parallel
                            + ("arbitrary",) * n_arbitrary,
        vmem_limit_bytes=_VMEM_LIMIT)


# --------------------------- Pallas kernels ---------------------------------

def _linear_kernel(act, x_ref, w_ref, b_ref, o_ref):
    y = _mxu_dot(x_ref[...], w_ref[...]) + b_ref[...]
    if act == "relu":
        y = jnp.maximum(y, 0.0)
    elif act == "silu":
        y = y * jax.nn.sigmoid(y)
    o_ref[...] = y.astype(o_ref.dtype)


def _linear_res_kernel(x_ref, res_ref, w_ref, b_ref, o_ref):
    y = _mxu_dot(x_ref[...], w_ref[...]) + b_ref[...]
    o_ref[...] = (res_ref[...].astype(jnp.float32) + y).astype(o_ref.dtype)


def _ffn_kernel(final_ln, x_ref, g_ref, b_ref, w1_ref, b1_ref, w2_ref, b2_ref,
                *rest):
    # o = x + 0.5 * (W2 @ SiLU(W1 @ LN(x)))   [+ optional trailing LayerNorm]
    if final_ln:
        fg_ref, fb_ref, o_ref = rest
    else:
        (o_ref,) = rest
    x = x_ref[...].astype(jnp.float32)
    y = _ln(x, g_ref[...], b_ref[...], _LN_EPS)
    h = _mxu_dot(y, w1_ref[...]) + b1_ref[...]
    h = h * jax.nn.sigmoid(h)                          # SiLU / Swish
    out = x + 0.5 * (_mxu_dot(h, w2_ref[...]) + b2_ref[...])
    if final_ln:
        out = _ln(out, fg_ref[...], fb_ref[...], _LN_EPS)
    o_ref[...] = out.astype(o_ref.dtype)


def _ln_qkv_kernel(x_ref, g_ref, b_ref, w_ref, wb_ref, q_ref, k_ref, v_ref):
    # Fused LN + QKV projection; q/k/v written as bf16 lane-dense (M, D) slabs.
    x = x_ref[...].astype(jnp.float32)
    y = _ln(x, g_ref[...], b_ref[...], _LN_EPS)
    qkv = _mxu_dot(y, w_ref[...]) + wb_ref[...]
    d = q_ref.shape[-1]
    q_ref[...] = qkv[:, :d].astype(q_ref.dtype)
    k_ref[...] = qkv[:, d:2 * d].astype(k_ref.dtype)
    v_ref[...] = qkv[:, 2 * d:].astype(v_ref.dtype)


def _flash_mhsa_kernel(scale, kv_len, padded, q_ref, k_ref, v_ref, o_ref,
                       m_sc, l_sc, acc_sc):
    # Online-softmax attention over a (batch*head, q-tile, kv-tile) grid.
    # Blocks are (1, tile, Dh); matmuls run in bf16 with f32 accumulation.
    # TODO(synk): no per-example sequence-length mask (eval on unpadded batch);
    # only the internal kv tiling pad (if any) is masked.
    ki = pl.program_id(2)

    @pl.when(ki == 0)
    def _():
        m_sc[...] = jnp.full_like(m_sc, -1e30)
        l_sc[...] = jnp.zeros_like(l_sc)
        acc_sc[...] = jnp.zeros_like(acc_sc)

    q = (q_ref[0].astype(jnp.float32) * scale).astype(BF16)   # scale folded once
    k = k_ref[0]                                              # (tk, Dh) bf16
    v = v_ref[0]
    s = lax.dot_general(q, k, (((1,), (1,)), ((), ())),
                        preferred_element_type=jnp.float32)   # (tq, tk)
    if padded:
        tk = s.shape[-1]
        col = ki * tk + lax.broadcasted_iota(jnp.int32, s.shape, 1)
        s = jnp.where(col < kv_len, s, -1e30)

    m_prev = m_sc[...]
    m_new = jnp.maximum(m_prev, jnp.max(s, axis=-1, keepdims=True))
    alpha = jnp.exp(m_prev - m_new)
    p = jnp.exp(s - m_new)
    l_sc[...] = alpha * l_sc[...] + jnp.sum(p, axis=-1, keepdims=True)
    acc_sc[...] = alpha * acc_sc[...] + jnp.dot(
        p.astype(BF16), v, preferred_element_type=jnp.float32)
    m_sc[...] = m_new

    @pl.when(ki == pl.num_programs(2) - 1)
    def _():
        o_ref[0] = (acc_sc[...] * pl.reciprocal(l_sc[...], approx=True)
                    ).astype(o_ref.dtype)


def _conv_module_kernel(K, pad_al, x_ref, ln_g, ln_b, pw1_w, pw1_b, dw_w, dw_b,
                        bn_g, bn_b, bn_m, bn_v, pw2_w, pw2_b, o_ref, pad_sc):
    # Whole Conformer conv module fused per batch element:
    # LN -> pointwise(2x) -> GLU -> depthwise conv -> BN(eval) -> SiLU ->
    # pointwise -> residual.
    # TODO(synk): for very long T (v7x / 64 MiB VMEM) this should be T-tiled
    # with a halo; fine for typical ASR sequence lengths.
    x = x_ref[0].astype(jnp.float32)                   # (T, D)
    T = x.shape[0]
    pad = (K - 1) // 2
    y = _ln(x, ln_g[...], ln_b[...], _LN_EPS)
    h = _mxu_dot(y, pw1_w[...]) + pw1_b[...]           # (T, 2*inner)
    inner = h.shape[-1] // 2
    h = h[:, :inner] * jax.nn.sigmoid(h[:, inner:])    # GLU
    # Sublane-aligned main write; only the halo rows get zeroed.
    if pad:
        pad_sc[pad_al - pad:pad_al, :] = jnp.zeros((pad, inner), jnp.float32)
        pad_sc[pad_al + T:pad_al + T + pad, :] = jnp.zeros((pad, inner),
                                                           jnp.float32)
    pad_sc[pad_al:pad_al + T, :] = h
    w = dw_w[...].astype(jnp.float32)                  # (K, inner)
    start = pad_al - pad
    acc = jnp.zeros((T, inner), jnp.float32)
    for k in range(K):                                 # static tap unroll
        acc = acc + pad_sc[start + k:start + k + T, :] * w[k, :]
    acc = acc + dw_b[...]
    acc = (acc - bn_m[...]) * lax.rsqrt(bn_v[...] + _BN_EPS)
    acc = acc * bn_g[...] + bn_b[...]
    acc = acc * jax.nn.sigmoid(acc)                    # Swish
    out = _mxu_dot(acc, pw2_w[...]) + pw2_b[...]       # (T, D)
    o_ref[0] = (x + out).astype(o_ref.dtype)


def _lstm_rec_kernel(tt, H, gx_ref, whh_ref, o_ref, h_sc, c_sc):
    # Recurrence only: input projection X@Wih + b is precomputed (gx).
    @pl.when(pl.program_id(0) == 0)
    def _():
        h_sc[...] = jnp.zeros_like(h_sc)
        c_sc[...] = jnp.zeros_like(c_sc)

    whh = whh_ref[...]                                 # bf16 (H, 4H)

    @pl.loop(0, tt)
    def _(t):
        gates = gx_ref[t] + jnp.dot(h_sc[...].astype(BF16), whh,
                                    preferred_element_type=jnp.float32)
        i = jax.nn.sigmoid(gates[:, 0 * H:1 * H])
        f = jax.nn.sigmoid(gates[:, 1 * H:2 * H])
        g = jnp.tanh(gates[:, 2 * H:3 * H])
        o = jax.nn.sigmoid(gates[:, 3 * H:4 * H])
        c = f * c_sc[...] + i * g
        h = o * jnp.tanh(c)
        c_sc[...] = c
        h_sc[...] = h
        o_ref[t] = h.astype(o_ref.dtype)


# --------------------------- pallas_call wrappers ----------------------------

def linear(x, w, b, act="none"):
    M, K = x.shape
    N = w.shape[1]
    Np = _round_up(N, 128)             # lane-dense output stores
    if Np != N:
        w = jnp.pad(w, ((0, 0), (0, Np - N)))
        b = jnp.pad(b, ((0, 0), (0, Np - N)))
    tm = _tile_rows(M)
    tn = _col_tile(Np)
    xp, Mp = _pad_rows(x, tm)
    out = pl.pallas_call(
        functools.partial(_linear_kernel, act),
        grid=(Mp // tm, Np // tn),
        in_specs=[pl.BlockSpec((tm, K), lambda i, j: (i, 0)),
                  pl.BlockSpec((K, tn), lambda i, j: (0, j)),
                  pl.BlockSpec((1, tn), lambda i, j: (0, j))],
        out_specs=pl.BlockSpec((tm, tn), lambda i, j: (i, j)),
        out_shape=jax.ShapeDtypeStruct((Mp, Np), x.dtype),
        compiler_params=_params(2),
        cost_estimate=pl.CostEstimate(
            flops=2 * Mp * K * Np, transcendentals=0,
            bytes_accessed=4 * Mp * K + 2 * K * Np + 4 * Mp * Np),
    )(xp, w, b)
    if Mp != M or Np != N:
        out = out[:M, :N]
    return out


def linear_residual(x, res, w, b):
    M, K = x.shape
    N = w.shape[1]
    tm = _tile_rows(M)
    xp, Mp = _pad_rows(x, tm)
    rp, _ = _pad_rows(res, tm)
    out = pl.pallas_call(
        _linear_res_kernel,
        grid=(Mp // tm,),
        in_specs=[pl.BlockSpec((tm, K), lambda i: (i, 0)),
                  pl.BlockSpec((tm, N), lambda i: (i, 0)),
                  pl.BlockSpec((K, N), lambda i: (0, 0)),
                  pl.BlockSpec((1, N), lambda i: (0, 0))],
        out_specs=pl.BlockSpec((tm, N), lambda i: (i, 0)),
        out_shape=jax.ShapeDtypeStruct((Mp, N), res.dtype),
        compiler_params=_params(1),
        cost_estimate=pl.CostEstimate(
            flops=2 * Mp * K * N, transcendentals=0,
            bytes_accessed=2 * Mp * K + 2 * K * N + 8 * Mp * N),
    )(xp, rp, w, b)
    return out[:M] if Mp != M else out


def ffn_block(x2d, p, prefix, final_ln=None):
    """One fused kernel: x + 0.5*FFN(LN(x)) (+ optional trailing LayerNorm)."""
    M, D = x2d.shape
    ffh = p[f"{prefix}_w1"].shape[1]
    tm = _tile_rows(M)
    xp, Mp = _pad_rows(x2d, tm)
    row = pl.BlockSpec((tm, D), lambda i: (i, 0))
    vec_d = pl.BlockSpec((1, D), lambda i: (0, 0))
    args = [xp, p[f"{prefix}_ln_g"], p[f"{prefix}_ln_b"],
            p[f"{prefix}_w1"], p[f"{prefix}_b1"],
            p[f"{prefix}_w2"], p[f"{prefix}_b2"]]
    in_specs = [row, vec_d, vec_d,
                pl.BlockSpec((D, ffh), lambda i: (0, 0)),
                pl.BlockSpec((1, ffh), lambda i: (0, 0)),
                pl.BlockSpec((ffh, D), lambda i: (0, 0)),
                vec_d]
    if final_ln is not None:
        args += list(final_ln)
        in_specs += [vec_d, vec_d]
    out = pl.pallas_call(
        functools.partial(_ffn_kernel, final_ln is not None),
        grid=(Mp // tm,),
        in_specs=in_specs,
        out_specs=row,
        out_shape=jax.ShapeDtypeStruct((Mp, D), x2d.dtype),
        compiler_params=_params(1),
        cost_estimate=pl.CostEstimate(
            flops=4 * Mp * D * ffh, transcendentals=Mp * ffh,
            bytes_accessed=8 * Mp * D + 4 * D * ffh),
    )(*args)
    return out[:M] if Mp != M else out


def flash_mhsa(q, k, v, scale):
    # q/k/v: (B*H, T, Dh) bf16.  Grid (B*H, q tiles, kv tiles); head dim is the
    # full (lane) block so no in-kernel head slicing / transposes.
    BH, T, Dh = q.shape
    tile = 128
    if T <= tile:
        tq = tk = T
        Tp = T
    else:
        tq = tk = tile
        Tp = _round_up(T, tile)
        if Tp != T:
            padcfg = ((0, 0), (0, Tp - T), (0, 0))
            q = jnp.pad(q, padcfg)
            k = jnp.pad(k, padcfg)
            v = jnp.pad(v, padcfg)
    padded = Tp != T
    out = pl.pallas_call(
        functools.partial(_flash_mhsa_kernel, scale, T, padded),
        grid=(BH, Tp // tq, Tp // tk),
        in_specs=[pl.BlockSpec((1, tq, Dh), lambda b, qi, ki: (b, qi, 0)),
                  pl.BlockSpec((1, tk, Dh), lambda b, qi, ki: (b, ki, 0)),
                  pl.BlockSpec((1, tk, Dh), lambda b, qi, ki: (b, ki, 0))],
        out_specs=pl.BlockSpec((1, tq, Dh), lambda b, qi, ki: (b, qi, 0)),
        out_shape=jax.ShapeDtypeStruct((BH, Tp, Dh), q.dtype),
        scratch_shapes=[pltpu.VMEM((tq, 1), jnp.float32),    # running max m
                        pltpu.VMEM((tq, 1), jnp.float32),    # running sum l
                        pltpu.VMEM((tq, Dh), jnp.float32)],  # output acc
        compiler_params=_params(2, 1),
        cost_estimate=pl.CostEstimate(
            flops=4 * BH * Tp * Tp * Dh,
            transcendentals=BH * Tp * Tp,
            bytes_accessed=2 * 4 * BH * Tp * Dh),
    )(q, k, v)
    return out[:, :T] if padded else out


def mhsa_block(x, p, prefix, num_heads):
    # TODO(synk): reference ConformerV1 may use relative positional MHSA;
    # standard (absolute) MHSA is implemented here.
    B, T, D = x.shape
    Dh = D // num_heads
    M = B * T
    x2d = x.reshape(M, D)
    tm = _tile_rows(M)
    xp, Mp = _pad_rows(x2d, tm)
    row_in = pl.BlockSpec((tm, D), lambda i: (i, 0))
    vec_d = pl.BlockSpec((1, D), lambda i: (0, 0))
    q2d, k2d, v2d = pl.pallas_call(
        _ln_qkv_kernel,
        grid=(Mp // tm,),
        in_specs=[row_in, vec_d, vec_d,
                  pl.BlockSpec((D, 3 * D), lambda i: (0, 0)),
                  pl.BlockSpec((1, 3 * D), lambda i: (0, 0))],
        out_specs=(row_in, row_in, row_in),
        out_shape=(jax.ShapeDtypeStruct((Mp, D), BF16),) * 3,
        compiler_params=_params(1),
        cost_estimate=pl.CostEstimate(
            flops=6 * Mp * D * D, transcendentals=0,
            bytes_accessed=4 * Mp * D + 3 * Mp * D + 6 * D * D),
    )(xp, p[f"{prefix}_ln_g"], p[f"{prefix}_ln_b"],
      p[f"{prefix}_wqkv"], p[f"{prefix}_bqkv"])

    def split_heads(t):
        return (t[:M].reshape(B, T, num_heads, Dh)
                .transpose(0, 2, 1, 3).reshape(B * num_heads, T, Dh))

    scale = 1.0 / math.sqrt(Dh)
    o = flash_mhsa(split_heads(q2d), split_heads(k2d), split_heads(v2d), scale)
    attn = (o.reshape(B, num_heads, T, Dh).transpose(0, 2, 1, 3)
            .reshape(M, D))
    out = linear_residual(attn, x2d, p[f"{prefix}_wo"], p[f"{prefix}_bo"])
    return out.reshape(B, T, D)


def conv_block(x, p, prefix, kernel_size):
    B, T, D = x.shape
    inner = p[f"{prefix}_pw1_w"].shape[1] // 2
    pad = (kernel_size - 1) // 2
    pad_al = _round_up(pad, 8)          # sublane-aligned main write

    def wspec(a):
        return pl.BlockSpec(a.shape, lambda b: (0, 0))

    weights = [p[f"{prefix}_ln_g"], p[f"{prefix}_ln_b"],
               p[f"{prefix}_pw1_w"], p[f"{prefix}_pw1_b"],
               p[f"{prefix}_dw_w"], p[f"{prefix}_dw_b"],
               p[f"{prefix}_bn_g"], p[f"{prefix}_bn_b"],
               p[f"{prefix}_bn_mean"], p[f"{prefix}_bn_var"],
               p[f"{prefix}_pw2_w"], p[f"{prefix}_pw2_b"]]
    return pl.pallas_call(
        functools.partial(_conv_module_kernel, kernel_size, pad_al),
        grid=(B,),
        in_specs=[pl.BlockSpec((1, T, D), lambda b: (b, 0, 0))]
                 + [wspec(a) for a in weights],
        out_specs=pl.BlockSpec((1, T, D), lambda b: (b, 0, 0)),
        out_shape=jax.ShapeDtypeStruct((B, T, D), x.dtype),
        scratch_shapes=[pltpu.VMEM((pad_al + T + pad, inner), jnp.float32)],
        compiler_params=_params(1),
        cost_estimate=pl.CostEstimate(
            flops=2 * B * T * (D * 2 * inner + inner * kernel_size + inner * D),
            transcendentals=3 * B * T * inner,
            bytes_accessed=8 * B * T * D + 6 * D * inner),
    )(x, *weights)


def lstm_layer(x_tbd, wih, whh, b, hidden):
    T, B, Din = x_tbd.shape
    # Hoist the input projection out of the recurrence into one gridded GEMM.
    gx = linear(x_tbd.reshape(T * B, Din), wih, b)             # (T*B, 4H)
    gx = gx.reshape(T, B, 4 * hidden)
    tt = _chunk(T, cap=128)
    return pl.pallas_call(
        functools.partial(_lstm_rec_kernel, tt, hidden),
        grid=(T // tt,),
        in_specs=[pl.BlockSpec((tt, B, 4 * hidden), lambda i: (i, 0, 0)),
                  pl.BlockSpec((hidden, 4 * hidden), lambda i: (0, 0))],
        out_specs=pl.BlockSpec((tt, B, hidden), lambda i: (i, 0, 0)),
        out_shape=jax.ShapeDtypeStruct((T, B, hidden), x_tbd.dtype),
        scratch_shapes=[pltpu.VMEM((B, hidden), jnp.float32),
                        pltpu.VMEM((B, hidden), jnp.float32)],
        compiler_params=pltpu.CompilerParams(
            dimension_semantics=("arbitrary",),    # sequential carry over time
            vmem_limit_bytes=_VMEM_LIMIT),
        cost_estimate=pl.CostEstimate(
            flops=8 * T * B * hidden * hidden,
            transcendentals=5 * T * B * hidden,
            bytes_accessed=4 * 5 * T * B * hidden + 2 * 4 * hidden * hidden),
    )(gx, whh)


# ----------------------------- model glue -----------------------------------

def _extract_patches(x, k=3, s=2):
    # x: (B, C, H, W) NCHW -> (B, Ho*Wo, C*k*k)  (im2col; GEMM runs in Pallas)
    # TODO(synk): could be expressed via BlockSpec index_maps to avoid the
    # HBM-materialized patch tensor; negligible for the two subsampling convs.
    B, C, H, W = x.shape
    Ho = (H - k) // s + 1
    Wo = (W - k) // s + 1
    cols = []
    for i in range(k):
        for j in range(k):
            cols.append(x[:, :, i:i + s * Ho:s, j:j + s * Wo:s])  # (B,C,Ho,Wo)
    pch = jnp.stack(cols, axis=2)                   # (B, C, k*k, Ho, Wo)
    pch = pch.transpose(0, 3, 4, 1, 2).reshape(B, Ho * Wo, C * k * k)
    return pch, Ho, Wo


def conv_subsampling(x, params):
    # Two Conv2d(kernel=3, stride=2) + ReLU -> time length (T-3)//4.
    B = x.shape[0]
    h = x[:, None, :, :]                            # (B, 1, T, F)  NCHW
    for li in (0, 1):
        w, b = params[f"conv{li}_w"], params[f"conv{li}_b"]
        cout = w.shape[1]
        pch, Ho, Wo = _extract_patches(h)
        y = linear(pch.reshape(B * Ho * Wo, pch.shape[-1]), w, b, act="relu")
        h = y.reshape(B, Ho, Wo, cout).transpose(0, 3, 1, 2)   # NCHW
    Bc, C, Tp, Fp = h.shape
    return h.transpose(0, 2, 1, 3).reshape(B, Tp, C * Fp)      # (B, T', C*F')


def conformer_block(x, p, li, cfg):
    B, T, D = x.shape
    x2d = ffn_block(x.reshape(B * T, D), p, f"l{li}_ff1")
    x = x2d.reshape(B, T, D)
    x = mhsa_block(x, p, f"l{li}_mhsa", cfg["num_heads_attention"])
    x = conv_block(x, p, f"l{li}_conv", cfg["conv_kernel_size"])
    x2d = ffn_block(x.reshape(B * T, D), p, f"l{li}_ff2",
                    final_ln=(p[f"l{li}_final_ln_g"], p[f"l{li}_final_ln_b"]))
    return x2d.reshape(B, T, D)


def conformer_decoder(x, p, cfg):
    B, T, _ = x.shape
    H = cfg["hidden_size_decoder"]
    h = x.transpose(1, 0, 2)                        # (T, B, D) for the LSTM
    for li in range(cfg["num_decoder_layers"]):
        h = lstm_layer(h, p[f"dec_l{li}_wih"], p[f"dec_l{li}_whh"],
                       p[f"dec_l{li}_b"], H)
    h = h.transpose(1, 0, 2).reshape(B * T, H)
    logits = linear(h, p["dec_out_w"], p["dec_out_b"])
    return logits.reshape(B, T, cfg["num_classes"])


def conformer_forward(x, params, cfg):
    B = x.shape[0]
    d = cfg["d_encoder"]
    h = conv_subsampling(x, params)                 # (B, T', d*F')
    Tp = h.shape[1]
    h = linear(h.reshape(B * Tp, h.shape[-1]), params["proj_w"], params["proj_b"])
    h = h.reshape(B, Tp, d)                         # dropout = identity (eval)
    for li in range(cfg["num_encoder_layers"]):
        h = conformer_block(h, params, li, cfg)
    return conformer_decoder(h, params, cfg)


# --------------------------- deterministic init ------------------------------

def init_params(key, cfg):
    d = cfg["d_encoder"]
    params = {}

    def nxt():
        nonlocal key
        key, sub = jax.random.split(key)
        return sub

    def dense(shape, scale=0.05, dtype=BF16):
        # GEMM weights are stored bf16 in HBM (half DMA / VMEM, direct MXU feed).
        return (jax.random.normal(nxt(), shape, F32) * scale).astype(dtype)

    # conv subsampling (Conv2d(1->d,3,2), Conv2d(d->d,3,2)) as im2col matmuls
    params["conv0_w"] = dense((1 * 9, d))
    params["conv0_b"] = jnp.zeros((1, d), F32)
    params["conv1_w"] = dense((d * 9, d))
    params["conv1_b"] = jnp.zeros((1, d), F32)
    f_sub = ((cfg["input_dim"] - 3) // 2 + 1 - 3) // 2 + 1
    params["proj_w"] = dense((d * f_sub, d))
    params["proj_b"] = jnp.zeros((1, d), F32)

    ff_hidden = d * cfg["ffl_exp_factor"]
    inner = d * cfg["conv_exp_factor"] // 2
    for li in range(cfg["num_encoder_layers"]):
        for pre in (f"l{li}_ff1", f"l{li}_ff2"):
            params[f"{pre}_ln_g"] = jnp.ones((1, d), F32)
            params[f"{pre}_ln_b"] = jnp.zeros((1, d), F32)
            params[f"{pre}_w1"] = dense((d, ff_hidden))
            params[f"{pre}_b1"] = jnp.zeros((1, ff_hidden), F32)
            params[f"{pre}_w2"] = dense((ff_hidden, d))
            params[f"{pre}_b2"] = jnp.zeros((1, d), F32)
        pre = f"l{li}_mhsa"
        params[f"{pre}_ln_g"] = jnp.ones((1, d), F32)
        params[f"{pre}_ln_b"] = jnp.zeros((1, d), F32)
        params[f"{pre}_wqkv"] = dense((d, 3 * d))
        params[f"{pre}_bqkv"] = jnp.zeros((1, 3 * d), F32)
        params[f"{pre}_wo"] = dense((d, d))
        params[f"{pre}_bo"] = jnp.zeros((1, d), F32)
        pre = f"l{li}_conv"
        params[f"{pre}_ln_g"] = jnp.ones((1, d), F32)
        params[f"{pre}_ln_b"] = jnp.zeros((1, d), F32)
        params[f"{pre}_pw1_w"] = dense((d, d * cfg["conv_exp_factor"]))
        params[f"{pre}_pw1_b"] = jnp.zeros((1, d * cfg["conv_exp_factor"]), F32)
        params[f"{pre}_dw_w"] = dense((cfg["conv_kernel_size"], inner), dtype=F32)
        params[f"{pre}_dw_b"] = jnp.zeros((1, inner), F32)
        params[f"{pre}_bn_g"] = jnp.ones((1, inner), F32)
        params[f"{pre}_bn_b"] = jnp.zeros((1, inner), F32)
        params[f"{pre}_bn_mean"] = jnp.zeros((1, inner), F32)
        params[f"{pre}_bn_var"] = jnp.ones((1, inner), F32)
        params[f"{pre}_pw2_w"] = dense((inner, d))
        params[f"{pre}_pw2_b"] = jnp.zeros((1, d), F32)
        params[f"l{li}_final_ln_g"] = jnp.ones((1, d), F32)
        params[f"l{li}_final_ln_b"] = jnp.zeros((1, d), F32)

    # decoder: LSTM layer(s) + output Linear
    din, H = d, cfg["hidden_size_decoder"]
    for li in range(cfg["num_decoder_layers"]):
        params[f"dec_l{li}_wih"] = dense((din, 4 * H))
        params[f"dec_l{li}_whh"] = dense((H, 4 * H))
        # TODO(synk): PyTorch LSTM has b_ih and b_hh; stored pre-summed here.
        params[f"dec_l{li}_b"] = jnp.zeros((1, 4 * H), F32)
        din = H
    params["dec_out_w"] = dense((H, cfg["num_classes"]))
    params["dec_out_b"] = jnp.zeros((1, cfg["num_classes"]), F32)
    return params


if __name__ == "__main__":
    cfg = dict(
        input_dim=16, d_encoder=32, num_encoder_layers=2,
        num_heads_attention=4, ffl_exp_factor=2, ffl_dropout=0.0,
        conv_exp_factor=2, conv_kernel_size=7, conv_dropout=0.0,
        attention_dropout=0.0,
        num_classes=10, hidden_size_decoder=32, num_decoder_layers=1,
    )
    key = jax.random.PRNGKey(0)
    pkey, xkey = jax.random.split(key)
    params = init_params(pkey, cfg)

    B, T = 2, 35
    x = jax.random.normal(xkey, (B, T, cfg["input_dim"]), F32)

    fwd = jax.jit(functools.partial(conformer_forward, cfg=cfg))
    out = fwd(x, params)
    out = jax.block_until_ready(out)

    expected_T = (T - 3) // 4  # matches Conformer.transform_input_lengths
    assert out.shape == (B, expected_T, cfg["num_classes"]), out.shape
    assert bool(jnp.all(jnp.isfinite(out)))
    print("KERNEL_OK")
</pallas_src>

<mosaic_0001>
module attributes {stable_mosaic.version = 11 : i64} {
  func.func @_linear_kernel(%arg0: i32, %arg1: i32, %arg2: memref<238x9xf32, #tpu.memory_space<vmem>>, %arg3: memref<9x128xbf16, #tpu.memory_space<vmem>>, %arg4: memref<1x128xf32, #tpu.memory_space<vmem>>, %arg5: memref<238x128xf32, #tpu.memory_space<vmem>>) attributes {dimension_semantics = [#tpu.dimension_semantics<parallel>, #tpu.dimension_semantics<parallel>], iteration_bounds = array<i64: 1, 1>, scalar_prefetch = 0 : i64, scratch_operands = 0 : i64, tpu.core_type = #tpu.core_type<tc>, window_params = [{transform_indices = @transform_0, window_bounds = array<i64: 238, 9>}, {transform_indices = @transform_1, window_bounds = array<i64: 9, 128>}, {transform_indices = @transform_2, window_bounds = array<i64: 1, 128>}, {transform_indices = @transform_3, window_bounds = array<i64: 238, 128>}]} {
    %c0 = arith.constant 0 : index
    %c0_0 = arith.constant 0 : index
    %0 = vector.load %arg2[%c0, %c0_0] : memref<238x9xf32, #tpu.memory_space<vmem>>, vector<238x9xf32>
    %c0_1 = arith.constant 0 : index
    %c0_2 = arith.constant 0 : index
    %1 = vector.load %arg3[%c0_1, %c0_2] : memref<9x128xbf16, #tpu.memory_space<vmem>>, vector<9x128xbf16>
    %2 = arith.truncf %0 : vector<238x9xf32> to vector<238x9xbf16>
    %cst = arith.constant dense<0.000000e+00> : vector<238x128xf32>
    %3 = tpu.matmul %2, %1, %cst {dimension_numbers = #tpu.dot_dimension_numbers<[1], [0], [0], [1], [0, 0, 1, 1], [], []>} : vector<238x9xbf16>, vector<9x128xbf16>, vector<238x128xf32> -> vector<238x128xf32>
    %c0_3 = arith.constant 0 : index
    %c0_4 = arith.constant 0 : index
    %4 = vector.load %arg4[%c0_3, %c0_4] : memref<1x128xf32, #tpu.memory_space<vmem>>, vector<1x128xf32>
    %5 = vector.broadcast %4 : vector<1x128xf32> to vector<238x128xf32>
    %6 = arith.addf %3, %5 : vector<238x128xf32>
    %cst_5 = arith.constant 0.000000e+00 : f32
    %7 = vector.broadcast %cst_5 : f32 to vector<238x128xf32>
    %8 = arith.maximumf %6, %7 : vector<238x128xf32>
    %c0_6 = arith.constant 0 : index
    %c0_7 = arith.constant 0 : index
    %9 = vector.load %arg5[%c0_6, %c0_7] : memref<238x128xf32, #tpu.memory_space<vmem>>, vector<238x128xf32>
    tpu.vector_store %arg5[%c0_6, %c0_7], %8 {strides = array<i32>} : memref<238x128xf32, #tpu.memory_space<vmem>>, vector<238x128xf32>,
    return
  }
  func.func @transform_0(%arg0: i32, %arg1: i32) -> (i32, i32) {
    %c0_i32 = arith.constant 0 : i32
    %c0_i32_0 = arith.constant 0 : i32
    return %arg0, %c0_i32 : i32, i32
  }
  func.func @transform_1(%arg0: i32, %arg1: i32) -> (i32, i32) {
    %c0_i32 = arith.constant 0 : i32
    %c0_i32_0 = arith.constant 0 : i32
    return %c0_i32, %arg1 : i32, i32
  }
  func.func @transform_2(%arg0: i32, %arg1: i32) -> (i32, i32) {
    %c0_i32 = arith.constant 0 : i32
    %c0_i32_0 = arith.constant 0 : i32
    return %c0_i32, %arg1 : i32, i32
  }
  func.func @transform_3(%arg0: i32, %arg1: i32) -> (i32, i32) {
    %c0_i32 = arith.constant 0 : i32
    return %arg0, %arg1 : i32, i32
  }
}

module attributes {stable_mosaic.version = 11 : i64} {
  func.func @_linear_kernel(%arg0: i32, %arg1: i32, %arg2: memref<48x288xf32, #tpu.memory_space<vmem>>, %arg3: memref<288x128xbf16, #tpu.memory_space<vmem>>, %arg4: memref<1x128xf32, #tpu.memory_space<vmem>>, %arg5: memref<48x128xf32, #tpu.memory_space<vmem>>) attributes {dimension_semantics = [#tpu.dimension_semantics<parallel>, #tpu.dimension_semantics<parallel>], iteration_bounds = array<i64: 1, 1>, scalar_prefetch = 0 : i64, scratch_operands = 0 : i64, tpu.core_type = #tpu.core_type<tc>, window_params = [{transform_indices = @transform_0, window_bounds = array<i64: 48, 288>}, {transform_indices = @transform_1, window_bounds = array<i64: 288, 128>}, {transform_indices = @transform_2, window_bounds = array<i64: 1, 128>}, {transform_indices = @transform_3, window_bounds = array<i64: 48, 128>}]} {
    %c0 = arith.constant 0 : index
    %c0_0 = arith.constant 0 : index
    %0 = vector.load %arg2[%c0, %c0_0] : memref<48x288xf32, #tpu.memory_space<vmem>>, vector<48x288xf32>
    %c0_1 = arith.constant 0 : index
    %c0_2 = arith.constant 0 : index
    %1 = vector.load %arg3[%c0_1, %c0_2] : memref<288x128xbf16, #tpu.memory_space<vmem>>, vector<288x128xbf16>
    %2 = arith.truncf %0 : vector<48x288xf32> to vector<48x288xbf16>
    %cst = arith.constant dense<0.000000e+00> : vector<48x128xf32>
    %3 = tpu.matmul %2, %1, %cst {dimension_numbers = #tpu.dot_dimension_numbers<[1], [0], [0], [1], [0, 0, 1, 1], [], []>} : vector<48x288xbf16>, vector<288x128xbf16>, vector<48x128xf32> -> vector<48x128xf32>
    %c0_3 = arith.constant 0 : index
    %c0_4 = arith.constant 0 : index
    %4 = vector.load %arg4[%c0_3, %c0_4] : memref<1x128xf32, #tpu.memory_space<vmem>>, vector<1x128xf32>
    %5 = vector.broadcast %4 : vector<1x128xf32> to vector<48x128xf32>
    %6 = arith.addf %3, %5 : vector<48x128xf32>
    %cst_5 = arith.constant 0.000000e+00 : f32
    %7 = vector.broadcast %cst_5 : f32 to vector<48x128xf32>
    %8 = arith.maximumf %6, %7 : vector<48x128xf32>
    %c0_6 = arith.constant 0 : index
    %c0_7 = arith.constant 0 : index
    %9 = vector.load %arg5[%c0_6, %c0_7] : memref<48x128xf32, #tpu.memory_space<vmem>>, vector<48x128xf32>
    tpu.vector_store %arg5[%c0_6, %c0_7], %8 {strides = array<i32>} : memref<48x128xf32, #tpu.memory_space<vmem>>, vector<48x128xf32>,
    return
  }
  func.func @transform_0(%arg0: i32, %arg1: i32) -> (i32, i32) {
    %c0_i32 = arith.constant 0 : i32
    %c0_i32_0 = arith.constant 0 : i32
    return %arg0, %c0_i32 : i32, i32
  }
  func.func @transform_1(%arg0: i32, %arg1: i32) -> (i32, i32) {
    %c0_i32 = arith.constant 0 : i32
    %c0_i32_0 = arith.constant 0 : i32
    return %c0_i32, %arg1 : i32, i32
  }
  func.func @transform_2(%arg0: i32, %arg1: i32) -> (i32, i32) {
    %c0_i32 = arith.constant 0 : i32
    %c0_i32_0 = arith.constant 0 : i32
    return %c0_i32, %arg1 : i32, i32
  }
  func.func @transform_3(%arg0: i32, %arg1: i32) -> (i32, i32) {
    %c0_i32 = arith.constant 0 : i32
    return %arg0, %arg1 : i32, i32
  }
}

module attributes {stable_mosaic.version = 11 : i64} {
  func.func @_linear_kernel(%arg0: i32, %arg1: i32, %arg2: memref<16x96xf32, #tpu.memory_space<vmem>>, %arg3: memref<96x128xbf16, #tpu.memory_space<vmem>>, %arg4: memref<1x128xf32, #tpu.memory_space<vmem>>, %arg5: memref<16x128xf32, #tpu.memory_space<vmem>>) attributes {dimension_semantics = [#tpu.dimension_semantics<parallel>, #tpu.dimension_semantics<parallel>], iteration_bounds = array<i64: 1, 1>, scalar_prefetch = 0 : i64, scratch_operands = 0 : i64, tpu.core_type = #tpu.core_type<tc>, window_params = [{transform_indices = @transform_0, window_bounds = array<i64: 16, 96>}, {transform_indices = @transform_1, window_bounds = array<i64: 96, 128>}, {transform_indices = @transform_2, window_bounds = array<i64: 1, 128>}, {transform_indices = @transform_3, window_bounds = array<i64: 16, 128>}]} {
    %c0 = arith.constant 0 : index
    %c0_0 = arith.constant 0 : index
    %0 = vector.load %arg2[%c0, %c0_0] : memref<16x96xf32, #tpu.memory_space<vmem>>, vector<16x96xf32>
    %c0_1 = arith.constant 0 : index
    %c0_2 = arith.constant 0 : index
    %1 = vector.load %arg3[%c0_1, %c0_2] : memref<96x128xbf16, #tpu.memory_space<vmem>>, vector<96x128xbf16>
    %2 = arith.truncf %0 : vector<16x96xf32> to vector<16x96xbf16>
    %cst = arith.constant dense<0.000000e+00> : vector<16x128xf32>
    %3 = tpu.matmul %2, %1, %cst {dimension_numbers = #tpu.dot_dimension_numbers<[1], [0], [0], [1], [0, 0, 1, 1], [], []>} : vector<16x96xbf16>, vector<96x128xbf16>, vector<16x128xf32> -> vector<16x128xf32>
    %c0_3 = arith.constant 0 : index
    %c0_4 = arith.constant 0 : index
    %4 = vector.load %arg4[%c0_3, %c0_4] : memref<1x128xf32, #tpu.memory_space<vmem>>, vector<1x128xf32>
    %5 = vector.broadcast %4 : vector<1x128xf32> to vector<16x128xf32>
    %6 = arith.addf %3, %5 : vector<16x128xf32>
    %c0_5 = arith.constant 0 : index
    %c0_6 = arith.constant 0 : index
    %7 = vector.load %arg5[%c0_5, %c0_6] : memref<16x128xf32, #tpu.memory_space<vmem>>, vector<16x128xf32>
    tpu.vector_store %arg5[%c0_5, %c0_6], %6 {strides = array<i32>} : memref<16x128xf32, #tpu.memory_space<vmem>>, vector<16x128xf32>,
    return
  }
  func.func @transform_0(%arg0: i32, %arg1: i32) -> (i32, i32) {
    %c0_i32 = arith.constant 0 : i32
    %c0_i32_0 = arith.constant 0 : i32
    return %arg0, %c0_i32 : i32, i32
  }
  func.func @transform_1(%arg0: i32, %arg1: i32) -> (i32, i32) {
    %c0_i32 = arith.constant 0 : i32
    %c0_i32_0 = arith.constant 0 : i32
    return %c0_i32, %arg1 : i32, i32
  }
  func.func @transform_2(%arg0: i32, %arg1: i32) -> (i32, i32) {
    %c0_i32 = arith.constant 0 : i32
    %c0_i32_0 = arith.constant 0 : i32
    return %c0_i32, %arg1 : i32, i32
  }
  func.func @transform_3(%arg0: i32, %arg1: i32) -> (i32, i32) {
    %c0_i32 = arith.constant 0 : i32
    return %arg0, %arg1 : i32, i32
  }
}

module attributes {stable_mosaic.version = 11 : i64} {
  func.func @_ffn_kernel(%arg0: i32, %arg1: memref<16x32xf32, #tpu.memory_space<vmem>>, %arg2: memref<1x32xf32, #tpu.memory_space<vmem>>, %arg3: memref<1x32xf32, #tpu.memory_space<vmem>>, %arg4: memref<32x64xbf16, #tpu.memory_space<vmem>>, %arg5: memref<1x64xf32, #tpu.memory_space<vmem>>, %arg6: memref<64x32xbf16, #tpu.memory_space<vmem>>, %arg7: memref<1x32xf32, #tpu.memory_space<vmem>>, %arg8: memref<16x32xf32, #tpu.memory_space<vmem>>) attributes {dimension_semantics = [#tpu.dimension_semantics<parallel>], iteration_bounds = array<i64: 1>, scalar_prefetch = 0 : i64, scratch_operands = 0 : i64, tpu.core_type = #tpu.core_type<tc>, window_params = [{transform_indices = @transform_0, window_bounds = array<i64: 16, 32>}, {pipeline_mode = #tpu.pipeline_mode<synchronous>, transform_indices = @transform_1, window_bounds = array<i64: 1, 32>}, {pipeline_mode = #tpu.pipeline_mode<synchronous>, transform_indices = @transform_2, window_bounds = array<i64: 1, 32>}, {pipeline_mode = #tpu.pipeline_mode<synchronous>, transform_indices = @transform_3, window_bounds = array<i64: 32, 64>}, {pipeline_mode = #tpu.pipeline_mode<synchronous>, transform_indices = @transform_4, window_bounds = array<i64: 1, 64>}, {pipeline_mode = #tpu.pipeline_mode<synchronous>, transform_indices = @transform_5, window_bounds = array<i64: 64, 32>}, {pipeline_mode = #tpu.pipeline_mode<synchronous>, transform_indices = @transform_6, window_bounds = array<i64: 1, 32>}, {transform_indices = @transform_7, window_bounds = array<i64: 16, 32>}]} {
    %c0 = arith.constant 0 : index
    %c0_0 = arith.constant 0 : index
    %0 = vector.load %arg1[%c0, %c0_0] : memref<16x32xf32, #tpu.memory_space<vmem>>, vector<16x32xf32>
    %c0_1 = arith.constant 0 : index
    %c0_2 = arith.constant 0 : index
    %1 = vector.load %arg2[%c0_1, %c0_2] : memref<1x32xf32, #tpu.memory_space<vmem>>, vector<1x32xf32>
    %c0_3 = arith.constant 0 : index
    %c0_4 = arith.constant 0 : index
    %2 = vector.load %arg3[%c0_3, %c0_4] : memref<1x32xf32, #tpu.memory_space<vmem>>, vector<1x32xf32>
    %cst = arith.constant dense<0.000000e+00> : vector<16xf32>
    %3 = vector.multi_reduction <add>, %0, %cst [1] : vector<16x32xf32> to vector<16xf32>
    %4 = vector.shape_cast %3 : vector<16xf32> to vector<16x1xf32>
    %cst_5 = arith.constant 3.200000e+01 : f32
    %5 = vector.broadcast %cst_5 : f32 to vector<16x1xf32>
    %6 = arith.divf %4, %5 : vector<16x1xf32>
    %7 = vector.broadcast %6 : vector<16x1xf32> to vector<16x32xf32>
    %8 = arith.subf %0, %7 : vector<16x32xf32>
    %9 = arith.mulf %8, %8 : vector<16x32xf32>
    %cst_6 = arith.constant dense<0.000000e+00> : vector<16xf32>
    %10 = vector.multi_reduction <add>, %9, %cst_6 [1] : vector<16x32xf32> to vector<16xf32>
    %11 = vector.shape_cast %10 : vector<16xf32> to vector<16x1xf32>
    %cst_7 = arith.constant 3.200000e+01 : f32
    %12 = vector.broadcast %cst_7 : f32 to vector<16x1xf32>
    %13 = arith.divf %11, %12 : vector<16x1xf32>
    %14 = vector.broadcast %6 : vector<16x1xf32> to vector<16x32xf32>
    %15 = arith.subf %0, %14 : vector<16x32xf32>
    %cst_8 = arith.constant 9.99999974E-6 : f32
    %16 = vector.broadcast %cst_8 : f32 to vector<16x1xf32>
    %17 = arith.addf %13, %16 : vector<16x1xf32>
    %18 = math.rsqrt %17 : vector<16x1xf32>
    %19 = vector.broadcast %18 : vector<16x1xf32> to vector<16x32xf32>
    %20 = arith.mulf %15, %19 : vector<16x32xf32>
    %21 = vector.broadcast %1 : vector<1x32xf32> to vector<16x32xf32>
    %22 = arith.mulf %20, %21 : vector<16x32xf32>
    %23 = vector.broadcast %2 : vector<1x32xf32> to vector<16x32xf32>
    %24 = arith.addf %22, %23 : vector<16x32xf32>
    %c0_9 = arith.constant 0 : index
    %c0_10 = arith.constant 0 : index
    %25 = vector.load %arg4[%c0_9, %c0_10] : memref<32x64xbf16, #tpu.memory_space<vmem>>, vector<32x64xbf16>
    %26 = arith.truncf %24 : vector<16x32xf32> to vector<16x32xbf16>
    %cst_11 = arith.constant dense<0.000000e+00> : vector<16x64xf32>
    %27 = tpu.matmul %26, %25, %cst_11 {dimension_numbers = #tpu.dot_dimension_numbers<[1], [0], [0], [1], [0, 0, 1, 1], [], []>} : vector<16x32xbf16>, vector<32x64xbf16>, vector<16x64xf32> -> vector<16x64xf32>
    %c0_12 = arith.constant 0 : index
    %c0_13 = arith.constant 0 : index
    %28 = vector.load %arg5[%c0_12, %c0_13] : memref<1x64xf32, #tpu.memory_space<vmem>>, vector<1x64xf32>
    %29 = vector.broadcast %28 : vector<1x64xf32> to vector<16x64xf32>
    %30 = arith.addf %27, %29 : vector<16x64xf32>
    %31 = arith.negf %30 : vector<16x64xf32>
    %32 = math.exp %31 : vector<16x64xf32>
    %cst_14 = arith.constant 1.000000e+00 : f32
    %33 = vector.broadcast %cst_14 : f32 to vector<16x64xf32>
    %34 = arith.addf %33, %32 : vector<16x64xf32>
    %35 = arith.divf %33, %34 : vector<16x64xf32>
    %36 = arith.mulf %30, %35 : vector<16x64xf32>
    %c0_15 = arith.constant 0 : index
    %c0_16 = arith.constant 0 : index
    %37 = vector.load %arg6[%c0_15, %c0_16] : memref<64x32xbf16, #tpu.memory_space<vmem>>, vector<64x32xbf16>
    %38 = arith.truncf %36 : vector<16x64xf32> to vector<16x64xbf16>
    %cst_17 = arith.constant dense<0.000000e+00> : vector<16x32xf32>
    %39 = tpu.matmul %38, %37, %cst_17 {dimension_numbers = #tpu.dot_dimension_numbers<[1], [0], [0], [1], [0, 0, 1, 1], [], []>} : vector<16x64xbf16>, vector<64x32xbf16>, vector<16x32xf32> -> vector<16x32xf32>
    %c0_18 = arith.constant 0 : index
    %c0_19 = arith.constant 0 : index
    %40 = vector.load %arg7[%c0_18, %c0_19] : memref<1x32xf32, #tpu.memory_space<vmem>>, vector<1x32xf32>
    %41 = vector.broadcast %40 : vector<1x32xf32> to vector<16x32xf32>
    %42 = arith.addf %39, %41 : vector<16x32xf32>
    %cst_20 = arith.constant 5.000000e-01 : f32
    %43 = vector.broadcast %cst_20 : f32 to vector<16x32xf32>
    %44 = arith.mulf %43, %42 : vector<16x32xf32>
    %45 = arith.addf %0, %44 : vector<16x32xf32>
    %c0_21 = arith.constant 0 : index
    %c0_22 = arith.constant 0 : index
    %46 = vector.load %arg8[%c0_21, %c0_22] : memref<16x32xf32, #tpu.memory_space<vmem>>, vector<16x32xf32>
    tpu.vector_store %arg8[%c0_21, %c0_22], %45 {strides = array<i32>} : memref<16x32xf32, #tpu.memory_space<vmem>>, vector<16x32xf32>,
    return
  }
  func.func @transform_0(%arg0: i32) -> (i32, i32) {
    %c0_i32 = arith.constant 0 : i32
    %c0_i32_0 = arith.constant 0 : i32
    return %arg0, %c0_i32 : i32, i32
  }
  func.func @transform_1(%arg0: i32) -> (i32, i32) {
    %c0_i32 = arith.constant 0 : i32
    %c0_i32_0 = arith.constant 0 : i32
    %c0_i32_1 = arith.constant 0 : i32
    return %c0_i32, %c0_i32_0 : i32, i32
  }
  func.func @transform_2(%arg0: i32) -> (i32, i32) {
    %c0_i32 = arith.constant 0 : i32
    %c0_i32_0 = arith.constant 0 : i32
    %c0_i32_1 = arith.constant 0 : i32
    return %c0_i32, %c0_i32_0 : i32, i32
  }
  func.func @transform_3(%arg0: i32) -> (i32, i32) {
    %c0_i32 = arith.constant 0 : i32
    %c0_i32_0 = arith.constant 0 : i32
    %c0_i32_1 = arith.constant 0 : i32
    return %c0_i32, %c0_i32_0 : i32, i32
  }
  func.func @transform_4(%arg0: i32) -> (i32, i32) {
    %c0_i32 = arith.constant 0 : i32
    %c0_i32_0 = arith.constant 0 : i32
    %c0_i32_1 = arith.constant 0 : i32
    return %c0_i32, %c0_i32_0 : i32, i32
  }
  func.func @transform_5(%arg0: i32) -> (i32, i32) {
    %c0_i32 = arith.constant 0 : i32
    %c0_i32_0 = arith.constant 0 : i32
    %c0_i32_1 = arith.constant 0 : i32
    return %c0_i32, %c0_i32_0 : i32, i32
  }
  func.func @transform_6(%arg0: i32) -> (i32, i32) {
    %c0_i32 = arith.constant 0 : i32
    %c0_i32_0 = arith.constant 0 : i32
    %c0_i32_1 = arith.constant 0 : i32
    return %c0_i32, %c0_i32_0 : i32, i32
  }
  func.func @transform_7(%arg0: i32) -> (i32, i32) {
    %c0_i32 = arith.constant 0 : i32
    %c0_i32_0 = arith.constant 0 : i32
    return %arg0, %c0_i32 : i32, i32
  }
}

module attributes {stable_mosaic.version = 11 : i64} {
  func.func @_ln_qkv_kernel(%arg0: i32, %arg1: memref<16x32xf32, #tpu.memory_space<vmem>>, %arg2: memref<1x32xf32, #tpu.memory_space<vmem>>, %arg3: memref<1x32xf32, #tpu.memory_space<vmem>>, %arg4: memref<32x96xbf16, #tpu.memory_space<vmem>>, %arg5: memref<1x96xf32, #tpu.memory_space<vmem>>, %arg6: memref<16x32xbf16, #tpu.memory_space<vmem>>, %arg7: memref<16x32xbf16, #tpu.memory_space<vmem>>, %arg8: memref<16x32xbf16, #tpu.memory_space<vmem>>) attributes {dimension_semantics = [#tpu.dimension_semantics<parallel>], iteration_bounds = array<i64: 1>, scalar_prefetch = 0 : i64, scratch_operands = 0 : i64, tpu.core_type = #tpu.core_type<tc>, window_params = [{transform_indices = @transform_0, window_bounds = array<i64: 16, 32>}, {pipeline_mode = #tpu.pipeline_mode<synchronous>, transform_indices = @transform_1, window_bounds = array<i64: 1, 32>}, {pipeline_mode = #tpu.pipeline_mode<synchronous>, transform_indices = @transform_2, window_bounds = array<i64: 1, 32>}, {pipeline_mode = #tpu.pipeline_mode<synchronous>, transform_indices = @transform_3, window_bounds = array<i64: 32, 96>}, {pipeline_mode = #tpu.pipeline_mode<synchronous>, transform_indices = @transform_4, window_bounds = array<i64: 1, 96>}, {transform_indices = @transform_5, window_bounds = array<i64: 16, 32>}, {transform_indices = @transform_6, window_bounds = array<i64: 16, 32>}, {transform_indices = @transform_7, window_bounds = array<i64: 16, 32>}]} {
    %c0 = arith.constant 0 : index
    %c0_0 = arith.constant 0 : index
    %0 = vector.load %arg1[%c0, %c0_0] : memref<16x32xf32, #tpu.memory_space<vmem>>, vector<16x32xf32>
    %c0_1 = arith.constant 0 : index
    %c0_2 = arith.constant 0 : index
    %1 = vector.load %arg2[%c0_1, %c0_2] : memref<1x32xf32, #tpu.memory_space<vmem>>, vector<1x32xf32>
    %c0_3 = arith.constant 0 : index
    %c0_4 = arith.constant 0 : index
    %2 = vector.load %arg3[%c0_3, %c0_4] : memref<1x32xf32, #tpu.memory_space<vmem>>, vector<1x32xf32>
    %cst = arith.constant dense<0.000000e+00> : vector<16xf32>
    %3 = vector.multi_reduction <add>, %0, %cst [1] : vector<16x32xf32> to vector<16xf32>
    %4 = vector.shape_cast %3 : vector<16xf32> to vector<16x1xf32>
    %cst_5 = arith.constant 3.200000e+01 : f32
    %5 = vector.broadcast %cst_5 : f32 to vector<16x1xf32>
    %6 = arith.divf %4, %5 : vector<16x1xf32>
    %7 = vector.broadcast %6 : vector<16x1xf32> to vector<16x32xf32>
    %8 = arith.subf %0, %7 : vector<16x32xf32>
    %9 = arith.mulf %8, %8 : vector<16x32xf32>
    %cst_6 = arith.constant dense<0.000000e+00> : vector<16xf32>
    %10 = vector.multi_reduction <add>, %9, %cst_6 [1] : vector<16x32xf32> to vector<16xf32>
    %11 = vector.shape_cast %10 : vector<16xf32> to vector<16x1xf32>
    %cst_7 = arith.constant 3.200000e+01 : f32
    %12 = vector.broadcast %cst_7 : f32 to vector<16x1xf32>
    %13 = arith.divf %11, %12 : vector<16x1xf32>
    %14 = vector.broadcast %6 : vector<16x1xf32> to vector<16x32xf32>
    %15 = arith.subf %0, %14 : vector<16x32xf32>
    %cst_8 = arith.constant 9.99999974E-6 : f32
    %16 = vector.broadcast %cst_8 : f32 to vector<16x1xf32>
    %17 = arith.addf %13, %16 : vector<16x1xf32>
    %18 = math.rsqrt %17 : vector<16x1xf32>
    %19 = vector.broadcast %18 : vector<16x1xf32> to vector<16x32xf32>
    %20 = arith.mulf %15, %19 : vector<16x32xf32>
    %21 = vector.broadcast %1 : vector<1x32xf32> to vector<16x32xf32>
    %22 = arith.mulf %20, %21 : vector<16x32xf32>
    %23 = vector.broadcast %2 : vector<1x32xf32> to vector<16x32xf32>
    %24 = arith.addf %22, %23 : vector<16x32xf32>
    %c0_9 = arith.constant 0 : index
    %c0_10 = arith.constant 0 : index
    %25 = vector.load %arg4[%c0_9, %c0_10] : memref<32x96xbf16, #tpu.memory_space<vmem>>, vector<32x96xbf16>
    %26 = arith.truncf %24 : vector<16x32xf32> to vector<16x32xbf16>
    %cst_11 = arith.constant dense<0.000000e+00> : vector<16x96xf32>
    %27 = tpu.matmul %26, %25, %cst_11 {dimension_numbers = #tpu.dot_dimension_numbers<[1], [0], [0], [1], [0, 0, 1, 1], [], []>} : vector<16x32xbf16>, vector<32x96xbf16>, vector<16x96xf32> -> vector<16x96xf32>
    %c0_12 = arith.constant 0 : index
    %c0_13 = arith.constant 0 : index
    %28 = vector.load %arg5[%c0_12, %c0_13] : memref<1x96xf32, #tpu.memory_space<vmem>>, vector<1x96xf32>
    %29 = vector.broadcast %28 : vector<1x96xf32> to vector<16x96xf32>
    %30 = arith.addf %27, %29 : vector<16x96xf32>
    %31 = vector.extract_strided_slice %30 {offsets = [0, 0], sizes = [16, 32], strides = [1, 1]} : vector<16x96xf32> to vector<16x32xf32>
    %32 = arith.truncf %31 : vector<16x32xf32> to vector<16x32xbf16>
    %c0_14 = arith.constant 0 : index
    %c0_15 = arith.constant 0 : index
    %33 = vector.load %arg6[%c0_14, %c0_15] : memref<16x32xbf16, #tpu.memory_space<vmem>>, vector<16x32xbf16>
    tpu.vector_store %arg6[%c0_14, %c0_15], %32 {strides = array<i32>} : memref<16x32xbf16, #tpu.memory_space<vmem>>, vector<16x32xbf16>,
    %34 = vector.extract_strided_slice %30 {offsets = [0, 32], sizes = [16, 32], strides = [1, 1]} : vector<16x96xf32> to vector<16x32xf32>
    %35 = arith.truncf %34 : vector<16x32xf32> to vector<16x32xbf16>
    %c0_16 = arith.constant 0 : index
    %c0_17 = arith.constant 0 : index
    %36 = vector.load %arg7[%c0_16, %c0_17] : memref<16x32xbf16, #tpu.memory_space<vmem>>, vector<16x32xbf16>
    tpu.vector_store %arg7[%c0_16, %c0_17], %35 {strides = array<i32>} : memref<16x32xbf16, #tpu.memory_space<vmem>>, vector<16x32xbf16>,
    %37 = vector.extract_strided_slice %30 {offsets = [0, 64], sizes = [16, 32], strides = [1, 1]} : vector<16x96xf32> to vector<16x32xf32>
    %38 = arith.truncf %37 : vector<16x32xf32> to vector<16x32xbf16>
    %c0_18 = arith.constant 0 : index
    %c0_19 = arith.constant 0 : index
    %39 = vector.load %arg8[%c0_18, %c0_19] : memref<16x32xbf16, #tpu.memory_space<vmem>>, vector<16x32xbf16>
    tpu.vector_store %arg8[%c0_18, %c0_19], %38 {strides = array<i32>} : memref<16x32xbf16, #tpu.memory_space<vmem>>, vector<16x32xbf16>,
    return
  }
  func.func @transform_0(%arg0: i32) -> (i32, i32) {
    %c0_i32 = arith.constant 0 : i32
    %c0_i32_0 = arith.constant 0 : i32
    return %arg0, %c0_i32 : i32, i32
  }
  func.func @transform_1(%arg0: i32) -> (i32, i32) {
    %c0_i32 = arith.constant 0 : i32
    %c0_i32_0 = arith.constant 0 : i32
    %c0_i32_1 = arith.constant 0 : i32
    return %c0_i32, %c0_i32_0 : i32, i32
  }
  func.func @transform_2(%arg0: i32) -> (i32, i32) {
    %c0_i32 = arith.constant 0 : i32
    %c0_i32_0 = arith.constant 0 : i32
    %c0_i32_1 = arith.constant 0 : i32
    return %c0_i32, %c0_i32_0 : i32, i32
  }
  func.func @transform_3(%arg0: i32) -> (i32, i32) {
    %c0_i32 = arith.constant 0 : i32
    %c0_i32_0 = arith.constant 0 : i32
    %c0_i32_1 = arith.constant 0 : i32
    return %c0_i32, %c0_i32_0 : i32, i32
  }
  func.func @transform_4(%arg0: i32) -> (i32, i32) {
    %c0_i32 = arith.constant 0 : i32
    %c0_i32_0 = arith.constant 0 : i32
    %c0_i32_1 = arith.constant 0 : i32
    return %c0_i32, %c0_i32_0 : i32, i32
  }
  func.func @transform_5(%arg0: i32) -> (i32, i32) {
    %c0_i32 = arith.constant 0 : i32
    %c0_i32_0 = arith.constant 0 : i32
    return %arg0, %c0_i32 : i32, i32
  }
  func.func @transform_6(%arg0: i32) -> (i32, i32) {
    %c0_i32 = arith.constant 0 : i32
    %c0_i32_0 = arith.constant 0 : i32
    return %arg0, %c0_i32 : i32, i32
  }
  func.func @transform_7(%arg0: i32) -> (i32, i32) {
    %c0_i32 = arith.constant 0 : i32
    %c0_i32_0 = arith.constant 0 : i32
    return %arg0, %c0_i32 : i32, i32
  }
}

module attributes {stable_mosaic.version = 11 : i64} {
  func.func @_flash_mhsa_kernel(%arg0: i32, %arg1: i32, %arg2: i32, %arg3: memref<1x8x8xbf16, #tpu.memory_space<vmem>>, %arg4: memref<1x8x8xbf16, #tpu.memory_space<vmem>>, %arg5: memref<1x8x8xbf16, #tpu.memory_space<vmem>>, %arg6: memref<1x8x8xbf16, #tpu.memory_space<vmem>>, %arg7: memref<8x1xf32, #tpu.memory_space<vmem>>, %arg8: memref<8x1xf32, #tpu.memory_space<vmem>>, %arg9: memref<8x8xf32, #tpu.memory_space<vmem>>) attributes {dimension_semantics = [#tpu.dimension_semantics<parallel>, #tpu.dimension_semantics<parallel>, #tpu.dimension_semantics<arbitrary>], iteration_bounds = array<i64: 8, 1, 1>, scalar_prefetch = 0 : i64, scratch_operands = 3 : i64, tpu.core_type = #tpu.core_type<tc>, window_params = [{transform_indices = @transform_0, window_bounds = array<i64: 1, 8, 8>}, {transform_indices = @transform_1, window_bounds = array<i64: 1, 8, 8>}, {transform_indices = @transform_2, window_bounds = array<i64: 1, 8, 8>}, {transform_indices = @transform_3, window_bounds = array<i64: 1, 8, 8>}]} {
    %c0_i32 = arith.constant 0 : i32
    %0 = arith.cmpi eq, %arg2, %c0_i32 : i32
    %1 = arith.extui %0 : i1 to i32
    %c0_i32_0 = arith.constant 0 : i32
    %2 = arith.cmpi ne, %1, %c0_i32_0 : i32
    scf.if %2 {
      %cst_27 = arith.constant -1.000000e+30 : f32
      %40 = vector.broadcast %cst_27 : f32 to vector<8x1xf32>
      %c0_28 = arith.constant 0 : index
      %c0_29 = arith.constant 0 : index
      %41 = vector.load %arg7[%c0_28, %c0_29] : memref<8x1xf32, #tpu.memory_space<vmem>>, vector<8x1xf32>
      tpu.vector_store %arg7[%c0_28, %c0_29], %40 {strides = array<i32>} : memref<8x1xf32, #tpu.memory_space<vmem>>, vector<8x1xf32>,
      %cst_30 = arith.constant 0.000000e+00 : f32
      %42 = vector.broadcast %cst_30 : f32 to vector<8x1xf32>
      %c0_31 = arith.constant 0 : index
      %c0_32 = arith.constant 0 : index
      %43 = vector.load %arg8[%c0_31, %c0_32] : memref<8x1xf32, #tpu.memory_space<vmem>>, vector<8x1xf32>
      tpu.vector_store %arg8[%c0_31, %c0_32], %42 {strides = array<i32>} : memref<8x1xf32, #tpu.memory_space<vmem>>, vector<8x1xf32>,
      %cst_33 = arith.constant 0.000000e+00 : f32
      %44 = vector.broadcast %cst_33 : f32 to vector<8x8xf32>
      %c0_34 = arith.constant 0 : index
      %c0_35 = arith.constant 0 : index
      %45 = vector.load %arg9[%c0_34, %c0_35] : memref<8x8xf32, #tpu.memory_space<vmem>>, vector<8x8xf32>
      tpu.vector_store %arg9[%c0_34, %c0_35], %44 {strides = array<i32>} : memref<8x8xf32, #tpu.memory_space<vmem>>, vector<8x8xf32>,
    } else {
    }
    %c0 = arith.constant 0 : index
    %c0_1 = arith.constant 0 : index
    %c0_2 = arith.constant 0 : index
    %3 = vector.load %arg3[%c0, %c0_1, %c0_2] : memref<1x8x8xbf16, #tpu.memory_space<vmem>>, vector<1x8x8xbf16>
    %4 = vector.shape_cast %3 : vector<1x8x8xbf16> to vector<8x8xbf16>
    %5 = arith.extf %4 : vector<8x8xbf16> to vector<8x8xf32>
    %cst = arith.constant 0.353553385 : f32
    %6 = vector.broadcast %cst : f32 to vector<8x8xf32>
    %7 = arith.mulf %5, %6 : vector<8x8xf32>
    %8 = arith.truncf %7 : vector<8x8xf32> to vector<8x8xbf16>
    %c0_3 = arith.constant 0 : index
    %c0_4 = arith.constant 0 : index
    %c0_5 = arith.constant 0 : index
    %9 = vector.load %arg4[%c0_3, %c0_4, %c0_5] : memref<1x8x8xbf16, #tpu.memory_space<vmem>>, vector<1x8x8xbf16>
    %10 = vector.shape_cast %9 : vector<1x8x8xbf16> to vector<8x8xbf16>
    %c0_6 = arith.constant 0 : index
    %c0_7 = arith.constant 0 : index
    %c0_8 = arith.constant 0 : index
    %11 = vector.load %arg5[%c0_6, %c0_7, %c0_8] : memref<1x8x8xbf16, #tpu.memory_space<vmem>>, vector<1x8x8xbf16>
    %12 = vector.shape_cast %11 : vector<1x8x8xbf16> to vector<8x8xbf16>
    %cst_9 = arith.constant dense<0.000000e+00> : vector<8x8xf32>
    %13 = tpu.matmul %8, %10, %cst_9 {dimension_numbers = #tpu.dot_dimension_numbers<[1], [1], [0], [0], [0, 0, 1, 0], [], []>} : vector<8x8xbf16>, vector<8x8xbf16>, vector<8x8xf32> -> vector<8x8xf32>
    %c0_10 = arith.constant 0 : index
    %c0_11 = arith.constant 0 : index
    %14 = vector.load %arg7[%c0_10, %c0_11] : memref<8x1xf32, #tpu.memory_space<vmem>>, vector<8x1xf32>
    %cst_12 = arith.constant dense<0xFF800000> : vector<8xf32>
    %15 = vector.multi_reduction <maximumf>, %13, %cst_12 [1] : vector<8x8xf32> to vector<8xf32>
    %16 = vector.shape_cast %15 : vector<8xf32> to vector<8x1xf32>
    %17 = arith.maximumf %14, %16 : vector<8x1xf32>
    %18 = arith.subf %14, %17 : vector<8x1xf32>
    %19 = math.exp %18 : vector<8x1xf32>
    %20 = vector.broadcast %17 : vector<8x1xf32> to vector<8x8xf32>
    %21 = arith.subf %13, %20 : vector<8x8xf32>
    %22 = math.exp %21 : vector<8x8xf32>
    %c0_13 = arith.constant 0 : index
    %c0_14 = arith.constant 0 : index
    %23 = vector.load %arg8[%c0_13, %c0_14] : memref<8x1xf32, #tpu.memory_space<vmem>>, vector<8x1xf32>
    %24 = arith.mulf %19, %23 : vector<8x1xf32>
    %cst_15 = arith.constant dense<0.000000e+00> : vector<8xf32>
    %25 = vector.multi_reduction <add>, %22, %cst_15 [1] : vector<8x8xf32> to vector<8xf32>
    %26 = vector.shape_cast %25 : vector<8xf32> to vector<8x1xf32>
    %27 = arith.addf %24, %26 : vector<8x1xf32>
    %c0_16 = arith.constant 0 : index
    %c0_17 = arith.constant 0 : index
    %28 = vector.load %arg8[%c0_16, %c0_17] : memref<8x1xf32, #tpu.memory_space<vmem>>, vector<8x1xf32>
    tpu.vector_store %arg8[%c0_16, %c0_17], %27 {strides = array<i32>} : memref<8x1xf32, #tpu.memory_space<vmem>>, vector<8x1xf32>,
    %c0_18 = arith.constant 0 : index
    %c0_19 = arith.constant 0 : index
    %29 = vector.load %arg9[%c0_18, %c0_19] : memref<8x8xf32, #tpu.memory_space<vmem>>, vector<8x8xf32>
    %30 = vector.broadcast %19 : vector<8x1xf32> to vector<8x8xf32>
    %31 = arith.mulf %30, %29 : vector<8x8xf32>
    %32 = arith.truncf %22 : vector<8x8xf32> to vector<8x8xbf16>
    %cst_20 = arith.constant dense<0.000000e+00> : vector<8x8xf32>
    %33 = tpu.matmul %32, %12, %cst_20 {dimension_numbers = #tpu.dot_dimension_numbers<[1], [0], [0], [1], [0, 0, 1, 1], [], []>} : vector<8x8xbf16>, vector<8x8xbf16>, vector<8x8xf32> -> vector<8x8xf32>
    %34 = arith.addf %31, %33 : vector<8x8xf32>
    %c0_21 = arith.constant 0 : index
    %c0_22 = arith.constant 0 : index
    %35 = vector.load %arg9[%c0_21, %c0_22] : memref<8x8xf32, #tpu.memory_space<vmem>>, vector<8x8xf32>
    tpu.vector_store %arg9[%c0_21, %c0_22], %34 {strides = array<i32>} : memref<8x8xf32, #tpu.memory_space<vmem>>, vector<8x8xf32>,
    %c0_23 = arith.constant 0 : index
    %c0_24 = arith.constant 0 : index
    %36 = vector.load %arg7[%c0_23, %c0_24] : memref<8x1xf32, #tpu.memory_space<vmem>>, vector<8x1xf32>
    tpu.vector_store %arg7[%c0_23, %c0_24], %17 {strides = array<i32>} : memref<8x1xf32, #tpu.memory_space<vmem>>, vector<8x1xf32>,
    %c0_i32_25 = arith.constant 0 : i32
    %37 = arith.cmpi eq, %arg2, %c0_i32_25 : i32
    %38 = arith.extui %37 : i1 to i32
    %c0_i32_26 = arith.constant 0 : i32
    %39 = arith.cmpi ne, %38, %c0_i32_26 : i32
    scf.if %39 {
      %c0_27 = arith.constant 0 : index
      %c0_28 = arith.constant 0 : index
      %40 = vector.load %arg9[%c0_27, %c0_28] : memref<8x8xf32, #tpu.memory_space<vmem>>, vector<8x8xf32>
      %c0_29 = arith.constant 0 : index
      %c0_30 = arith.constant 0 : index
      %41 = vector.load %arg8[%c0_29, %c0_30] : memref<8x1xf32, #tpu.memory_space<vmem>>, vector<8x1xf32>
      %42 = tpu.reciprocal %41 {approx = true} : vector<8x1xf32> -> vector<8x1xf32>
      %43 = vector.broadcast %42 : vector<8x1xf32> to vector<8x8xf32>
      %44 = arith.mulf %40, %43 : vector<8x8xf32>
      %45 = arith.truncf %44 : vector<8x8xf32> to vector<8x8xbf16>
      %c0_31 = arith.constant 0 : index
      %c0_32 = arith.constant 0 : index
      %c0_33 = arith.constant 0 : index
      %46 = vector.load %arg6[%c0_31, %c0_32, %c0_33] : memref<1x8x8xbf16, #tpu.memory_space<vmem>>, vector<1x8x8xbf16>
      %47 = vector.shape_cast %46 : vector<1x8x8xbf16> to vector<8x8xbf16>
      %48 = vector.shape_cast %45 : vector<8x8xbf16> to vector<1x8x8xbf16>
      tpu.vector_store %arg6[%c0_31, %c0_32, %c0_33], %48 {strides = array<i32>} : memref<1x8x8xbf16, #tpu.memory_space<vmem>>, vector<1x8x8xbf16>,
    } else {
    }
    return
  }
  func.func @transform_0(%arg0: i32, %arg1: i32, %arg2: i32) -> (i32, i32, i32) {
    %c0_i32 = arith.constant 0 : i32
    %c0_i32_0 = arith.constant 0 : i32
    return %arg0, %arg1, %c0_i32 : i32, i32, i32
  }
  func.func @transform_1(%arg0: i32, %arg1: i32, %arg2: i32) -> (i32, i32, i32) {
    %c0_i32 = arith.constant 0 : i32
    %c0_i32_0 = arith.constant 0 : i32
    return %arg0, %arg2, %c0_i32 : i32, i32, i32
  }
  func.func @transform_2(%arg0: i32, %arg1: i32, %arg2: i32) -> (i32, i32, i32) {
    %c0_i32 = arith.constant 0 : i32
    %c0_i32_0 = arith.constant 0 : i32
    return %arg0, %arg2, %c0_i32 : i32, i32, i32
  }
  func.func @transform_3(%arg0: i32, %arg1: i32, %arg2: i32) -> (i32, i32, i32) {
    %c0_i32 = arith.constant 0 : i32
    %c0_i32_0 = arith.constant 0 : i32
    return %arg0, %arg1, %c0_i32 : i32, i32, i32
  }
}

module attributes {stable_mosaic.version = 11 : i64} {
  func.func @_linear_res_kernel(%arg0: i32, %arg1: memref<16x32xbf16, #tpu.memory_space<vmem>>, %arg2: memref<16x32xf32, #tpu.memory_space<vmem>>, %arg3: memref<32x32xbf16, #tpu.memory_space<vmem>>, %arg4: memref<1x32xf32, #tpu.memory_space<vmem>>, %arg5: memref<16x32xf32, #tpu.memory_space<vmem>>) attributes {dimension_semantics = [#tpu.dimension_semantics<parallel>], iteration_bounds = array<i64: 1>, scalar_prefetch = 0 : i64, scratch_operands = 0 : i64, tpu.core_type = #tpu.core_type<tc>, window_params = [{transform_indices = @transform_0, window_bounds = array<i64: 16, 32>}, {transform_indices = @transform_1, window_bounds = array<i64: 16, 32>}, {pipeline_mode = #tpu.pipeline_mode<synchronous>, transform_indices = @transform_2, window_bounds = array<i64: 32, 32>}, {pipeline_mode = #tpu.pipeline_mode<synchronous>, transform_indices = @transform_3, window_bounds = array<i64: 1, 32>}, {transform_indices = @transform_4, window_bounds = array<i64: 16, 32>}]} {
    %c0 = arith.constant 0 : index
    %c0_0 = arith.constant 0 : index
    %0 = vector.load %arg1[%c0, %c0_0] : memref<16x32xbf16, #tpu.memory_space<vmem>>, vector<16x32xbf16>
    %c0_1 = arith.constant 0 : index
    %c0_2 = arith.constant 0 : index
    %1 = vector.load %arg3[%c0_1, %c0_2] : memref<32x32xbf16, #tpu.memory_space<vmem>>, vector<32x32xbf16>
    %cst = arith.constant dense<0.000000e+00> : vector<16x32xf32>
    %2 = tpu.matmul %0, %1, %cst {dimension_numbers = #tpu.dot_dimension_numbers<[1], [0], [0], [1], [0, 0, 1, 1], [], []>} : vector<16x32xbf16>, vector<32x32xbf16>, vector<16x32xf32> -> vector<16x32xf32>
    %c0_3 = arith.constant 0 : index
    %c0_4 = arith.constant 0 : index
    %3 = vector.load %arg4[%c0_3, %c0_4] : memref<1x32xf32, #tpu.memory_space<vmem>>, vector<1x32xf32>
    %4 = vector.broadcast %3 : vector<1x32xf32> to vector<16x32xf32>
    %5 = arith.addf %2, %4 : vector<16x32xf32>
    %c0_5 = arith.constant 0 : index
    %c0_6 = arith.constant 0 : index
    %6 = vector.load %arg2[%c0_5, %c0_6] : memref<16x32xf32, #tpu.memory_space<vmem>>, vector<16x32xf32>
    %7 = arith.addf %6, %5 : vector<16x32xf32>
    %c0_7 = arith.constant 0 : index
    %c0_8 = arith.constant 0 : index
    %8 = vector.load %arg5[%c0_7, %c0_8] : memref<16x32xf32, #tpu.memory_space<vmem>>, vector<16x32xf32>
    tpu.vector_store %arg5[%c0_7, %c0_8], %7 {strides = array<i32>} : memref<16x32xf32, #tpu.memory_space<vmem>>, vector<16x32xf32>,
    return
  }
  func.func @transform_0(%arg0: i32) -> (i32, i32) {
    %c0_i32 = arith.constant 0 : i32
    %c0_i32_0 = arith.constant 0 : i32
    return %arg0, %c0_i32 : i32, i32
  }
  func.func @transform_1(%arg0: i32) -> (i32, i32) {
    %c0_i32 = arith.constant 0 : i32
    %c0_i32_0 = arith.constant 0 : i32
    return %arg0, %c0_i32 : i32, i32
  }
  func.func @transform_2(%arg0: i32) -> (i32, i32) {
    %c0_i32 = arith.constant 0 : i32
    %c0_i32_0 = arith.constant 0 : i32
    %c0_i32_1 = arith.constant 0 : i32
    return %c0_i32, %c0_i32_0 : i32, i32
  }
  func.func @transform_3(%arg0: i32) -> (i32, i32) {
    %c0_i32 = arith.constant 0 : i32
    %c0_i32_0 = arith.constant 0 : i32
    %c0_i32_1 = arith.constant 0 : i32
    return %c0_i32, %c0_i32_0 : i32, i32
  }
  func.func @transform_4(%arg0: i32) -> (i32, i32) {
    %c0_i32 = arith.constant 0 : i32
    %c0_i32_0 = arith.constant 0 : i32
    return %arg0, %c0_i32 : i32, i32
  }
}

module attributes {stable_mosaic.version = 11 : i64} {
  func.func @_conv_module_kernel(%arg0: i32, %arg1: memref<1x8x32xf32, #tpu.memory_space<vmem>>, %arg2: memref<1x32xf32, #tpu.memory_space<vmem>>, %arg3: memref<1x32xf32, #tpu.memory_space<vmem>>, %arg4: memref<32x64xbf16, #tpu.memory_space<vmem>>, %arg5: memref<1x64xf32, #tpu.memory_space<vmem>>, %arg6: memref<7x32xf32, #tpu.memory_space<vmem>>, %arg7: memref<1x32xf32, #tpu.memory_space<vmem>>, %arg8: memref<1x32xf32, #tpu.memory_space<vmem>>, %arg9: memref<1x32xf32, #tpu.memory_space<vmem>>, %arg10: memref<1x32xf32, #tpu.memory_space<vmem>>, %arg11: memref<1x32xf32, #tpu.memory_space<vmem>>, %arg12: memref<32x32xbf16, #tpu.memory_space<vmem>>, %arg13: memref<1x32xf32, #tpu.memory_space<vmem>>, %arg14: memref<1x8x32xf32, #tpu.memory_space<vmem>>, %arg15: memref<19x32xf32, #tpu.memory_space<vmem>>) attributes {dimension_semantics = [#tpu.dimension_semantics<parallel>], iteration_bounds = array<i64: 2>, scalar_prefetch = 0 : i64, scratch_operands = 1 : i64, tpu.core_type = #tpu.core_type<tc>, window_params = [{transform_indices = @transform_0, window_bounds = array<i64: 1, 8, 32>}, {pipeline_mode = #tpu.pipeline_mode<synchronous>, transform_indices = @transform_1, window_bounds = array<i64: 1, 32>}, {pipeline_mode = #tpu.pipeline_mode<synchronous>, transform_indices = @transform_2, window_bounds = array<i64: 1, 32>}, {pipeline_mode = #tpu.pipeline_mode<synchronous>, transform_indices = @transform_3, window_bounds = array<i64: 32, 64>}, {pipeline_mode = #tpu.pipeline_mode<synchronous>, transform_indices = @transform_4, window_bounds = array<i64: 1, 64>}, {pipeline_mode = #tpu.pipeline_mode<synchronous>, transform_indices = @transform_5, window_bounds = array<i64: 7, 32>}, {pipeline_mode = #tpu.pipeline_mode<synchronous>, transform_indices = @transform_6, window_bounds = array<i64: 1, 32>}, {pipeline_mode = #tpu.pipeline_mode<synchronous>, transform_indices = @transform_7, window_bounds = array<i64: 1, 32>}, {pipeline_mode = #tpu.pipeline_mode<synchronous>, transform_indices = @transform_8, window_bounds = array<i64: 1, 32>}, {pipeline_mode = #tpu.pipeline_mode<synchronous>, transform_indices = @transform_9, window_bounds = array<i64: 1, 32>}, {pipeline_mode = #tpu.pipeline_mode<synchronous>, transform_indices = @transform_10, window_bounds = array<i64: 1, 32>}, {pipeline_mode = #tpu.pipeline_mode<synchronous>, transform_indices = @transform_11, window_bounds = array<i64: 32, 32>}, {pipeline_mode = #tpu.pipeline_mode<synchronous>, transform_indices = @transform_12, window_bounds = array<i64: 1, 32>}, {transform_indices = @transform_13, window_bounds = array<i64: 1, 8, 32>}]} {
    %c0 = arith.constant 0 : index
    %c0_0 = arith.constant 0 : index
    %c0_1 = arith.constant 0 : index
    %0 = vector.load %arg1[%c0, %c0_0, %c0_1] : memref<1x8x32xf32, #tpu.memory_space<vmem>>, vector<1x8x32xf32>
    %1 = vector.shape_cast %0 : vector<1x8x32xf32> to vector<8x32xf32>
    %c0_2 = arith.constant 0 : index
    %c0_3 = arith.constant 0 : index
    %2 = vector.load %arg2[%c0_2, %c0_3] : memref<1x32xf32, #tpu.memory_space<vmem>>, vector<1x32xf32>
    %c0_4 = arith.constant 0 : index
    %c0_5 = arith.constant 0 : index
    %3 = vector.load %arg3[%c0_4, %c0_5] : memref<1x32xf32, #tpu.memory_space<vmem>>, vector<1x32xf32>
    %cst = arith.constant dense<0.000000e+00> : vector<8xf32>
    %4 = vector.multi_reduction <add>, %1, %cst [1] : vector<8x32xf32> to vector<8xf32>
    %5 = vector.shape_cast %4 : vector<8xf32> to vector<8x1xf32>
    %cst_6 = arith.constant 3.200000e+01 : f32
    %6 = vector.broadcast %cst_6 : f32 to vector<8x1xf32>
    %7 = arith.divf %5, %6 : vector<8x1xf32>
    %8 = vector.broadcast %7 : vector<8x1xf32> to vector<8x32xf32>
    %9 = arith.subf %1, %8 : vector<8x32xf32>
    %10 = arith.mulf %9, %9 : vector<8x32xf32>
    %cst_7 = arith.constant dense<0.000000e+00> : vector<8xf32>
    %11 = vector.multi_reduction <add>, %10, %cst_7 [1] : vector<8x32xf32> to vector<8xf32>
    %12 = vector.shape_cast %11 : vector<8xf32> to vector<8x1xf32>
    %cst_8 = arith.constant 3.200000e+01 : f32
    %13 = vector.broadcast %cst_8 : f32 to vector<8x1xf32>
    %14 = arith.divf %12, %13 : vector<8x1xf32>
    %15 = vector.broadcast %7 : vector<8x1xf32> to vector<8x32xf32>
    %16 = arith.subf %1, %15 : vector<8x32xf32>
    %cst_9 = arith.constant 9.99999974E-6 : f32
    %17 = vector.broadcast %cst_9 : f32 to vector<8x1xf32>
    %18 = arith.addf %14, %17 : vector<8x1xf32>
    %19 = math.rsqrt %18 : vector<8x1xf32>
    %20 = vector.broadcast %19 : vector<8x1xf32> to vector<8x32xf32>
    %21 = arith.mulf %16, %20 : vector<8x32xf32>
    %22 = vector.broadcast %2 : vector<1x32xf32> to vector<8x32xf32>
    %23 = arith.mulf %21, %22 : vector<8x32xf32>
    %24 = vector.broadcast %3 : vector<1x32xf32> to vector<8x32xf32>
    %25 = arith.addf %23, %24 : vector<8x32xf32>
    %c0_10 = arith.constant 0 : index
    %c0_11 = arith.constant 0 : index
    %26 = vector.load %arg4[%c0_10, %c0_11] : memref<32x64xbf16, #tpu.memory_space<vmem>>, vector<32x64xbf16>
    %27 = arith.truncf %25 : vector<8x32xf32> to vector<8x32xbf16>
    %cst_12 = arith.constant dense<0.000000e+00> : vector<8x64xf32>
    %28 = tpu.matmul %27, %26, %cst_12 {dimension_numbers = #tpu.dot_dimension_numbers<[1], [0], [0], [1], [0, 0, 1, 1], [], []>} : vector<8x32xbf16>, vector<32x64xbf16>, vector<8x64xf32> -> vector<8x64xf32>
    %c0_13 = arith.constant 0 : index
    %c0_14 = arith.constant 0 : index
    %29 = vector.load %arg5[%c0_13, %c0_14] : memref<1x64xf32, #tpu.memory_space<vmem>>, vector<1x64xf32>
    %30 = vector.broadcast %29 : vector<1x64xf32> to vector<8x64xf32>
    %31 = arith.addf %28, %30 : vector<8x64xf32>
    %32 = vector.extract_strided_slice %31 {offsets = [0, 0], sizes = [8, 32], strides = [1, 1]} : vector<8x64xf32> to vector<8x32xf32>
    %33 = vector.extract_strided_slice %31 {offsets = [0, 32], sizes = [8, 32], strides = [1, 1]} : vector<8x64xf32> to vector<8x32xf32>
    %34 = arith.negf %33 : vector<8x32xf32>
    %35 = math.exp %34 : vector<8x32xf32>
    %cst_15 = arith.constant 1.000000e+00 : f32
    %36 = vector.broadcast %cst_15 : f32 to vector<8x32xf32>
    %37 = arith.addf %36, %35 : vector<8x32xf32>
    %38 = arith.divf %36, %37 : vector<8x32xf32>
    %39 = arith.mulf %32, %38 : vector<8x32xf32>
    %cst_16 = arith.constant 0.000000e+00 : f32
    %40 = vector.broadcast %cst_16 : f32 to vector<3x32xf32>
    %c5 = arith.constant 5 : index
    %c0_17 = arith.constant 0 : index
    %41 = vector.load %arg15[%c5, %c0_17] : memref<19x32xf32, #tpu.memory_space<vmem>>, vector<3x32xf32>
    tpu.vector_store %arg15[%c5, %c0_17], %40 {strides = array<i32>} : memref<19x32xf32, #tpu.memory_space<vmem>>, vector<3x32xf32>,
    %cst_18 = arith.constant 0.000000e+00 : f32
    %42 = vector.broadcast %cst_18 : f32 to vector<3x32xf32>
    %c16 = arith.constant 16 : index
    %c0_19 = arith.constant 0 : index
    %43 = vector.load %arg15[%c16, %c0_19] : memref<19x32xf32, #tpu.memory_space<vmem>>, vector<3x32xf32>
    tpu.vector_store %arg15[%c16, %c0_19], %42 {strides = array<i32>} : memref<19x32xf32, #tpu.memory_space<vmem>>, vector<3x32xf32>,
    %c8 = arith.constant 8 : index
    %c0_20 = arith.constant 0 : index
    %44 = vector.load %arg15[%c8, %c0_20] : memref<19x32xf32, #tpu.memory_space<vmem>>, vector<8x32xf32>
    tpu.vector_store %arg15[%c8, %c0_20], %39 {strides = array<i32>} : memref<19x32xf32, #tpu.memory_space<vmem>>, vector<8x32xf32>,
    %c0_21 = arith.constant 0 : index
    %c0_22 = arith.constant 0 : index
    %45 = vector.load %arg6[%c0_21, %c0_22] : memref<7x32xf32, #tpu.memory_space<vmem>>, vector<7x32xf32>
    %cst_23 = arith.constant 0.000000e+00 : f32
    %46 = vector.broadcast %cst_23 : f32 to vector<8x32xf32>
    %c5_24 = arith.constant 5 : index
    %c0_25 = arith.constant 0 : index
    %47 = vector.load %arg15[%c5_24, %c0_25] : memref<19x32xf32, #tpu.memory_space<vmem>>, vector<8x32xf32>
    %48 = vector.extract_strided_slice %45 {offsets = [0, 0], sizes = [1, 32], strides = [1, 1]} : vector<7x32xf32> to vector<1x32xf32>
    %49 = vector.shape_cast %48 : vector<1x32xf32> to vector<32xf32>
    %50 = vector.shape_cast %49 : vector<32xf32> to vector<1x32xf32>
    %51 = vector.broadcast %50 : vector<1x32xf32> to vector<8x32xf32>
    %52 = arith.mulf %47, %51 : vector<8x32xf32>
    %53 = arith.addf %46, %52 : vector<8x32xf32>
    %c6 = arith.constant 6 : index
    %c0_26 = arith.constant 0 : index
    %54 = vector.load %arg15[%c6, %c0_26] : memref<19x32xf32, #tpu.memory_space<vmem>>, vector<8x32xf32>
    %55 = vector.extract_strided_slice %45 {offsets = [1, 0], sizes = [1, 32], strides = [1, 1]} : vector<7x32xf32> to vector<1x32xf32>
    %56 = vector.shape_cast %55 : vector<1x32xf32> to vector<32xf32>
    %57 = vector.shape_cast %56 : vector<32xf32> to vector<1x32xf32>
    %58 = vector.broadcast %57 : vector<1x32xf32> to vector<8x32xf32>
    %59 = arith.mulf %54, %58 : vector<8x32xf32>
    %60 = arith.addf %53, %59 : vector<8x32xf32>
    %c7 = arith.constant 7 : index
    %c0_27 = arith.constant 0 : index
    %61 = vector.load %arg15[%c7, %c0_27] : memref<19x32xf32, #tpu.memory_space<vmem>>, vector<8x32xf32>
    %62 = vector.extract_strided_slice %45 {offsets = [2, 0], sizes = [1, 32], strides = [1, 1]} : vector<7x32xf32> to vector<1x32xf32>
    %63 = vector.shape_cast %62 : vector<1x32xf32> to vector<32xf32>
    %64 = vector.shape_cast %63 : vector<32xf32> to vector<1x32xf32>
    %65 = vector.broadcast %64 : vector<1x32xf32> to vector<8x32xf32>
    %66 = arith.mulf %61, %65 : vector<8x32xf32>
    %67 = arith.addf %60, %66 : vector<8x32xf32>
    %c8_28 = arith.constant 8 : index
    %c0_29 = arith.constant 0 : index
    %68 = vector.load %arg15[%c8_28, %c0_29] : memref<19x32xf32, #tpu.memory_space<vmem>>, vector<8x32xf32>
    %69 = vector.extract_strided_slice %45 {offsets = [3, 0], sizes = [1, 32], strides = [1, 1]} : vector<7x32xf32> to vector<1x32xf32>
    %70 = vector.shape_cast %69 : vector<1x32xf32> to vector<32xf32>
    %71 = vector.shape_cast %70 : vector<32xf32> to vector<1x32xf32>
    %72 = vector.broadcast %71 : vector<1x32xf32> to vector<8x32xf32>
    %73 = arith.mulf %68, %72 : vector<8x32xf32>
    %74 = arith.addf %67, %73 : vector<8x32xf32>
    %c9 = arith.constant 9 : index
    %c0_30 = arith.constant 0 : index
    %75 = vector.load %arg15[%c9, %c0_30] : memref<19x32xf32, #tpu.memory_space<vmem>>, vector<8x32xf32>
    %76 = vector.extract_strided_slice %45 {offsets = [4, 0], sizes = [1, 32], strides = [1, 1]} : vector<7x32xf32> to vector<1x32xf32>
    %77 = vector.shape_cast %76 : vector<1x32xf32> to vector<32xf32>
    %78 = vector.shape_cast %77 : vector<32xf32> to vector<1x32xf32>
    %79 = vector.broadcast %78 : vector<1x32xf32> to vector<8x32xf32>
    %80 = arith.mulf %75, %79 : vector<8x32xf32>
    %81 = arith.addf %74, %80 : vector<8x32xf32>
    %c10 = arith.constant 10 : index
    %c0_31 = arith.constant 0 : index
    %82 = vector.load %arg15[%c10, %c0_31] : memref<19x32xf32, #tpu.memory_space<vmem>>, vector<8x32xf32>
    %83 = vector.extract_strided_slice %45 {offsets = [5, 0], sizes = [1, 32], strides = [1, 1]} : vector<7x32xf32> to vector<1x32xf32>
    %84 = vector.shape_cast %83 : vector<1x32xf32> to vector<32xf32>
    %85 = vector.shape_cast %84 : vector<32xf32> to vector<1x32xf32>
    %86 = vector.broadcast %85 : vector<1x32xf32> to vector<8x32xf32>
    %87 = arith.mulf %82, %86 : vector<8x32xf32>
    %88 = arith.addf %81, %87 : vector<8x32xf32>
    %c11 = arith.constant 11 : index
    %c0_32 = arith.constant 0 : index
    %89 = vector.load %arg15[%c11, %c0_32] : memref<19x32xf32, #tpu.memory_space<vmem>>, vector<8x32xf32>
    %90 = vector.extract_strided_slice %45 {offsets = [6, 0], sizes = [1, 32], strides = [1, 1]} : vector<7x32xf32> to vector<1x32xf32>
    %91 = vector.shape_cast %90 : vector<1x32xf32> to vector<32xf32>
    %92 = vector.shape_cast %91 : vector<32xf32> to vector<1x32xf32>
    %93 = vector.broadcast %92 : vector<1x32xf32> to vector<8x32xf32>
    %94 = arith.mulf %89, %93 : vector<8x32xf32>
    %95 = arith.addf %88, %94 : vector<8x32xf32>
    %c0_33 = arith.constant 0 : index
    %c0_34 = arith.constant 0 : index
    %96 = vector.load %arg7[%c0_33, %c0_34] : memref<1x32xf32, #tpu.memory_space<vmem>>, vector<1x32xf32>
    %97 = vector.broadcast %96 : vector<1x32xf32> to vector<8x32xf32>
    %98 = arith.addf %95, %97 : vector<8x32xf32>
    %c0_35 = arith.constant 0 : index
    %c0_36 = arith.constant 0 : index
    %99 = vector.load %arg10[%c0_35, %c0_36] : memref<1x32xf32, #tpu.memory_space<vmem>>, vector<1x32xf32>
    %100 = vector.broadcast %99 : vector<1x32xf32> to vector<8x32xf32>
    %101 = arith.subf %98, %100 : vector<8x32xf32>
    %c0_37 = arith.constant 0 : index
    %c0_38 = arith.constant 0 : index
    %102 = vector.load %arg11[%c0_37, %c0_38] : memref<1x32xf32, #tpu.memory_space<vmem>>, vector<1x32xf32>
    %cst_39 = arith.constant 9.99999974E-6 : f32
    %103 = vector.broadcast %cst_39 : f32 to vector<1x32xf32>
    %104 = arith.addf %102, %103 : vector<1x32xf32>
    %105 = math.rsqrt %104 : vector<1x32xf32>
    %106 = vector.broadcast %105 : vector<1x32xf32> to vector<8x32xf32>
    %107 = arith.mulf %101, %106 : vector<8x32xf32>
    %c0_40 = arith.constant 0 : index
    %c0_41 = arith.constant 0 : index
    %108 = vector.load %arg8[%c0_40, %c0_41] : memref<1x32xf32, #tpu.memory_space<vmem>>, vector<1x32xf32>
    %109 = vector.broadcast %108 : vector<1x32xf32> to vector<8x32xf32>
    %110 = arith.mulf %107, %109 : vector<8x32xf32>
    %c0_42 = arith.constant 0 : index
    %c0_43 = arith.constant 0 : index
    %111 = vector.load %arg9[%c0_42, %c0_43] : memref<1x32xf32, #tpu.memory_space<vmem>>, vector<1x32xf32>
    %112 = vector.broadcast %111 : vector<1x32xf32> to vector<8x32xf32>
    %113 = arith.addf %110, %112 : vector<8x32xf32>
    %114 = arith.negf %113 : vector<8x32xf32>
    %115 = math.exp %114 : vector<8x32xf32>
    %cst_44 = arith.constant 1.000000e+00 : f32
    %116 = vector.broadcast %cst_44 : f32 to vector<8x32xf32>
    %117 = arith.addf %116, %115 : vector<8x32xf32>
    %118 = arith.divf %116, %117 : vector<8x32xf32>
    %119 = arith.mulf %113, %118 : vector<8x32xf32>
    %c0_45 = arith.constant 0 : index
    %c0_46 = arith.constant 0 : index
    %120 = vector.load %arg12[%c0_45, %c0_46] : memref<32x32xbf16, #tpu.memory_space<vmem>>, vector<32x32xbf16>
    %121 = arith.truncf %119 : vector<8x32xf32> to vector<8x32xbf16>
    %cst_47 = arith.constant dense<0.000000e+00> : vector<8x32xf32>
    %122 = tpu.matmul %121, %120, %cst_47 {dimension_numbers = #tpu.dot_dimension_numbers<[1], [0], [0], [1], [0, 0, 1, 1], [], []>} : vector<8x32xbf16>, vector<32x32xbf16>, vector<8x32xf32> -> vector<8x32xf32>
    %c0_48 = arith.constant 0 : index
    %c0_49 = arith.constant 0 : index
    %123 = vector.load %arg13[%c0_48, %c0_49] : memref<1x32xf32, #tpu.memory_space<vmem>>, vector<1x32xf32>
    %124 = vector.broadcast %123 : vector<1x32xf32> to vector<8x32xf32>
    %125 = arith.addf %122, %124 : vector<8x32xf32>
    %126 = arith.addf %1, %125 : vector<8x32xf32>
    %c0_50 = arith.constant 0 : index
    %c0_51 = arith.constant 0 : index
    %c0_52 = arith.constant 0 : index
    %127 = vector.load %arg14[%c0_50, %c0_51, %c0_52] : memref<1x8x32xf32, #tpu.memory_space<vmem>>, vector<1x8x32xf32>
    %128 = vector.shape_cast %127 : vector<1x8x32xf32> to vector<8x32xf32>
    %129 = vector.shape_cast %126 : vector<8x32xf32> to vector<1x8x32xf32>
    tpu.vector_store %arg14[%c0_50, %c0_51, %c0_52], %129 {strides = array<i32>} : memref<1x8x32xf32, #tpu.memory_space<vmem>>, vector<1x8x32xf32>,
    return
  }
  func.func @transform_0(%arg0: i32) -> (i32, i32, i32) {
    %c0_i32 = arith.constant 0 : i32
    %c0_i32_0 = arith.constant 0 : i32
    %c0_i32_1 = arith.constant 0 : i32
    return %arg0, %c0_i32, %c0_i32_0 : i32, i32, i32
  }
  func.func @transform_1(%arg0: i32) -> (i32, i32) {
    %c0_i32 = arith.constant 0 : i32
    %c0_i32_0 = arith.constant 0 : i32
    %c0_i32_1 = arith.constant 0 : i32
    return %c0_i32, %c0_i32_0 : i32, i32
  }
  func.func @transform_2(%arg0: i32) -> (i32, i32) {
    %c0_i32 = arith.constant 0 : i32
    %c0_i32_0 = arith.constant 0 : i32
    %c0_i32_1 = arith.constant 0 : i32
    return %c0_i32, %c0_i32_0 : i32, i32
  }
  func.func @transform_3(%arg0: i32) -> (i32, i32) {
    %c0_i32 = arith.constant 0 : i32
    %c0_i32_0 = arith.constant 0 : i32
    %c0_i32_1 = arith.constant 0 : i32
    return %c0_i32, %c0_i32_0 : i32, i32
  }
  func.func @transform_4(%arg0: i32) -> (i32, i32) {
    %c0_i32 = arith.constant 0 : i32
    %c0_i32_0 = arith.constant 0 : i32
    %c0_i32_1 = arith.constant 0 : i32
    return %c0_i32, %c0_i32_0 : i32, i32
  }
  func.func @transform_5(%arg0: i32) -> (i32, i32) {
    %c0_i32 = arith.constant 0 : i32
    %c0_i32_0 = arith.constant 0 : i32
    %c0_i32_1 = arith.constant 0 : i32
    return %c0_i32, %c0_i32_0 : i32, i32
  }
  func.func @transform_6(%arg0: i32) -> (i32, i32) {
    %c0_i32 = arith.constant 0 : i32
    %c0_i32_0 = arith.constant 0 : i32
    %c0_i32_1 = arith.constant 0 : i32
    return %c0_i32, %c0_i32_0 : i32, i32
  }
  func.func @transform_7(%arg0: i32) -> (i32, i32) {
    %c0_i32 = arith.constant 0 : i32
    %c0_i32_0 = arith.constant 0 : i32
    %c0_i32_1 = arith.constant 0 : i32
    return %c0_i32, %c0_i32_0 : i32, i32
  }
  func.func @transform_8(%arg0: i32) -> (i32, i32) {
    %c0_i32 = arith.constant 0 : i32
    %c0_i32_0 = arith.constant 0 : i32
    %c0_i32_1 = arith.constant 0 : i32
    return %c0_i32, %c0_i32_0 : i32, i32
  }
  func.func @transform_9(%arg0: i32) -> (i32, i32) {
    %c0_i32 = arith.constant 0 : i32
    %c0_i32_0 = arith.constant 0 : i32
    %c0_i32_1 = arith.constant 0 : i32
    return %c0_i32, %c0_i32_0 : i32, i32
  }
  func.func @transform_10(%arg0: i32) -> (i32, i32) {
    %c0_i32 = arith.constant 0 : i32
    %c0_i32_0 = arith.constant 0 : i32
    %c0_i32_1 = arith.constant 0 : i32
    return %c0_i32, %c0_i32_0 : i32, i32
  }
  func.func @transform_11(%arg0: i32) -> (i32, i32) {
    %c0_i32 = arith.constant 0 : i32
    %c0_i32_0 = arith.constant 0 : i32
    %c0_i32_1 = arith.constant 0 : i32
    return %c0_i32, %c0_i32_0 : i32, i32
  }
  func.func @transform_12(%arg0: i32) -> (i32, i32) {
    %c0_i32 = arith.constant 0 : i32
    %c0_i32_0 = arith.constant 0 : i32
    %c0_i32_1 = arith.constant 0 : i32
    return %c0_i32, %c0_i32_0 : i32, i32
  }
  func.func @transform_13(%arg0: i32) -> (i32, i32, i32) {
    %c0_i32 = arith.constant 0 : i32
    %c0_i32_0 = arith.constant 0 : i32
    %c0_i32_1 = arith.constant 0 : i32
    return %arg0, %c0_i32, %c0_i32_0 : i32, i32, i32
  }
}

module attributes {stable_mosaic.version = 11 : i64} {
  func.func @_ffn_kernel(%arg0: i32, %arg1: memref<16x32xf32, #tpu.memory_space<vmem>>, %arg2: memref<1x32xf32, #tpu.memory_space<vmem>>, %arg3: memref<1x32xf32, #tpu.memory_space<vmem>>, %arg4: memref<32x64xbf16, #tpu.memory_space<vmem>>, %arg5: memref<1x64xf32, #tpu.memory_space<vmem>>, %arg6: memref<64x32xbf16, #tpu.memory_space<vmem>>, %arg7: memref<1x32xf32, #tpu.memory_space<vmem>>, %arg8: memref<1x32xf32, #tpu.memory_space<vmem>>, %arg9: memref<1x32xf32, #tpu.memory_space<vmem>>, %arg10: memref<16x32xf32, #tpu.memory_space<vmem>>) attributes {dimension_semantics = [#tpu.dimension_semantics<parallel>], iteration_bounds = array<i64: 1>, scalar_prefetch = 0 : i64, scratch_operands = 0 : i64, tpu.core_type = #tpu.core_type<tc>, window_params = [{transform_indices = @transform_0, window_bounds = array<i64: 16, 32>}, {pipeline_mode = #tpu.pipeline_mode<synchronous>, transform_indices = @transform_1, window_bounds = array<i64: 1, 32>}, {pipeline_mode = #tpu.pipeline_mode<synchronous>, transform_indices = @transform_2, window_bounds = array<i64: 1, 32>}, {pipeline_mode = #tpu.pipeline_mode<synchronous>, transform_indices = @transform_3, window_bounds = array<i64: 32, 64>}, {pipeline_mode = #tpu.pipeline_mode<synchronous>, transform_indices = @transform_4, window_bounds = array<i64: 1, 64>}, {pipeline_mode = #tpu.pipeline_mode<synchronous>, transform_indices = @transform_5, window_bounds = array<i64: 64, 32>}, {pipeline_mode = #tpu.pipeline_mode<synchronous>, transform_indices = @transform_6, window_bounds = array<i64: 1, 32>}, {pipeline_mode = #tpu.pipeline_mode<synchronous>, transform_indices = @transform_7, window_bounds = array<i64: 1, 32>}, {pipeline_mode = #tpu.pipeline_mode<synchronous>, transform_indices = @transform_8, window_bounds = array<i64: 1, 32>}, {transform_indices = @transform_9, window_bounds = array<i64: 16, 32>}]} {
    %c0 = arith.constant 0 : index
    %c0_0 = arith.constant 0 : index
    %0 = vector.load %arg1[%c0, %c0_0] : memref<16x32xf32, #tpu.memory_space<vmem>>, vector<16x32xf32>
    %c0_1 = arith.constant 0 : index
    %c0_2 = arith.constant 0 : index
    %1 = vector.load %arg2[%c0_1, %c0_2] : memref<1x32xf32, #tpu.memory_space<vmem>>, vector<1x32xf32>
    %c0_3 = arith.constant 0 : index
    %c0_4 = arith.constant 0 : index
    %2 = vector.load %arg3[%c0_3, %c0_4] : memref<1x32xf32, #tpu.memory_space<vmem>>, vector<1x32xf32>
    %cst = arith.constant dense<0.000000e+00> : vector<16xf32>
    %3 = vector.multi_reduction <add>, %0, %cst [1] : vector<16x32xf32> to vector<16xf32>
    %4 = vector.shape_cast %3 : vector<16xf32> to vector<16x1xf32>
    %cst_5 = arith.constant 3.200000e+01 : f32
    %5 = vector.broadcast %cst_5 : f32 to vector<16x1xf32>
    %6 = arith.divf %4, %5 : vector<16x1xf32>
    %7 = vector.broadcast %6 : vector<16x1xf32> to vector<16x32xf32>
    %8 = arith.subf %0, %7 : vector<16x32xf32>
    %9 = arith.mulf %8, %8 : vector<16x32xf32>
    %cst_6 = arith.constant dense<0.000000e+00> : vector<16xf32>
    %10 = vector.multi_reduction <add>, %9, %cst_6 [1] : vector<16x32xf32> to vector<16xf32>
    %11 = vector.shape_cast %10 : vector<16xf32> to vector<16x1xf32>
    %cst_7 = arith.constant 3.200000e+01 : f32
    %12 = vector.broadcast %cst_7 : f32 to vector<16x1xf32>
    %13 = arith.divf %11, %12 : vector<16x1xf32>
    %14 = vector.broadcast %6 : vector<16x1xf32> to vector<16x32xf32>
    %15 = arith.subf %0, %14 : vector<16x32xf32>
    %cst_8 = arith.constant 9.99999974E-6 : f32
    %16 = vector.broadcast %cst_8 : f32 to vector<16x1xf32>
    %17 = arith.addf %13, %16 : vector<16x1xf32>
    %18 = math.rsqrt %17 : vector<16x1xf32>
    %19 = vector.broadcast %18 : vector<16x1xf32> to vector<16x32xf32>
    %20 = arith.mulf %15, %19 : vector<16x32xf32>
    %21 = vector.broadcast %1 : vector<1x32xf32> to vector<16x32xf32>
    %22 = arith.mulf %20, %21 : vector<16x32xf32>
    %23 = vector.broadcast %2 : vector<1x32xf32> to vector<16x32xf32>
    %24 = arith.addf %22, %23 : vector<16x32xf32>
    %c0_9 = arith.constant 0 : index
    %c0_10 = arith.constant 0 : index
    %25 = vector.load %arg4[%c0_9, %c0_10] : memref<32x64xbf16, #tpu.memory_space<vmem>>, vector<32x64xbf16>
    %26 = arith.truncf %24 : vector<16x32xf32> to vector<16x32xbf16>
    %cst_11 = arith.constant dense<0.000000e+00> : vector<16x64xf32>
    %27 = tpu.matmul %26, %25, %cst_11 {dimension_numbers = #tpu.dot_dimension_numbers<[1], [0], [0], [1], [0, 0, 1, 1], [], []>} : vector<16x32xbf16>, vector<32x64xbf16>, vector<16x64xf32> -> vector<16x64xf32>
    %c0_12 = arith.constant 0 : index
    %c0_13 = arith.constant 0 : index
    %28 = vector.load %arg5[%c0_12, %c0_13] : memref<1x64xf32, #tpu.memory_space<vmem>>, vector<1x64xf32>
    %29 = vector.broadcast %28 : vector<1x64xf32> to vector<16x64xf32>
    %30 = arith.addf %27, %29 : vector<16x64xf32>
    %31 = arith.negf %30 : vector<16x64xf32>
    %32 = math.exp %31 : vector<16x64xf32>
    %cst_14 = arith.constant 1.000000e+00 : f32
    %33 = vector.broadcast %cst_14 : f32 to vector<16x64xf32>
    %34 = arith.addf %33, %32 : vector<16x64xf32>
    %35 = arith.divf %33, %34 : vector<16x64xf32>
    %36 = arith.mulf %30, %35 : vector<16x64xf32>
    %c0_15 = arith.constant 0 : index
    %c0_16 = arith.constant 0 : index
    %37 = vector.load %arg6[%c0_15, %c0_16] : memref<64x32xbf16, #tpu.memory_space<vmem>>, vector<64x32xbf16>
    %38 = arith.truncf %36 : vector<16x64xf32> to vector<16x64xbf16>
    %cst_17 = arith.constant dense<0.000000e+00> : vector<16x32xf32>
    %39 = tpu.matmul %38, %37, %cst_17 {dimension_numbers = #tpu.dot_dimension_numbers<[1], [0], [0], [1], [0, 0, 1, 1], [], []>} : vector<16x64xbf16>, vector<64x32xbf16>, vector<16x32xf32> -> vector<16x32xf32>
    %c0_18 = arith.constant 0 : index
    %c0_19 = arith.constant 0 : index
    %40 = vector.load %arg7[%c0_18, %c0_19] : memref<1x32xf32, #tpu.memory_space<vmem>>, vector<1x32xf32>
    %41 = vector.broadcast %40 : vector<1x32xf32> to vector<16x32xf32>
    %42 = arith.addf %39, %41 : vector<16x32xf32>
    %cst_20 = arith.constant 5.000000e-01 : f32
    %43 = vector.broadcast %cst_20 : f32 to vector<16x32xf32>
    %44 = arith.mulf %43, %42 : vector<16x32xf32>
    %45 = arith.addf %0, %44 : vector<16x32xf32>
    %c0_21 = arith.constant 0 : index
    %c0_22 = arith.constant 0 : index
    %46 = vector.load %arg8[%c0_21, %c0_22] : memref<1x32xf32, #tpu.memory_space<vmem>>, vector<1x32xf32>
    %c0_23 = arith.constant 0 : index
    %c0_24 = arith.constant 0 : index
    %47 = vector.load %arg9[%c0_23, %c0_24] : memref<1x32xf32, #tpu.memory_space<vmem>>, vector<1x32xf32>
    %cst_25 = arith.constant dense<0.000000e+00> : vector<16xf32>
    %48 = vector.multi_reduction <add>, %45, %cst_25 [1] : vector<16x32xf32> to vector<16xf32>
    %49 = vector.shape_cast %48 : vector<16xf32> to vector<16x1xf32>
    %cst_26 = arith.constant 3.200000e+01 : f32
    %50 = vector.broadcast %cst_26 : f32 to vector<16x1xf32>
    %51 = arith.divf %49, %50 : vector<16x1xf32>
    %52 = vector.broadcast %51 : vector<16x1xf32> to vector<16x32xf32>
    %53 = arith.subf %45, %52 : vector<16x32xf32>
    %54 = arith.mulf %53, %53 : vector<16x32xf32>
    %cst_27 = arith.constant dense<0.000000e+00> : vector<16xf32>
    %55 = vector.multi_reduction <add>, %54, %cst_27 [1] : vector<16x32xf32> to vector<16xf32>
    %56 = vector.shape_cast %55 : vector<16xf32> to vector<16x1xf32>
    %cst_28 = arith.constant 3.200000e+01 : f32
    %57 = vector.broadcast %cst_28 : f32 to vector<16x1xf32>
    %58 = arith.divf %56, %57 : vector<16x1xf32>
    %59 = vector.broadcast %51 : vector<16x1xf32> to vector<16x32xf32>
    %60 = arith.subf %45, %59 : vector<16x32xf32>
    %cst_29 = arith.constant 9.99999974E-6 : f32
    %61 = vector.broadcast %cst_29 : f32 to vector<16x1xf32>
    %62 = arith.addf %58, %61 : vector<16x1xf32>
    %63 = math.rsqrt %62 : vector<16x1xf32>
    %64 = vector.broadcast %63 : vector<16x1xf32> to vector<16x32xf32>
    %65 = arith.mulf %60, %64 : vector<16x32xf32>
    %66 = vector.broadcast %46 : vector<1x32xf32> to vector<16x32xf32>
    %67 = arith.mulf %65, %66 : vector<16x32xf32>
    %68 = vector.broadcast %47 : vector<1x32xf32> to vector<16x32xf32>
    %69 = arith.addf %67, %68 : vector<16x32xf32>
    %c0_30 = arith.constant 0 : index
    %c0_31 = arith.constant 0 : index
    %70 = vector.load %arg10[%c0_30, %c0_31] : memref<16x32xf32, #tpu.memory_space<vmem>>, vector<16x32xf32>
    tpu.vector_store %arg10[%c0_30, %c0_31], %69 {strides = array<i32>} : memref<16x32xf32, #tpu.memory_space<vmem>>, vector<16x32xf32>,
    return
  }
  func.func @transform_0(%arg0: i32) -> (i32, i32) {
    %c0_i32 = arith.constant 0 : i32
    %c0_i32_0 = arith.constant 0 : i32
    return %arg0, %c0_i32 : i32, i32
  }
  func.func @transform_1(%arg0: i32) -> (i32, i32) {
    %c0_i32 = arith.constant 0 : i32
    %c0_i32_0 = arith.constant 0 : i32
    %c0_i32_1 = arith.constant 0 : i32
    return %c0_i32, %c0_i32_0 : i32, i32
  }
  func.func @transform_2(%arg0: i32) -> (i32, i32) {
    %c0_i32 = arith.constant 0 : i32
    %c0_i32_0 = arith.constant 0 : i32
    %c0_i32_1 = arith.constant 0 : i32
    return %c0_i32, %c0_i32_0 : i32, i32
  }
  func.func @transform_3(%arg0: i32) -> (i32, i32) {
    %c0_i32 = arith.constant 0 : i32
    %c0_i32_0 = arith.constant 0 : i32
    %c0_i32_1 = arith.constant 0 : i32
    return %c0_i32, %c0_i32_0 : i32, i32
  }
  func.func @transform_4(%arg0: i32) -> (i32, i32) {
    %c0_i32 = arith.constant 0 : i32
    %c0_i32_0 = arith.constant 0 : i32
    %c0_i32_1 = arith.constant 0 : i32
    return %c0_i32, %c0_i32_0 : i32, i32
  }
  func.func @transform_5(%arg0: i32) -> (i32, i32) {
    %c0_i32 = arith.constant 0 : i32
    %c0_i32_0 = arith.constant 0 : i32
    %c0_i32_1 = arith.constant 0 : i32
    return %c0_i32, %c0_i32_0 : i32, i32
  }
  func.func @transform_6(%arg0: i32) -> (i32, i32) {
    %c0_i32 = arith.constant 0 : i32
    %c0_i32_0 = arith.constant 0 : i32
    %c0_i32_1 = arith.constant 0 : i32
    return %c0_i32, %c0_i32_0 : i32, i32
  }
  func.func @transform_7(%arg0: i32) -> (i32, i32) {
    %c0_i32 = arith.constant 0 : i32
    %c0_i32_0 = arith.constant 0 : i32
    %c0_i32_1 = arith.constant 0 : i32
    return %c0_i32, %c0_i32_0 : i32, i32
  }
  func.func @transform_8(%arg0: i32) -> (i32, i32) {
    %c0_i32 = arith.constant 0 : i32
    %c0_i32_0 = arith.constant 0 : i32
    %c0_i32_1 = arith.constant 0 : i32
    return %c0_i32, %c0_i32_0 : i32, i32
  }
  func.func @transform_9(%arg0: i32) -> (i32, i32) {
    %c0_i32 = arith.constant 0 : i32
    %c0_i32_0 = arith.constant 0 : i32
    return %arg0, %c0_i32 : i32, i32
  }
}

module attributes {stable_mosaic.version = 11 : i64} {
  func.func @_linear_kernel(%arg0: i32, %arg1: i32, %arg2: memref<16x32xf32, #tpu.memory_space<vmem>>, %arg3: memref<32x128xbf16, #tpu.memory_space<vmem>>, %arg4: memref<1x128xf32, #tpu.memory_space<vmem>>, %arg5: memref<16x128xf32, #tpu.memory_space<vmem>>) attributes {dimension_semantics = [#tpu.dimension_semantics<parallel>, #tpu.dimension_semantics<parallel>], iteration_bounds = array<i64: 1, 1>, scalar_prefetch = 0 : i64, scratch_operands = 0 : i64, tpu.core_type = #tpu.core_type<tc>, window_params = [{transform_indices = @transform_0, window_bounds = array<i64: 16, 32>}, {transform_indices = @transform_1, window_bounds = array<i64: 32, 128>}, {transform_indices = @transform_2, window_bounds = array<i64: 1, 128>}, {transform_indices = @transform_3, window_bounds = array<i64: 16, 128>}]} {
    %c0 = arith.constant 0 : index
    %c0_0 = arith.constant 0 : index
    %0 = vector.load %arg2[%c0, %c0_0] : memref<16x32xf32, #tpu.memory_space<vmem>>, vector<16x32xf32>
    %c0_1 = arith.constant 0 : index
    %c0_2 = arith.constant 0 : index
    %1 = vector.load %arg3[%c0_1, %c0_2] : memref<32x128xbf16, #tpu.memory_space<vmem>>, vector<32x128xbf16>
    %2 = arith.truncf %0 : vector<16x32xf32> to vector<16x32xbf16>
    %cst = arith.constant dense<0.000000e+00> : vector<16x128xf32>
    %3 = tpu.matmul %2, %1, %cst {dimension_numbers = #tpu.dot_dimension_numbers<[1], [0], [0], [1], [0, 0, 1, 1], [], []>} : vector<16x32xbf16>, vector<32x128xbf16>, vector<16x128xf32> -> vector<16x128xf32>
    %c0_3 = arith.constant 0 : index
    %c0_4 = arith.constant 0 : index
    %4 = vector.load %arg4[%c0_3, %c0_4] : memref<1x128xf32, #tpu.memory_space<vmem>>, vector<1x128xf32>
    %5 = vector.broadcast %4 : vector<1x128xf32> to vector<16x128xf32>
    %6 = arith.addf %3, %5 : vector<16x128xf32>
    %c0_5 = arith.constant 0 : index
    %c0_6 = arith.constant 0 : index
    %7 = vector.load %arg5[%c0_5, %c0_6] : memref<16x128xf32, #tpu.memory_space<vmem>>, vector<16x128xf32>
    tpu.vector_store %arg5[%c0_5, %c0_6], %6 {strides = array<i32>} : memref<16x128xf32, #tpu.memory_space<vmem>>, vector<16x128xf32>,
    return
  }
  func.func @transform_0(%arg0: i32, %arg1: i32) -> (i32, i32) {
    %c0_i32 = arith.constant 0 : i32
    %c0_i32_0 = arith.constant 0 : i32
    return %arg0, %c0_i32 : i32, i32
  }
  func.func @transform_1(%arg0: i32, %arg1: i32) -> (i32, i32) {
    %c0_i32 = arith.constant 0 : i32
    %c0_i32_0 = arith.constant 0 : i32
    return %c0_i32, %arg1 : i32, i32
  }
  func.func @transform_2(%arg0: i32, %arg1: i32) -> (i32, i32) {
    %c0_i32 = arith.constant 0 : i32
    %c0_i32_0 = arith.constant 0 : i32
    return %c0_i32, %arg1 : i32, i32
  }
  func.func @transform_3(%arg0: i32, %arg1: i32) -> (i32, i32) {
    %c0_i32 = arith.constant 0 : i32
    return %arg0, %arg1 : i32, i32
  }
}

module attributes {stable_mosaic.version = 11 : i64} {
  func.func @_lstm_rec_kernel(%arg0: i32, %arg1: memref<8x2x128xf32, #tpu.memory_space<vmem>>, %arg2: memref<32x128xbf16, #tpu.memory_space<vmem>>, %arg3: memref<8x2x32xf32, #tpu.memory_space<vmem>>, %arg4: memref<2x32xf32, #tpu.memory_space<vmem>>, %arg5: memref<2x32xf32, #tpu.memory_space<vmem>>) attributes {dimension_semantics = [#tpu.dimension_semantics<arbitrary>], iteration_bounds = array<i64: 1>, scalar_prefetch = 0 : i64, scratch_operands = 2 : i64, tpu.core_type = #tpu.core_type<tc>, window_params = [{transform_indices = @transform_0, window_bounds = array<i64: 8, 2, 128>}, {pipeline_mode = #tpu.pipeline_mode<synchronous>, transform_indices = @transform_1, window_bounds = array<i64: 32, 128>}, {transform_indices = @transform_2, window_bounds = array<i64: 8, 2, 32>}]} {
    %c0_i32 = arith.constant 0 : i32
    %0 = arith.cmpi eq, %arg0, %c0_i32 : i32
    %1 = arith.extui %0 : i1 to i32
    %c0_i32_0 = arith.constant 0 : i32
    %2 = arith.cmpi ne, %1, %c0_i32_0 : i32
    scf.if %2 {
      %cst = arith.constant 0.000000e+00 : f32
      %5 = vector.broadcast %cst : f32 to vector<2x32xf32>
      %c0_4 = arith.constant 0 : index
      %c0_5 = arith.constant 0 : index
      %6 = vector.load %arg4[%c0_4, %c0_5] : memref<2x32xf32, #tpu.memory_space<vmem>>, vector<2x32xf32>
      tpu.vector_store %arg4[%c0_4, %c0_5], %5 {strides = array<i32>} : memref<2x32xf32, #tpu.memory_space<vmem>>, vector<2x32xf32>,
      %cst_6 = arith.constant 0.000000e+00 : f32
      %7 = vector.broadcast %cst_6 : f32 to vector<2x32xf32>
      %c0_7 = arith.constant 0 : index
      %c0_8 = arith.constant 0 : index
      %8 = vector.load %arg5[%c0_7, %c0_8] : memref<2x32xf32, #tpu.memory_space<vmem>>, vector<2x32xf32>
      tpu.vector_store %arg5[%c0_7, %c0_8], %7 {strides = array<i32>} : memref<2x32xf32, #tpu.memory_space<vmem>>, vector<2x32xf32>,
    } else {
    }
    %c0 = arith.constant 0 : index
    %c0_1 = arith.constant 0 : index
    %3 = vector.load %arg2[%c0, %c0_1] : memref<32x128xbf16, #tpu.memory_space<vmem>>, vector<32x128xbf16>
    %c0_i32_2 = arith.constant 0 : i32
    %c8_i32 = arith.constant 8 : i32
    %4 = arith.addi %c0_i32_2, %c8_i32 : i32
    %c1_i32 = arith.constant 1 : i32
    scf.for %arg6 = %c0_i32_2 to %4 step %c1_i32  : i32 {
      %c1_i32_4 = arith.constant 1 : i32
      %5 = arith.muli %arg6, %c1_i32_4 : i32
      %c0_i32_5 = arith.constant 0 : i32
      %6 = arith.addi %c0_i32_5, %5 : i32
      %7 = arith.index_cast %6 : i32 to index
      %c0_6 = arith.constant 0 : index
      %c0_7 = arith.constant 0 : index
      %8 = vector.load %arg1[%7, %c0_6, %c0_7] : memref<8x2x128xf32, #tpu.memory_space<vmem>>, vector<1x2x128xf32>
      %9 = vector.shape_cast %8 : vector<1x2x128xf32> to vector<2x128xf32>
      %c0_8 = arith.constant 0 : index
      %c0_9 = arith.constant 0 : index
      %10 = vector.load %arg4[%c0_8, %c0_9] : memref<2x32xf32, #tpu.memory_space<vmem>>, vector<2x32xf32>
      %11 = arith.truncf %10 : vector<2x32xf32> to vector<2x32xbf16>
      %cst = arith.constant dense<0.000000e+00> : vector<2x128xf32>
      %12 = tpu.matmul %11, %3, %cst {dimension_numbers = #tpu.dot_dimension_numbers<[1], [0], [0], [1], [0, 0, 1, 1], [], []>} : vector<2x32xbf16>, vector<32x128xbf16>, vector<2x128xf32> -> vector<2x128xf32>
      %13 = arith.addf %9, %12 : vector<2x128xf32>
      %14 = vector.extract_strided_slice %13 {offsets = [0, 0], sizes = [2, 32], strides = [1, 1]} : vector<2x128xf32> to vector<2x32xf32>
      %15 = arith.negf %14 : vector<2x32xf32>
      %16 = math.exp %15 : vector<2x32xf32>
      %cst_10 = arith.constant 1.000000e+00 : f32
      %17 = vector.broadcast %cst_10 : f32 to vector<2x32xf32>
      %18 = arith.addf %17, %16 : vector<2x32xf32>
      %19 = arith.divf %17, %18 : vector<2x32xf32>
      %20 = vector.extract_strided_slice %13 {offsets = [0, 32], sizes = [2, 32], strides = [1, 1]} : vector<2x128xf32> to vector<2x32xf32>
      %21 = arith.negf %20 : vector<2x32xf32>
      %22 = math.exp %21 : vector<2x32xf32>
      %cst_11 = arith.constant 1.000000e+00 : f32
      %23 = vector.broadcast %cst_11 : f32 to vector<2x32xf32>
      %24 = arith.addf %23, %22 : vector<2x32xf32>
      %25 = arith.divf %23, %24 : vector<2x32xf32>
      %26 = vector.extract_strided_slice %13 {offsets = [0, 64], sizes = [2, 32], strides = [1, 1]} : vector<2x128xf32> to vector<2x32xf32>
      %27 = math.tanh %26 : vector<2x32xf32>
      %28 = vector.extract_strided_slice %13 {offsets = [0, 96], sizes = [2, 32], strides = [1, 1]} : vector<2x128xf32> to vector<2x32xf32>
      %29 = arith.negf %28 : vector<2x32xf32>
      %30 = math.exp %29 : vector<2x32xf32>
      %cst_12 = arith.constant 1.000000e+00 : f32
      %31 = vector.broadcast %cst_12 : f32 to vector<2x32xf32>
      %32 = arith.addf %31, %30 : vector<2x32xf32>
      %33 = arith.divf %31, %32 : vector<2x32xf32>
      %c0_13 = arith.constant 0 : index
      %c0_14 = arith.constant 0 : index
      %34 = vector.load %arg5[%c0_13, %c0_14] : memref<2x32xf32, #tpu.memory_space<vmem>>, vector<2x32xf32>
      %35 = arith.mulf %25, %34 : vector<2x32xf32>
      %36 = arith.mulf %19, %27 : vector<2x32xf32>
      %37 = arith.addf %35, %36 : vector<2x32xf32>
      %38 = math.tanh %37 : vector<2x32xf32>
      %39 = arith.mulf %33, %38 : vector<2x32xf32>
      %c0_15 = arith.constant 0 : index
      %c0_16 = arith.constant 0 : index
      %40 = vector.load %arg5[%c0_15, %c0_16] : memref<2x32xf32, #tpu.memory_space<vmem>>, vector<2x32xf32>
      tpu.vector_store %arg5[%c0_15, %c0_16], %37 {strides = array<i32>} : memref<2x32xf32, #tpu.memory_space<vmem>>, vector<2x32xf32>,
      %c0_17 = arith.constant 0 : index
      %c0_18 = arith.constant 0 : index
      %41 = vector.load %arg4[%c0_17, %c0_18] : memref<2x32xf32, #tpu.memory_space<vmem>>, vector<2x32xf32>
      tpu.vector_store %arg4[%c0_17, %c0_18], %39 {strides = array<i32>} : memref<2x32xf32, #tpu.memory_space<vmem>>, vector<2x32xf32>,
      %42 = arith.index_cast %6 : i32 to index
      %c0_19 = arith.constant 0 : index
      %c0_20 = arith.constant 0 : index
      %43 = vector.load %arg3[%42, %c0_19, %c0_20] : memref<8x2x32xf32, #tpu.memory_space<vmem>>, vector<1x2x32xf32>
      %44 = vector.shape_cast %43 : vector<1x2x32xf32> to vector<2x32xf32>
      %45 = vector.shape_cast %39 : vector<2x32xf32> to vector<1x2x32xf32>
      tpu.vector_store %arg3[%42, %c0_19, %c0_20], %45 {strides = array<i32>} : memref<8x2x32xf32, #tpu.memory_space<vmem>>, vector<1x2x32xf32>,
    }
    %c8_i32_3 = arith.constant 8 : i32
    return
  }
  func.func @transform_0(%arg0: i32) -> (i32, i32, i32) {
    %c0_i32 = arith.constant 0 : i32
    %c0_i32_0 = arith.constant 0 : i32
    %c0_i32_1 = arith.constant 0 : i32
    return %arg0, %c0_i32, %c0_i32_0 : i32, i32, i32
  }
  func.func @transform_1(%arg0: i32) -> (i32, i32) {
    %c0_i32 = arith.constant 0 : i32
    %c0_i32_0 = arith.constant 0 : i32
    %c0_i32_1 = arith.constant 0 : i32
    return %c0_i32, %c0_i32_0 : i32, i32
  }
  func.func @transform_2(%arg0: i32) -> (i32, i32, i32) {
    %c0_i32 = arith.constant 0 : i32
    %c0_i32_0 = arith.constant 0 : i32
    %c0_i32_1 = arith.constant 0 : i32
    return %arg0, %c0_i32, %c0_i32_0 : i32, i32, i32
  }
}

</mosaic_0001>

<bundles_post_ra>
// kernel: conformer_forward.18
= control target key start
LH: loop header
LB: loop body
LE: loop exit
PB: predicated region body
PF: predicated region fallthrough
CT: control target
= control target key end

     0   :  { %vm117_vm0 = vcmask 1043456   ;;  %vm118_vm1 = vcmask 1044480   ;;  %v297_v2 = vmov 65535   ;;  %vm71_vm2 = vcmask 72704   ;;  %s554_s1 = inlined_call_operand.vmem [shape: bf16[9,128], index: 1, kind: input, shape index: {}]   ;;  %s555_s0 = inlined_call_operand.vmem [shape: f32[238,9], index: 0, kind: input, shape index: {}]   ;;  %s556_s2 = inlined_call_operand.vmem [shape: f32[1,128], index: 2, kind: input, shape index: {}]   ;;  %s557_s3 = inlined_call_operand.vmem [shape: f32[238,128], index: 3, kind: output, shape index: {}]  }
   0x1   :  { %v274_v0 = vld [vmem:[%s554_s1] sm:$0xf]  ;;  %v291_v1 = vld [vmem:[%s554_s1] sm:$0x10]  ;;  %v119_v3 = vsel %vm117_vm0, 4294967295, %v297_v2  ;;  %v16_v7 = vld [vmem:[%s555_s0 + $0x8] sm:$0xff] }
   0x2   :  { %v15_v4 = vld [vmem:[%s555_s0] sm:$0xff]  ;;  %v275_v5 = vor.u32 %v291_v1, %v274_v0  ;;  %v120_v6 = vsel %vm118_vm1, %v119_v3, 0  ;;  %v24_v9 = vld [vmem:[%s555_s0 + $0x48] sm:$0xff]  ;;  %v17_v19 = vld [vmem:[%s555_s0 + $0x10] sm:$0xff] }
   0x3   :  { %v23_v8 = vld [vmem:[%s555_s0 + $0x40] sm:$0xff]  ;;  %v32_v11 = vld [vmem:[%s555_s0 + $0x88] sm:$0xff]  ;;  %v47_v15 = vpack.c.bf16 %v16_v7, %v15_v4  ;;  %v18_v20 = vld [vmem:[%s555_s0 + $0x18] sm:$0xff] }
   0x4   :  { %v31_v10 = vld [vmem:[%s555_s0 + $0x80] sm:$0xff]  ;;  %v122_v13 = vand.u32 %v275_v5, %v120_v6  ;;  %v40_v14 = vld [vmem:[%s555_s0 + $0xc8] sm:$0xff]  ;;  %v51_v16 = vpack.c.bf16 %v24_v9, %v23_v8  ;;  %v25_v21 = vld [vmem:[%s555_s0 + $0x50] sm:$0xff]  ;;  %v48_v27 = vpack.c.bf16 %v18_v20, %v17_v19 }
   0x5   :  { %v39_v12 = vld [vmem:[%s555_s0 + $0xc0] sm:$0xff]  ;;  %v55_v17 = vpack.c.bf16 %v32_v11, %v31_v10  ;;  %v26_v22 = vld [vmem:[%s555_s0 + $0x58] sm:$0xff]  ;;  %v33_v23 = vld [vmem:[%s555_s0 + $0x90] sm:$0xff] }
   0x6   :  { %131 = vmatpush.bf16.msra.mxu0 %v122_v13  ;;  %292 = vmatpush.bf16.msra.mxu1 %v122_v13  ;;  %v59_v18 = vpack.c.bf16 %v40_v14, %v39_v12  ;;  %v34_v24 = vld [vmem:[%s555_s0 + $0x98] sm:$0xff]  ;;  %v41_v25 = vld [vmem:[%s555_s0 + $0xd0] sm:$0xff]  ;;  %v52_v28 = vpack.c.bf16 %v26_v22, %v25_v21  ;;  %v19_v31 = vld [vmem:[%s555_s0 + $0x20] sm:$0xff] }
   0x7   :  { %293 = vmatpush.bf16.msra.mxu2 %v122_v13  ;;  %294 = vmatpush.bf16.msra.mxu3 %v122_v13  ;;  %v42_v26 = vld [vmem:[%s555_s0 + $0xd8] sm:$0xff]  ;;  %v56_v29 = vpack.c.bf16 %v34_v24, %v33_v23  ;;  %v20_v32 = vld [vmem:[%s555_s0 + $0x28] sm:$0xff]  ;;  %v27_v33 = vld [vmem:[%s555_s0 + $0x60] sm:$0xff] }
   0x8   :  { %v60_v30 = vpack.c.bf16 %v42_v26, %v41_v25  ;;  %v28_v34 = vld [vmem:[%s555_s0 + $0x68] sm:$0xff]  ;;  %v35_v35 = vld [vmem:[%s555_s0 + $0xa0] sm:$0xff]  ;;  %v49_v39 = vpack.c.bf16 %v20_v32, %v19_v31  ;;  %v21_v43 = vld [vmem:[%s555_s0 + $0x30] sm:$0xff] }
   0x9   :  { %276 = vmatmul.msk.bf16.vlgmr.msra.gmra.mxu0 %vm71_vm2, %v47_v15  ;;  %280 = vmatmul.msk.bf16.vlgmr.msra.gmra.mxu1 %vm71_vm2, %v51_v16  ;;  %v36_v36 = vld [vmem:[%s555_s0 + $0xa8] sm:$0xff]  ;;  %v43_v37 = vld [vmem:[%s555_s0 + $0xe0] sm:$0xff]  ;;  %v53_v40 = vpack.c.bf16 %v28_v34, %v27_v33  ;;  %v22_v44 = vld [vmem:[%s555_s0 + $0x38] sm:$0xff] }
   0xa   :  { %284 = vmatmul.msk.bf16.vlgmr.msra.gmra.mxu2 %vm71_vm2, %v55_v17  ;;  %288 = vmatmul.msk.bf16.vlgmr.msra.gmra.mxu3 %vm71_vm2, %v59_v18  ;;  %v44_v38 = vld [vmem:[%s555_s0 + $0xe8] sm:$0x3f]  ;;  %v57_v41 = vpack.c.bf16 %v36_v36, %v35_v35  ;;  %v29_v45 = vld [vmem:[%s555_s0 + $0x70] sm:$0xff]  ;;  %v30_v46 = vld [vmem:[%s555_s0 + $0x78] sm:$0xff]  ;;  %v50_v49 = vpack.c.bf16 %v22_v44, %v21_v43 }
   0xb   :  { %v61_v42 = vpack.c.bf16 %v44_v38, %v43_v37  ;;  %v37_v47 = vld [vmem:[%s555_s0 + $0xb0] sm:$0xff]  ;;  %v38_v48 = vld [vmem:[%s555_s0 + $0xb8] sm:$0xff]  ;;  %v54_v50 = vpack.c.bf16 %v30_v46, %v29_v45  ;;  %v432_v52 = vld [vmem:[%s556_s2] ss:$0 sm:$0xff] }
   0xc   :  { %v58_v51 = vpack.c.bf16 %v38_v48, %v37_v47 }
  0x19   :  { %277 = vmatmul.msk.bf16.gmra.mxu0 %vm71_vm2, %v48_v27  ;;  %281 = vmatmul.msk.bf16.gmra.mxu1 %vm71_vm2, %v52_v28 }
  0x1a   :  { %285 = vmatmul.msk.bf16.gmra.mxu2 %vm71_vm2, %v56_v29  ;;  %289 = vmatmul.msk.bf16.gmra.mxu3 %vm71_vm2, %v60_v30 }
  0x29   :  { %278 = vmatmul.msk.bf16.gmra.mxu0 %vm71_vm2, %v49_v39  ;;  %282 = vmatmul.msk.bf16.gmra.mxu1 %vm71_vm2, %v53_v40 }
  0x2a   :  { %286 = vmatmul.msk.bf16.gmra.mxu2 %vm71_vm2, %v57_v41  ;;  %290 = vmatmul.msk.bf16.gmra.mxu3 %vm71_vm2, %v61_v42 }
  0x39   :  { %279 = vmatmul.msk.bf16.gmra.mxu0 %vm71_vm2, %v50_v49  ;;  %283 = vmatmul.msk.bf16.gmra.mxu1 %vm71_vm2, %v54_v50 }
  0x3a   :  { %287 = vmatmul.msk.bf16.gmra.mxu2 %vm71_vm2, %v58_v51 }
  0x86   :  { %v133_v53 = vpop.f32.mrf.mxu0  ;;  %v153_v54 = vpop.f32.mrf.mxu1 }
  0x87   :  { %v134_v55 = vadd.f32 %v432_v52, %v133_v53  ;;  %v154_v56 = vadd.f32 %v432_v52, %v153_v54 }
  0x89   :  { %v208_v57 = vmax.f32 %v134_v55, 0.0  ;;  %v216_v58 = vmax.f32 %v154_v56, 0.0 }
  0x8b   :  { %238 = vst [vmem:[%s557_s3] sm:$0xff] %v208_v57 }
  0x8c   :  { %246 = vst [vmem:[%s557_s3 + $0x40] sm:$0xff] %v216_v58 }
  0x8d   :  { %v173_v59 = vpop.f32.mrf.mxu2  ;;  %v193_v60 = vpop.f32.mrf.mxu3 }
  0x8e   :  { %v174_v61 = vadd.f32 %v432_v52, %v173_v59  ;;  %v135_v62 = vpop.f32.mrf.mxu0  ;;  %v155_v63 = vpop.f32.mrf.mxu1  ;;  %v194_v0 = vadd.f32 %v432_v52, %v193_v60 }
  0x8f   :  { %v136_v1 = vadd.f32 %v432_v52, %v135_v62  ;;  %v156_v2 = vadd.f32 %v432_v52, %v155_v63 }
  0x90   :  { %v224_v3 = vmax.f32 %v174_v61, 0.0  ;;  %v232_v6 = vmax.f32 %v194_v0, 0.0 }
  0x91   :  { %v209_v4 = vmax.f32 %v136_v1, 0.0  ;;  %v217_v5 = vmax.f32 %v156_v2, 0.0 }
  0x92   :  { %254 = vst [vmem:[%s557_s3 + $0x80] sm:$0xff] %v224_v3 }
  0x93   :  { %239 = vst [vmem:[%s557_s3 + $0x8] sm:$0xff] %v209_v4 }
  0x94   :  { %247 = vst [vmem:[%s557_s3 + $0x48] sm:$0xff] %v217_v5 }
  0x95   :  { %v175_v7 = vpop.f32.mrf.mxu2  ;;  %262 = vst [vmem:[%s557_s3 + $0xc0] sm:$0xff] %v232_v6  ;;  %v195_v8 = vpop.f32.mrf.mxu3 }
  0x96   :  { %v176_v9 = vadd.f32 %v432_v52, %v175_v7  ;;  %v138_v10 = vpop.f32.mrf.mxu0  ;;  %v158_v11 = vpop.f32.mrf.mxu1  ;;  %v196_v12 = vadd.f32 %v432_v52, %v195_v8 }
  0x97   :  { %v139_v13 = vadd.f32 %v432_v52, %v138_v10  ;;  %v159_v14 = vadd.f32 %v432_v52, %v158_v11 }
  0x98   :  { %v225_v15 = vmax.f32 %v176_v9, 0.0  ;;  %v233_v18 = vmax.f32 %v196_v12, 0.0 }
  0x99   :  { %v210_v16 = vmax.f32 %v139_v13, 0.0  ;;  %v218_v17 = vmax.f32 %v159_v14, 0.0 }
  0x9a   :  { %255 = vst [vmem:[%s557_s3 + $0x88] sm:$0xff] %v225_v15 }
  0x9b   :  { %240 = vst [vmem:[%s557_s3 + $0x10] sm:$0xff] %v210_v16 }
  0x9c   :  { %248 = vst [vmem:[%s557_s3 + $0x50] sm:$0xff] %v218_v17 }
  0x9d   :  { %v178_v19 = vpop.f32.mrf.mxu2  ;;  %263 = vst [vmem:[%s557_s3 + $0xc8] sm:$0xff] %v233_v18  ;;  %v198_v20 = vpop.f32.mrf.mxu3 }
  0x9e   :  { %v179_v21 = vadd.f32 %v432_v52, %v178_v19  ;;  %v140_v22 = vpop.f32.mrf.mxu0  ;;  %v160_v23 = vpop.f32.mrf.mxu1  ;;  %v199_v24 = vadd.f32 %v432_v52, %v198_v20 }
  0x9f   :  { %v141_v25 = vadd.f32 %v432_v52, %v140_v22  ;;  %v161_v26 = vadd.f32 %v432_v52, %v160_v23 }
  0xa0   :  { %v226_v27 = vmax.f32 %v179_v21, 0.0  ;;  %v234_v30 = vmax.f32 %v199_v24, 0.0 }
  0xa1   :  { %v211_v28 = vmax.f32 %v141_v25, 0.0  ;;  %v219_v29 = vmax.f32 %v161_v26, 0.0 }
  0xa2   :  { %256 = vst [vmem:[%s557_s3 + $0x90] sm:$0xff] %v226_v27 }
  0xa3   :  { %241 = vst [vmem:[%s557_s3 + $0x18] sm:$0xff] %v211_v28 }
  0xa4   :  { %249 = vst [vmem:[%s557_s3 + $0x58] sm:$0xff] %v219_v29 }
  0xa5   :  { %v180_v31 = vpop.f32.mrf.mxu2  ;;  %264 = vst [vmem:[%s557_s3 + $0xd0] sm:$0xff] %v234_v30  ;;  %v200_v32 = vpop.f32.mrf.mxu3 }
  0xa6   :  { %v181_v33 = vadd.f32 %v432_v52, %v180_v31  ;;  %v143_v34 = vpop.f32.mrf.mxu0  ;;  %v163_v35 = vpop.f32.mrf.mxu1  ;;  %v201_v36 = vadd.f32 %v432_v52, %v200_v32 }
  0xa7   :  { %v144_v37 = vadd.f32 %v432_v52, %v143_v34  ;;  %v164_v38 = vadd.f32 %v432_v52, %v163_v35 }
  0xa8   :  { %v227_v39 = vmax.f32 %v181_v33, 0.0  ;;  %v235_v42 = vmax.f32 %v201_v36, 0.0 }
  0xa9   :  { %v212_v40 = vmax.f32 %v144_v37, 0.0  ;;  %v220_v41 = vmax.f32 %v164_v38, 0.0 }
  0xaa   :  { %257 = vst [vmem:[%s557_s3 + $0x98] sm:$0xff] %v227_v39 }
  0xab   :  { %242 = vst [vmem:[%s557_s3 + $0x20] sm:$0xff] %v212_v40 }
  0xac   :  { %250 = vst [vmem:[%s557_s3 + $0x60] sm:$0xff] %v220_v41 }
  0xad   :  { %v183_v43 = vpop.f32.mrf.mxu2  ;;  %265 = vst [vmem:[%s557_s3 + $0xd8] sm:$0xff] %v235_v42  ;;  %v203_v44 = vpop.f32.mrf.mxu3 }
  0xae   :  { %v184_v45 = vadd.f32 %v432_v52, %v183_v43  ;;  %v145_v46 = vpop.f32.mrf.mxu0  ;;  %v165_v47 = vpop.f32.mrf.mxu1  ;;  %v204_v48 = vadd.f32 %v432_v52, %v203_v44 }
  0xaf   :  { %v146_v49 = vadd.f32 %v432_v52, %v145_v46  ;;  %v166_v50 = vadd.f32 %v432_v52, %v165_v47 }
  0xb0   :  { %v228_v51 = vmax.f32 %v184_v45, 0.0  ;;  %v236_v55 = vmax.f32 %v204_v48, 0.0 }
  0xb1   :  { %v213_v53 = vmax.f32 %v146_v49, 0.0  ;;  %v221_v54 = vmax.f32 %v166_v50, 0.0 }
  0xb2   :  { %258 = vst [vmem:[%s557_s3 + $0xa0] sm:$0xff] %v228_v51 }
  0xb3   :  { %243 = vst [vmem:[%s557_s3 + $0x28] sm:$0xff] %v213_v53 }
  0xb4   :  { %251 = vst [vmem:[%s557_s3 + $0x68] sm:$0xff] %v221_v54 }
  0xb5   :  { %v185_v56 = vpop.f32.mrf.mxu2  ;;  %266 = vst [vmem:[%s557_s3 + $0xe0] sm:$0xff] %v236_v55  ;;  %v205_v57 = vpop.f32.mrf.mxu3 }
  0xb6   :  { %v186_v58 = vadd.f32 %v432_v52, %v185_v56  ;;  %v148_v59 = vpop.f32.mrf.mxu0  ;;  %v168_v60 = vpop.f32.mrf.mxu1  ;;  %v206_v61 = vadd.f32 %v432_v52, %v205_v57 }
  0xb7   :  { %v149_v62 = vadd.f32 %v432_v52, %v148_v59  ;;  %v169_v63 = vadd.f32 %v432_v52, %v168_v60 }
  0xb8   :  { %v229_v0 = vmax.f32 %v186_v58, 0.0  ;;  %v237_v3 = vmax.f32 %v206_v61, 0.0 }
  0xb9   :  { %v214_v1 = vmax.f32 %v149_v62, 0.0  ;;  %v222_v2 = vmax.f32 %v169_v63, 0.0 }
  0xba   :  { %259 = vst [vmem:[%s557_s3 + $0xa8] sm:$0xff] %v229_v0 }
  0xbb   :  { %244 = vst [vmem:[%s557_s3 + $0x30] sm:$0xff] %v214_v1 }
  0xbc   :  { %252 = vst [vmem:[%s557_s3 + $0x70] sm:$0xff] %v222_v2 }
  0xbd   :  { %v188_v4 = vpop.f32.mrf.mxu2  ;;  %267 = vst [vmem:[%s557_s3 + $0xe8] sm:$0x3f] %v237_v3 }
  0xbe   :  { %v189_v5 = vadd.f32 %v432_v52, %v188_v4  ;;  %v150_v6 = vpop.f32.mrf.mxu0  ;;  %v170_v7 = vpop.f32.mrf.mxu1 }
  0xbf   :  { %v151_v8 = vadd.f32 %v432_v52, %v150_v6  ;;  %v171_v9 = vadd.f32 %v432_v52, %v170_v7 }
  0xc0   :  { %v230_v10 = vmax.f32 %v189_v5, 0.0 }
  0xc1   :  { %v215_v11 = vmax.f32 %v151_v8, 0.0  ;;  %v223_v12 = vmax.f32 %v171_v9, 0.0 }
  0xc2   :  { %260 = vst [vmem:[%s557_s3 + $0xb0] sm:$0xff] %v230_v10 }
  0xc3   :  { %245 = vst [vmem:[%s557_s3 + $0x38] sm:$0xff] %v215_v11 }
  0xc4   :  { %253 = vst [vmem:[%s557_s3 + $0x78] sm:$0xff] %v223_v12 }
  0xc5   :  { %v190_v13 = vpop.f32.mrf.mxu2 }
  0xc6   :  { %v191_v14 = vadd.f32 %v432_v52, %v190_v13 }
  0xc8   :  { %v231_v15 = vmax.f32 %v191_v14, 0.0 }
  0xca   :  { %261 = vst [vmem:[%s557_s3 + $0xb8] sm:$0xff] %v231_v15 }

// kernel: conformer_forward.19
= control target key start
LH: loop header
LB: loop body
LE: loop exit
PB: predicated region body
PF: predicated region fallthrough
CT: control target
= control target key end

     0   :  { %vm190_vm0 = vcmask 261120   ;;  %s542_s1 = inlined_call_operand.vmem [shape: bf16[288,128], index: 1, kind: input, shape index: {}]   ;;  %s543_s0 = inlined_call_operand.vmem [shape: f32[48,288], index: 0, kind: input, shape index: {}]   ;;  %s544_s2 = inlined_call_operand.vmem [shape: f32[1,128], index: 2, kind: input, shape index: {}]   ;;  %s545_s3 = inlined_call_operand.vmem [shape: f32[48,128], index: 3, kind: output, shape index: {}]  }
   0x1   :  { %v370_v0 = vld [vmem:[%s542_s1 + $0x38] sm:$0xff]  ;;  %v369_v2 = vld [vmem:[%s542_s1 + $0x30] sm:$0xff]  ;;  %v380_v3 = vld [vmem:[%s542_s1 + $0x88] sm:$0xff] }
   0x2   :  { %v378_v1 = vld [vmem:[%s542_s1 + $0x78] sm:$0xff]  ;;  %200 = vmatpush.bf16.msra.mxu0 %v370_v0  ;;  %381 = vmatpush.bf16.msra.mxu3 %v370_v0  ;;  %v377_v4 = vld [vmem:[%s542_s1 + $0x70] sm:$0xff]  ;;  %v379_v5 = vld [vmem:[%s542_s1 + $0x80] sm:$0xff] }
   0x3   :  { %224 = vmatpush.bf16.msra.mxu1 %v378_v1  ;;  %254 = vmatpush.bf16.msra.mxu2 %v380_v3  ;;  %v17_v6 = vld [vmem:[%s543_s0 + $0x10] sm:$0xff]  ;;  %v20_v7 = vld [vmem:[%s543_s0 + $0x28] sm:$0xff]  ;;  %v367_v11 = vld [vmem:[%s542_s1 + $0x20] sm:$0xff] }
   0x4   :  { %v368_v8 = vld [vmem:[%s542_s1 + $0x28] sm:$0xff]  ;;  %v71_v10 = vpack.c.bf16 %v20_v7, %v17_v6  ;;  %v375_v12 = vld [vmem:[%s542_s1 + $0x60] sm:$0xff]  ;;  %v366_v13 = vld [vmem:[%s542_s1 + $0x18] sm:$0xff] }
   0x5   :  { %v376_v9 = vld [vmem:[%s542_s1 + $0x68] sm:$0xff]  ;;  %v374_v14 = vld [vmem:[%s542_s1 + $0x58] sm:$0xff]  ;;  %v365_v15 = vld [vmem:[%s542_s1 + $0x10] sm:$0xff] }
   0x6   :  { %201 = vmatpush.bf16.msra.mxu0 %v369_v2  ;;  %382 = vmatpush.bf16.msra.mxu3 %v369_v2  ;;  %v373_v16 = vld [vmem:[%s542_s1 + $0x50] sm:$0xff]  ;;  %v23_v17 = vld [vmem:[%s543_s0 + $0x40] sm:$0xff]  ;;  %v26_v18 = vld [vmem:[%s543_s0 + $0x58] sm:$0xff] }
   0x7   :  { %225 = vmatpush.bf16.msra.mxu1 %v377_v4  ;;  %255 = vmatpush.bf16.msra.mxu2 %v379_v5  ;;  %v364_v19 = vld [vmem:[%s542_s1 + $0x8] sm:$0xff]  ;;  %v74_v21 = vpack.c.bf16 %v26_v18, %v23_v17  ;;  %v363_v22 = vld [vmem:[%s542_s1] sm:$0xff]  ;;  %v18_v24 = vld [vmem:[%s543_s0 + $0x18] sm:$0xff] }
   0x8   :  { %v372_v20 = vld [vmem:[%s542_s1 + $0x48] sm:$0xff]  ;;  %v15_v23 = vld [vmem:[%s543_s0] sm:$0xff]  ;;  %v21_v25 = vld [vmem:[%s543_s0 + $0x30] sm:$0xff] }
   0x9   :  { %v24_v26 = vld [vmem:[%s543_s0 + $0x48] sm:$0xff]  ;;  %v371_v27 = vld [vmem:[%s542_s1 + $0x40] sm:$0xff]  ;;  %v69_v30 = vpack.c.bf16 %v18_v24, %v15_v23  ;;  %v29_v33 = vld [vmem:[%s543_s0 + $0x70] sm:$0xff] }
   0xa   :  { %202 = vmatpush.bf16.msra.mxu0 %v368_v8  ;;  %383 = vmatpush.bf16.msra.mxu3 %v368_v8  ;;  %v16_v28 = vld [vmem:[%s543_s0 + $0x8] sm:$0xff]  ;;  %v19_v29 = vld [vmem:[%s543_s0 + $0x20] sm:$0xff]  ;;  %v72_v31 = vpack.c.bf16 %v24_v26, %v21_v25  ;;  %v30_v37 = vld [vmem:[%s543_s0 + $0x78] sm:$0xff] }
   0xb   :  { %226 = vmatpush.bf16.msra.mxu1 %v376_v9  ;;  %360 = vmatmul.msk.bf16.vlgmr.msra.gmra.mxu2 %vm190_vm0, %v71_v10  ;;  %v70_v32 = vpack.c.bf16 %v19_v29, %v16_v28  ;;  %v32_v34 = vld [vmem:[%s543_s0 + $0x88] sm:$0xff]  ;;  %v27_v36 = vld [vmem:[%s543_s0 + $0x60] sm:$0xff]  ;;  %v22_v38 = vld [vmem:[%s543_s0 + $0x38] sm:$0xff] }
   0xc   :  { %v77_v35 = vpack.c.bf16 %v32_v34, %v29_v33  ;;  %v25_v39 = vld [vmem:[%s543_s0 + $0x50] sm:$0xff]  ;;  %v75_v40 = vpack.c.bf16 %v30_v37, %v27_v36  ;;  %v28_v42 = vld [vmem:[%s543_s0 + $0x68] sm:$0xff]  ;;  %v31_v43 = vld [vmem:[%s543_s0 + $0x80] sm:$0xff] }
   0xd   :  { %v73_v41 = vpack.c.bf16 %v25_v39, %v22_v38  ;;  %v76_v44 = vpack.c.bf16 %v31_v43, %v28_v42  ;;  %v389_v46 = vld [vmem:[%s544_s2] ss:$0 sm:$0xff] }
   0xe   :  { %203 = vmatpush.bf16.msra.mxu0 %v367_v11  ;;  %384 = vmatpush.bf16.msra.mxu3 %v367_v11 }
   0xf   :  { %227 = vmatpush.bf16.msra.mxu1 %v375_v12 }
  0x12   :  { %204 = vmatpush.bf16.msra.mxu0 %v366_v13  ;;  %385 = vmatpush.bf16.msra.mxu3 %v366_v13 }
  0x13   :  { %228 = vmatpush.bf16.msra.mxu1 %v374_v14 }
  0x16   :  { %205 = vmatpush.bf16.msra.mxu0 %v365_v15  ;;  %386 = vmatpush.bf16.msra.mxu3 %v365_v15 }
  0x17   :  { %229 = vmatpush.bf16.msra.mxu1 %v373_v16 }
  0x1a   :  { %206 = vmatpush.bf16.msra.mxu0 %v364_v19  ;;  %387 = vmatpush.bf16.msra.mxu3 %v364_v19 }
  0x1b   :  { %230 = vmatpush.bf16.msra.mxu1 %v372_v20  ;;  %361 = vmatmul.msk.bf16.gmra.mxu2 %vm190_vm0, %v74_v21 }
  0x1e   :  { %207 = vmatpush.bf16.msra.mxu0 %v363_v22  ;;  %388 = vmatpush.bf16.msra.mxu3 %v363_v22 }
  0x1f   :  { %231 = vmatpush.bf16.msra.mxu1 %v371_v27 }
  0x21   :  { %208 = vmatmul.bf16.vlgmr.msra.gmra.mxu0 %v69_v30  ;;  %213 = vmatmul.bf16.vlgmr.msra.gmra.mxu3 %v72_v31 }
  0x22   :  { %232 = vmatmul.bf16.vlgmr.msra.gmra.mxu1 %v70_v32 }
  0x2b   :  { %362 = vmatmul.msk.bf16.gmra.mxu2 %vm190_vm0, %v77_v35 }
  0x31   :  { %218 = vmatmul.bf16.gmra.mxu3 %v75_v40 }
  0x32   :  { %237 = vmatmul.bf16.gmra.mxu1 %v73_v41 }
  0x42   :  { %242 = vmatmul.bf16.gmra.mxu1 %v76_v44 }
  0x8e   :  { %v257_v45 = vpop.f32.mrf.mxu2 }
  0x96   :  { %v259_v51 = vpop.f32.mrf.mxu2 }
  0x9e   :  { %v209_v47 = vpop.f32.mrf.mxu0  ;;  %v262_v60 = vpop.f32.mrf.mxu2 }
  0x9f   :  { %v210_v48 = vadd.f32 %v389_v46, %v209_v47  ;;  %v233_v49 = vpop.f32.mrf.mxu1 }
  0xa1   :  { %v234_v50 = vadd.f32 %v233_v49, %v210_v48 }
  0xa3   :  { %v258_v52 = vadd.f32 %v257_v45, %v234_v50 }
  0xa4   :  { %v214_v54 = vpop.f32.mrf.mxu3 }
  0xa5   :  { %v272_v53 = vmax.f32 %v258_v52, 0.0  ;;  %v215_v61 = vadd.f32 %v389_v46, %v214_v54 }
  0xa6   :  { %v211_v55 = vpop.f32.mrf.mxu0  ;;  %v264_v4 = vpop.f32.mrf.mxu2 }
  0xa7   :  { %278 = vst [vmem:[%s545_s3] sm:$0xff] %v272_v53  ;;  %v212_v56 = vadd.f32 %v389_v46, %v211_v55  ;;  %v235_v57 = vpop.f32.mrf.mxu1 }
  0xa9   :  { %v236_v58 = vadd.f32 %v235_v57, %v212_v56 }
  0xab   :  { %v260_v59 = vadd.f32 %v259_v51, %v236_v58 }
  0xac   :  { %v216_v63 = vpop.f32.mrf.mxu3 }
  0xad   :  { %v273_v62 = vmax.f32 %v260_v59, 0.0  ;;  %v217_v5 = vadd.f32 %v389_v46, %v216_v63 }
  0xae   :  { %v267_v12 = vpop.f32.mrf.mxu2 }
  0xaf   :  { %279 = vst [vmem:[%s545_s3 + $0x8] sm:$0xff] %v273_v62  ;;  %v238_v0 = vpop.f32.mrf.mxu1 }
  0xb0   :  { %v239_v1 = vadd.f32 %v238_v0, %v215_v61 }
  0xb2   :  { %v263_v2 = vadd.f32 %v262_v60, %v239_v1 }
  0xb4   :  { %v274_v3 = vmax.f32 %v263_v2, 0.0  ;;  %v219_v8 = vpop.f32.mrf.mxu3 }
  0xb5   :  { %v220_v10 = vadd.f32 %v389_v46, %v219_v8 }
  0xb6   :  { %280 = vst [vmem:[%s545_s3 + $0x10] sm:$0xff] %v274_v3  ;;  %v269_v21 = vpop.f32.mrf.mxu2 }
  0xb7   :  { %v240_v6 = vpop.f32.mrf.mxu1 }
  0xb8   :  { %v241_v7 = vadd.f32 %v240_v6, %v217_v5 }
  0xba   :  { %v265_v9 = vadd.f32 %v264_v4, %v241_v7 }
  0xbc   :  { %v275_v11 = vmax.f32 %v265_v9, 0.0  ;;  %v221_v16 = vpop.f32.mrf.mxu3 }
  0xbd   :  { %v222_v18 = vadd.f32 %v389_v46, %v221_v16 }
  0xbe   :  { %281 = vst [vmem:[%s545_s3 + $0x18] sm:$0xff] %v275_v11 }
  0xbf   :  { %v243_v13 = vpop.f32.mrf.mxu1 }
  0xc0   :  { %v244_v14 = vadd.f32 %v243_v13, %v220_v10 }
  0xc2   :  { %v268_v15 = vadd.f32 %v267_v12, %v244_v14 }
  0xc4   :  { %v276_v17 = vmax.f32 %v268_v15, 0.0 }
  0xc6   :  { %282 = vst [vmem:[%s545_s3 + $0x20] sm:$0xff] %v276_v17 }
  0xc7   :  { %v245_v19 = vpop.f32.mrf.mxu1 }
  0xc8   :  { %v246_v20 = vadd.f32 %v245_v19, %v222_v18 }
  0xca   :  { %v270_v22 = vadd.f32 %v269_v21, %v246_v20 }
  0xcc   :  { %v277_v23 = vmax.f32 %v270_v22, 0.0 }
  0xce   :  { %283 = vst [vmem:[%s545_s3 + $0x28] sm:$0xff] %v277_v23 }

// kernel: conformer_forward.20
= control target key start
LH: loop header
LB: loop body
LE: loop exit
PB: predicated region body
PF: predicated region fallthrough
CT: control target
= control target key end

     0   :  { %vm70_vm0 = vcmask 785408   ;;  %s179_s1 = inlined_call_operand.vmem [shape: bf16[96,128], index: 1, kind: input, shape index: {}]   ;;  %s180_s2 = inlined_call_operand.vmem [shape: f32[1,128], index: 2, kind: input, shape index: {}]   ;;  %s181_s0 = inlined_call_operand.vmem [shape: f32[16,96], index: 0, kind: input, shape index: {}]   ;;  %s182_s3 = inlined_call_operand.vmem [shape: f32[16,128], index: 3, kind: output, shape index: {}]  }
   0x1   :  { %v124_v0 = vld [vmem:[%s179_s1 + $0x28] sm:$0xff]  ;;  %v123_v1 = vld [vmem:[%s179_s1 + $0x20] sm:$0xff]  ;;  %v122_v2 = vld [vmem:[%s179_s1 + $0x18] sm:$0xff] }
   0x2   :  { %76 = vmatpush.bf16.msra.mxu0 %v124_v0  ;;  %v121_v3 = vld [vmem:[%s179_s1 + $0x10] sm:$0xff]  ;;  %v120_v4 = vld [vmem:[%s179_s1 + $0x8] sm:$0xff]  ;;  %v119_v5 = vld [vmem:[%s179_s1] sm:$0xff] }
   0x3   :  { %v15_v6 = vld [vmem:[%s181_s0] sm:$0xff]  ;;  %v16_v7 = vld [vmem:[%s181_s0 + $0x8] sm:$0xff] }
   0x4   :  { %v29_v8 = vpack.c.bf16 %v16_v7, %v15_v6  ;;  %v125_v9 = vld [vmem:[%s180_s2] ss:$0 sm:$0xff] }
   0x6   :  { %77 = vmatpush.bf16.msra.mxu0 %v123_v1 }
   0xa   :  { %78 = vmatpush.bf16.msra.mxu0 %v122_v2 }
   0xe   :  { %79 = vmatpush.bf16.msra.mxu0 %v121_v3 }
  0x12   :  { %80 = vmatpush.bf16.msra.mxu0 %v120_v4 }
  0x16   :  { %81 = vmatpush.bf16.msra.mxu0 %v119_v5 }
  0x19   :  { %118 = vmatmul.msk.bf16.vlgmr.msra.gmra.mxu0 %vm70_vm0, %v29_v8 }
  0x96   :  { %v83_v10 = vpop.f32.mrf.mxu0 }
  0x97   :  { %v84_v11 = vadd.f32 %v125_v9, %v83_v10 }
  0x99   :  { %88 = vst [vmem:[%s182_s3] sm:$0xff] %v84_v11 }
  0x9e   :  { %v85_v12 = vpop.f32.mrf.mxu0 }
  0x9f   :  { %v86_v13 = vadd.f32 %v125_v9, %v85_v12 }
  0xa1   :  { %89 = vst [vmem:[%s182_s3 + $0x8] sm:$0xff] %v86_v13 }

// kernel: conformer_forward.21
= control target key start
LH: loop header
LB: loop body
LE: loop exit
PB: predicated region body
PF: predicated region fallthrough
CT: control target
= control target key end

     0   :  { %vm31_vm0 = vcmask 261120   ;;  %v289_v4 = vmov 32.0   ;;  %s389_s0 = inlined_call_operand.vmem [shape: f32[16,32], index: 0, kind: input, shape index: {}]   ;;  %s390_s1 = inlined_call_operand.vmem [shape: f32[1,32], index: 1, kind: input, shape index: {}]   ;;  %s391_s2 = inlined_call_operand.vmem [shape: f32[1,32], index: 2, kind: input, shape index: {}]   ;;  %s392_s4 = inlined_call_operand.vmem [shape: f32[1,64], index: 4, kind: input, shape index: {}]   ;;  %s393_s3 = inlined_call_operand.vmem [shape: bf16[32,64], index: 3, kind: input, shape index: {}]   ;;  %s394_s6 = inlined_call_operand.vmem [shape: f32[1,32], index: 6, kind: input, shape index: {}]   ;;  %s395_s5 = inlined_call_operand.vmem [shape: bf16[64,32], index: 5, kind: input, shape index: {}]   ;;  %s396_s7 = inlined_call_operand.vmem [shape: f32[16,32], index: 7, kind: output, shape index: {}]  }
   0x1   :  { %v333_v0 = vld [vmem:[%s389_s0] sm:$0xff]  ;;  %v340_v2 = vld [vmem:[%s389_s0 + $0x8] sm:$0xff]  ;;  %275 = vrcp.f32 %v289_v4  ;;  %v269_v52 = vld [vmem:[%s395_s5 + $0x18] sm:$0xff] }
   0x2   :  { %v32_v1 = vsel %vm31_vm0, %v333_v0, 0.0  ;;  %v35_v3 = vsel %vm31_vm0, %v340_v2, 0.0  ;;  %v265_v21 = vld [vmem:[%s393_s3 + $0x8] sm:$0xff]  ;;  %v264_v23 = vld [vmem:[%s393_s3] sm:$0xff]  ;;  %216 = vmatpush.bf16.msra.mxu1 %v269_v52  ;;  %v268_v54 = vld [vmem:[%s395_s5 + $0x10] sm:$0xff] }
   0x3   :  { %33 = vadd.xlane.f32.xlu0 %v32_v1  ;;  %123 = vmatpush.bf16.msra.mxu0 %v265_v21  ;;  %v271_v42 = vld [vmem:[%s390_s1] ss:$0 sm:$0xff]  ;;  %v267_v57 = vld [vmem:[%s395_s5 + $0x8] sm:$0xff] }
   0x4   :  { %v272_v47 = vld [vmem:[%s391_s2] ss:$0 sm:$0xff] }
   0x5   :  { %v273_v53 = vld [vmem:[%s392_s4] ss:$0 sm:$0xff] }
   0x6   :  { %217 = vmatpush.bf16.msra.mxu1 %v268_v54  ;;  %v266_v59 = vld [vmem:[%s395_s5] sm:$0xff] }
   0x7   :  { %v276_v5 = vpop.eup %275  ;;  %124 = vmatpush.bf16.msra.mxu0 %v264_v23 }
   0x8   :  { %v39_v6 = vmul.f32 32.0, %v276_v5  ;;  %vm43_vm1 = vweird.f32 %v276_v5 }
   0xa   :  { %v40_v7 = vsub.f32 1.0, %v39_v6  ;;  %218 = vmatpush.bf16.msra.mxu1 %v267_v57 }
   0xb   :  { %36 = vadd.xlane.f32.xlu0 %v35_v3 }
   0xc   :  { %v41_v8 = vmul.f32 %v276_v5, %v40_v7 }
   0xe   :  { %v42_v9 = vadd.f32 %v276_v5, %v41_v8  ;;  %219 = vmatpush.bf16.msra.mxu1 %v266_v59 }
  0x10   :  { %v44_v10 = vsel %vm43_vm1, %v276_v5, %v42_v9  ;;  %vm208_vm1 = vcmask 523264  }
  0x76   :  { %v34_v11 = vpop.xlane.xlu0 %33 }
  0x77   :  { %v45_v12 = vmul.f32 %v44_v10, %v34_v11 }
  0x79   :  { %v47_v13 = vsub.f32 %v333_v0, %v45_v12 }
  0x7b   :  { %v49_v14 = vmul.f32 %v47_v13, %v47_v13 }
  0x7d   :  { %v51_v15 = vsel %vm31_vm0, %v49_v14, 0.0 }
  0x7e   :  { %52 = vadd.xlane.f32.xlu1 %v51_v15  ;;  %v37_v16 = vpop.xlane.xlu0 %36 }
  0x7f   :  { %v46_v17 = vmul.f32 %v44_v10, %v37_v16 }
  0x81   :  { %v48_v18 = vsub.f32 %v340_v2, %v46_v17 }
  0x83   :  { %v50_v19 = vmul.f32 %v48_v18, %v48_v18 }
  0x85   :  { %v54_v20 = vsel %vm31_vm0, %v50_v19, 0.0 }
  0x86   :  { %55 = vadd.xlane.f32.xlu1 %v54_v20 }
  0xf1   :  { %v53_v22 = vpop.xlane.xlu1 %52 }
  0xf2   :  { %v57_v24 = vmul.f32 %v53_v22, %v44_v10 }
  0xf4   :  { %v59_v25 = vadd.f32 1e-05, %v57_v24 }
  0xf6   :  { %277 = vrsqrt.f32 %v59_v25  ;;  %vm67_vm3 = vweird.f32 %v59_v25 }
  0xf9   :  { %v56_v26 = vpop.xlane.xlu1 %55 }
  0xfa   :  { %v58_v27 = vmul.f32 %v56_v26, %v44_v10 }
  0xfc   :  { %v278_v28 = vpop.eup %277  ;;  %v60_v29 = vadd.f32 1e-05, %v58_v27 }
  0xfd   :  { %v62_v30 = vmul.f32 %v278_v28, %v59_v25  ;;  %vm68_vm2 = vweird.f32 %v278_v28 }
  0xfe   :  { %279 = vrsqrt.f32 %v60_v29  ;;  %vm69_vm4 = vmor %vm67_vm3, %vm68_vm2  ;;  %vm77_vm6 = vweird.f32 %v60_v29 }
  0xff   :  { %v63_v31 = vmul.f32 %v278_v28, %v62_v30 }
 0x101   :  { %v64_v32 = vmul.f32 0.5, %v63_v31 }
 0x103   :  { %v65_v33 = vsub.f32 1.5, %v64_v32 }
 0x104   :  { %v280_v34 = vpop.eup %279 }
 0x105   :  { %v66_v35 = vmul.f32 %v278_v28, %v65_v33  ;;  %v72_v36 = vmul.f32 %v280_v34, %v60_v29  ;;  %vm78_vm5 = vweird.f32 %v280_v34 }
 0x106   :  { %vm79_vm7 = vmor %vm77_vm6, %vm78_vm5 }
 0x107   :  { %v73_v37 = vmul.f32 %v280_v34, %v72_v36  ;;  %v70_v38 = vsel %vm69_vm4, %v278_v28, %v66_v35  ;;  %v274_v28 = vld [vmem:[%s394_s6] ss:$0 sm:$0xff] }
 0x108   :  { %v81_v41 = vmul.f32 %v70_v38, %v47_v13 }
 0x109   :  { %v74_v39 = vmul.f32 0.5, %v73_v37 }
 0x10a   :  { %v86_v46 = vmul.f32 %v271_v42, %v81_v41 }
 0x10b   :  { %v75_v40 = vsub.f32 1.5, %v74_v39 }
 0x10c   :  { %v91_v49 = vadd.f32 %v272_v47, %v86_v46 }
 0x10d   :  { %v76_v43 = vmul.f32 %v280_v34, %v75_v40 }
 0x10f   :  { %v80_v44 = vsel %vm79_vm7, %v280_v34, %v76_v43 }
 0x110   :  { %v82_v45 = vmul.f32 %v80_v44, %v48_v18 }
 0x112   :  { %v87_v48 = vmul.f32 %v271_v42, %v82_v45 }
 0x114   :  { %v92_v50 = vadd.f32 %v272_v47, %v87_v48 }
 0x116   :  { %v97_v51 = vpack.c.bf16 %v92_v50, %v91_v49 }
 0x118   :  { %244 = vmatmul.msk.bf16.vlgmr.msra.gmra.mxu0 %vm31_vm0, %v97_v51 }
 0x195   :  { %v126_v55 = vpop.f32.mrf.mxu0 }
 0x196   :  { %v127_v56 = vadd.f32 %v273_v53, %v126_v55 }
 0x198   :  { %v245_v58 = vmul.f32 -1.442695, %v127_v56 }
 0x19a   :  { %281 = vpow2.f32 %v245_v58 }
 0x19d   :  { %v128_v60 = vpop.f32.mrf.mxu0 }
 0x19e   :  { %v129_v61 = vadd.f32 %v273_v53, %v128_v60 }
 0x1a0   :  { %v282_v62 = vpop.eup %281  ;;  %v246_v63 = vmul.f32 -1.442695, %v129_v61 }
 0x1a1   :  { %v137_v1 = vadd.f32 1.0, %v282_v62 }
 0x1a2   :  { %283 = vpow2.f32 %v246_v63 }
 0x1a3   :  { %285 = vrcp.f32 %v137_v1  ;;  %v150_v12 = vand.u32 2147483648, %v137_v1  ;;  %vm144_vm9 = vweird.f32 %v137_v1  ;;  %v148_v13 = vand.u32 2147483647, %v137_v1 }
 0x1a5   :  { %v151_v19 = vor.u32 1.1754944e-38, %v150_v12  ;;  %vm149_vm12 = vcmp.eq.f32.partialorder %v148_v13, 8.507059e+37 }
 0x1a8   :  { %v284_v3 = vpop.eup %283 }
 0x1a9   :  { %v286_v4 = vpop.eup %285  ;;  %v138_v5 = vadd.f32 1.0, %v284_v3 }
 0x1aa   :  { %v140_v6 = vmul.f32 %v286_v4, %v137_v1  ;;  %vm145_vm8 = vweird.f32 %v286_v4 }
 0x1ab   :  { %287 = vrcp.f32 %v138_v5  ;;  %vm146_vm10 = vmor %vm144_vm9, %vm145_vm8  ;;  %v165_v15 = vand.u32 2147483648, %v138_v5  ;;  %v163_v18 = vand.u32 2147483647, %v138_v5  ;;  %vm159_vm13 = vweird.f32 %v138_v5 }
 0x1ac   :  { %v141_v7 = vsub.f32 1.0, %v140_v6 }
 0x1ad   :  { %v166_v22 = vor.u32 1.1754944e-38, %v165_v15  ;;  %vm164_vm15 = vcmp.eq.f32.partialorder %v163_v18, 8.507059e+37 }
 0x1ae   :  { %v142_v8 = vmul.f32 %v286_v4, %v141_v7 }
 0x1b0   :  { %v143_v10 = vadd.f32 %v286_v4, %v142_v8 }
 0x1b1   :  { %v288_v9 = vpop.eup %287 }
 0x1b2   :  { %v155_v11 = vmul.f32 %v288_v9, %v138_v5  ;;  %v147_v16 = vsel %vm146_vm10, %v286_v4, %v143_v10  ;;  %vm160_vm11 = vweird.f32 %v288_v9 }
 0x1b3   :  { %v152_v21 = vsel %vm149_vm12, %v151_v19, %v147_v16  ;;  %vm161_vm14 = vmor %vm159_vm13, %vm160_vm11 }
 0x1b4   :  { %v156_v14 = vsub.f32 1.0, %v155_v11  ;;  %v169_v25 = vmul.f32 %v152_v21, %v127_v56 }
 0x1b6   :  { %v157_v17 = vmul.f32 %v288_v9, %v156_v14 }
 0x1b8   :  { %v158_v20 = vadd.f32 %v288_v9, %v157_v17 }
 0x1ba   :  { %v162_v23 = vsel %vm161_vm14, %v288_v9, %v158_v20 }
 0x1bb   :  { %v167_v24 = vsel %vm164_vm15, %v166_v22, %v162_v23 }
 0x1bc   :  { %v170_v26 = vmul.f32 %v167_v24, %v129_v61 }
 0x1be   :  { %v179_v27 = vpack.c.bf16 %v170_v26, %v169_v25 }
 0x1c0   :  { %263 = vmatmul.msk.bf16.vlgmr.msra.gmra.mxu1 %vm208_vm1, %v179_v27 }
 0x23d   :  { %v221_v29 = vpop.f32.mrf.mxu1 }
 0x23e   :  { %v222_v30 = vadd.f32 %v274_v28, %v221_v29 }
 0x240   :  { %v226_v31 = vmul.f32 0.5, %v222_v30 }
 0x242   :  { %v228_v32 = vadd.f32 %v226_v31, %v333_v0 }
 0x244   :  { %230 = vst.msk [vmem:[%s396_s7] sm:$0xff] %vm31_vm0, %v228_v32 }
 0x245   :  { %v223_v33 = vpop.f32.mrf.mxu1 }
 0x246   :  { %v224_v34 = vadd.f32 %v274_v28, %v223_v33 }
 0x248   :  { %v227_v35 = vmul.f32 0.5, %v224_v34 }
 0x24a   :  { %v229_v36 = vadd.f32 %v227_v35, %v340_v2 }
 0x24c   :  { %231 = vst.msk [vmem:[%s396_s7 + $0x8] sm:$0xff] %vm31_vm0, %v229_v36 }

// kernel: conformer_forward.22
= control target key start
LH: loop header
LB: loop body
LE: loop exit
PB: predicated region body
PF: predicated region fallthrough
CT: control target
= control target key end

     0   :  { %vm28_vm0 = vcmask 261120   ;;  %v186_v4 = vmov 32.0   ;;  %vm130_vm8 = vcmask 257024   ;;  %s188_s14 = smov 96   ;;  %s279_s0 = inlined_call_operand.vmem [shape: f32[16,32], index: 0, kind: input, shape index: {}]   ;;  %s280_s1 = inlined_call_operand.vmem [shape: f32[1,32], index: 1, kind: input, shape index: {}]   ;;  %s281_s2 = inlined_call_operand.vmem [shape: f32[1,32], index: 2, kind: input, shape index: {}]   ;;  %s282_s4 = inlined_call_operand.vmem [shape: f32[1,96], index: 4, kind: input, shape index: {}]   ;;  %s283_s3 = inlined_call_operand.vmem [shape: bf16[32,96], index: 3, kind: input, shape index: {}]   ;;  %s284_s5 = inlined_call_operand.vmem [shape: bf16[16,32], index: 5, kind: output, shape index: {0}]   ;;  %s285_s6 = inlined_call_operand.vmem [shape: bf16[16,32], index: 6, kind: output, shape index: {1}]   ;;  %s286_s7 = inlined_call_operand.vmem [shape: bf16[16,32], index: 7, kind: output, shape index: {2}]  }
   0x1   :  { %v24_v0 = vld [vmem:[%s279_s0] sm:$0xff]  ;;  %v25_v2 = vld [vmem:[%s279_s0 + $0x8] sm:$0xff]  ;;  %180 = vrcp.f32 %v186_v4 }
   0x2   :  { %v29_v1 = vsel %vm28_vm0, %v24_v0, 0.0  ;;  %v32_v3 = vsel %vm28_vm0, %v25_v2, 0.0  ;;  %v173_v21 = vld [vmem:[%s283_s3 + $0x8] sm:$0xff]  ;;  %v172_v23 = vld [vmem:[%s283_s3] sm:$0xff] }
   0x3   :  { %30 = vadd.xlane.f32.xlu0 %v29_v1  ;;  %120 = vmatpush.bf16.msra.mxu0 %v173_v21  ;;  %v177_v42 = vld [vmem:[%s280_s1] ss:$0 sm:$0xff] }
   0x4   :  { %v178_v47 = vld [vmem:[%s281_s2] ss:$0 sm:$0xff]  ;;  %s187_s2 = smov 64  }
   0x5   :  { %v179_v52 = vld [vmem:[%s282_s4] ss:$0 sm:$0xff] }
   0x7   :  { %v181_v5 = vpop.eup %180  ;;  %121 = vmatpush.bf16.msra.mxu0 %v172_v23 }
   0x8   :  { %v36_v6 = vmul.f32 32.0, %v181_v5  ;;  %vm40_vm1 = vweird.f32 %v181_v5 }
   0xa   :  { %v37_v7 = vsub.f32 1.0, %v36_v6 }
   0xb   :  { %33 = vadd.xlane.f32.xlu0 %v32_v3 }
   0xc   :  { %v38_v8 = vmul.f32 %v181_v5, %v37_v7 }
   0xe   :  { %v39_v9 = vadd.f32 %v181_v5, %v38_v8 }
  0x10   :  { %v41_v10 = vsel %vm40_vm1, %v181_v5, %v39_v9 }
  0x76   :  { %v31_v11 = vpop.xlane.xlu0 %30 }
  0x77   :  { %v42_v12 = vmul.f32 %v41_v10, %v31_v11 }
  0x79   :  { %v44_v13 = vsub.f32 %v24_v0, %v42_v12 }
  0x7b   :  { %v46_v14 = vmul.f32 %v44_v13, %v44_v13 }
  0x7d   :  { %v48_v15 = vsel %vm28_vm0, %v46_v14, 0.0 }
  0x7e   :  { %49 = vadd.xlane.f32.xlu1 %v48_v15  ;;  %v34_v16 = vpop.xlane.xlu0 %33 }
  0x7f   :  { %v43_v17 = vmul.f32 %v41_v10, %v34_v16 }
  0x81   :  { %v45_v18 = vsub.f32 %v25_v2, %v43_v17 }
  0x83   :  { %v47_v19 = vmul.f32 %v45_v18, %v45_v18 }
  0x85   :  { %v51_v20 = vsel %vm28_vm0, %v47_v19, 0.0 }
  0x86   :  { %52 = vadd.xlane.f32.xlu1 %v51_v20 }
  0xf1   :  { %v50_v22 = vpop.xlane.xlu1 %49 }
  0xf2   :  { %v54_v24 = vmul.f32 %v50_v22, %v41_v10 }
  0xf4   :  { %v56_v25 = vadd.f32 1e-05, %v54_v24 }
  0xf6   :  { %182 = vrsqrt.f32 %v56_v25  ;;  %vm64_vm3 = vweird.f32 %v56_v25 }
  0xf9   :  { %v53_v26 = vpop.xlane.xlu1 %52 }
  0xfa   :  { %v55_v27 = vmul.f32 %v53_v26, %v41_v10 }
  0xfc   :  { %v183_v28 = vpop.eup %182  ;;  %v57_v29 = vadd.f32 1e-05, %v55_v27 }
  0xfd   :  { %v59_v30 = vmul.f32 %v183_v28, %v56_v25  ;;  %vm65_vm2 = vweird.f32 %v183_v28 }
  0xfe   :  { %184 = vrsqrt.f32 %v57_v29  ;;  %vm66_vm4 = vmor %vm64_vm3, %vm65_vm2  ;;  %vm74_vm6 = vweird.f32 %v57_v29 }
  0xff   :  { %v60_v31 = vmul.f32 %v183_v28, %v59_v30 }
 0x101   :  { %v61_v32 = vmul.f32 0.5, %v60_v31 }
 0x103   :  { %v62_v33 = vsub.f32 1.5, %v61_v32 }
 0x104   :  { %v185_v34 = vpop.eup %184 }
 0x105   :  { %v63_v35 = vmul.f32 %v183_v28, %v62_v33  ;;  %v69_v36 = vmul.f32 %v185_v34, %v57_v29  ;;  %vm75_vm5 = vweird.f32 %v185_v34 }
 0x106   :  { %vm76_vm7 = vmor %vm74_vm6, %vm75_vm5 }
 0x107   :  { %v70_v37 = vmul.f32 %v185_v34, %v69_v36  ;;  %v67_v38 = vsel %vm66_vm4, %v183_v28, %v63_v35 }
 0x108   :  { %v78_v41 = vmul.f32 %v67_v38, %v44_v13 }
 0x109   :  { %v71_v39 = vmul.f32 0.5, %v70_v37 }
 0x10a   :  { %v83_v46 = vmul.f32 %v177_v42, %v78_v41 }
 0x10b   :  { %v72_v40 = vsub.f32 1.5, %v71_v39 }
 0x10c   :  { %v88_v49 = vadd.f32 %v178_v47, %v83_v46 }
 0x10d   :  { %v73_v43 = vmul.f32 %v185_v34, %v72_v40 }
 0x10f   :  { %v77_v44 = vsel %vm76_vm7, %v185_v34, %v73_v43 }
 0x110   :  { %v79_v45 = vmul.f32 %v77_v44, %v45_v18 }
 0x112   :  { %v84_v48 = vmul.f32 %v177_v42, %v79_v45 }
 0x114   :  { %v89_v50 = vadd.f32 %v178_v47, %v84_v48 }
 0x116   :  { %v94_v51 = vpack.c.bf16 %v89_v50, %v88_v49 }
 0x118   :  { %171 = vmatmul.msk.bf16.vlgmr.msra.gmra.mxu0 %vm28_vm0, %v94_v51 }
 0x195   :  { %v123_v53 = vpop.f32.mrf.mxu0 }
 0x196   :  { %v124_v54 = vadd.f32 %v179_v52, %v123_v53 }
 0x198   :  { %v128_v55 = vpack.c.bf16 %v124_v54, %v124_v54 }
 0x19a   :  { %131 = vst.msk [vmem:[%s284_s5] sm:$0xf] %vm130_vm8, %v128_v55  ;;  %143 = vrot.lane.b32.xlu0 %v128_v55, %s187_s2  ;;  %135 = vrot.lane.b32.xlu2 %v128_v55, %s188_s14 }
 0x19d   :  { %v125_v56 = vpop.f32.mrf.mxu0 }
 0x19e   :  { %v126_v57 = vadd.f32 %v179_v52, %v125_v56 }
 0x1a0   :  { %v129_v58 = vpack.c.bf16 %v126_v57, %v126_v57 }
 0x1a2   :  { %132 = vst.msk [vmem:[%s284_s5 + $0x4] sm:$0xf] %vm130_vm8, %v129_v58  ;;  %145 = vrot.lane.b32.xlu1 %v129_v58, %s187_s2  ;;  %137 = vrot.lane.b32.xlu2 %v129_v58, %s188_s14 }
 0x1f4   :  { %v136_v59 = vpop.permute.xlu2 %135 }
 0x1f5   :  { %141 = vst.msk [vmem:[%s285_s6] sm:$0xf] %vm130_vm8, %v136_v59 }
 0x1fc   :  { %v138_v60 = vpop.permute.xlu2 %137 }
 0x1fd   :  { %142 = vst.msk [vmem:[%s285_s6 + $0x4] sm:$0xf] %vm130_vm8, %v138_v60 }
 0x20c   :  { %v144_v61 = vpop.permute.xlu0 %143 }
 0x20d   :  { %149 = vst.msk [vmem:[%s286_s7] sm:$0xf] %vm130_vm8, %v144_v61 }
 0x214   :  { %v146_v62 = vpop.permute.xlu1 %145 }
 0x215   :  { %150 = vst.msk [vmem:[%s286_s7 + $0x4] sm:$0xf] %vm130_vm8, %v146_v62 }

// kernel: conformer_forward.23
= control target key start
LH: loop header
LB: loop body
LE: loop exit
PB: predicated region body
PF: predicated region fallthrough
CT: control target
= control target key end

     0   :  { %s569_s12 = smov 0   ;;  %s571_s13 = smov 0   ;;  %s625_s0 = inlined_call_operand.vmem [shape: bf16[8,8,8], index: 0, kind: input, shape index: {}]   ;;  %s626_s1 = inlined_call_operand.vmem [shape: bf16[8,8,8], index: 1, kind: input, shape index: {}]   ;;  %s627_s2 = inlined_call_operand.vmem [shape: bf16[8,8,8], index: 2, kind: input, shape index: {}]   ;;  %s628_s3 = inlined_call_operand.vmem [shape: bf16[8,8,8], index: 3, kind: output, shape index: {}]  }
   0x1   :  { %s573_s14 = smov 0  }
   0x2 LB: > { %s32_s15 = sadd.s32 1, %s540_s13  ;;  %p477_p0 = scmp.ge.s32.totalorder %s544_s14, 1  ;;  %s544_s14 = sphi %s573_s14, %s13_s14   ;;  %s540_s13 = sphi %s571_s13, %s630_s13   ;;  %s536_s12 = sphi %s569_s12, %s629_s12  }
   0x3   : > { %p34_p1 = scmp.ge.s32.totalorder %s32_s15, 8  ;;  %p190_p2 = scmp.lt.s32.totalorder %s544_s14, 9 }
   0x5   : > { %s632_s15 = smov (%p34_p1, %s32_s15), 0  ;;  %p191_p3 = pnand %p477_p0, %p190_p2 }
   0x6   : > { %p232_p4 = scmp.lt.s32.totalorder (!%p191_p3), %s536_s12, 7 }
   0x7   : > { %194 = sbr.rel (%p191_p3) target bundleno = 625 (0x271), region = 32 }
   0xc   : > { %s634_s12 = smov (!%p232_p4, %s536_s12), 7  ;;  %vm268_vm0 = vcmask 64512   ;;  %vm265_vm1 = vcmask 7168   ;;  %v546_v6 = vmov -1e+30   ;;  %v547_v10 = vmov 0  }
   0xd   : > { %s587_s16 = sshll.u32 %s634_s12, 2  ;;  %266 = vst.msk [vmem:[#allocation2] sm:$0xff] %vm265_vm1, %v546_v6  ;;  %513 = vset.pattern.permute.xlu0 %v547_v10  ;;  %514 = vset.pattern.permute.xlu1 %v547_v10  ;;  %v548_v11 = vmov 0.0   ;;  %vm331_vm2 = vcmask 1043456   ;;  %vm364_vm3 = vcmask 60416  }
   0xe   : > { %s245_s19 = scalar_lea.vmem %s626_s1, %s587_s16  ;;  %s238_s22 = scalar_lea.vmem %s625_s0, %s587_s16  ;;  %515 = vset.pattern.permute.xlu2 %v547_v10  ;;  %267 = vst.msk [vmem:[#allocation3] sm:$0xff] %vm265_vm1, %v548_v11 }
   0xf   : > { %v274_v0 = vld [vmem:[%s245_s19] sm:$0xf]  ;;  %269 = vst.msk [vmem:[#allocation4] sm:$0xff] %vm268_vm0, %v548_v11  ;;  %s252_s25 = scalar_lea.vmem %s627_s2, %s587_s16  ;;  %s259_s28 = scalar_lea.vmem %s628_s3, %s587_s16 }
  0x10   : > { %v270_v1 = vld [vmem:[%s238_s22] sm:$0xf]  ;;  %v281_v2 = vsel %vm268_vm0, %v274_v0, 0 }
  0x11   : > { %v271_v3 = vunpack.c.l.bf16 %v270_v1  ;;  %290 = vmatpush.bf16.xpose.msra.mxu0 %v281_v2  ;;  %v275_v16 = vld [vmem:[%s252_s25] sm:$0xf] }
  0x12   : > { %v333_v17 = vsel %vm331_vm2, %v275_v16, 0 }
  0x13   : > { %v272_v4 = vmul.f32 0.35355338, %v271_v3  ;;  %342 = vmatpush.bf16.msra.mxu1 %v333_v17 }
  0x14   : > { %v296_v12 = vld [vmem:[#allocation2] sm:$0xff] }
  0x15   : > { %v273_v5 = vpack.c.bf16 %v272_v4, %v272_v4  ;;  %v312_v26 = vld [vmem:[#allocation3] sm:$0xff] }
  0x16   : > { %v320_v34 = vld [vmem:[#allocation4] sm:$0xff] }
  0x18   : > { %482 = vmatmul.msk.bf16.vlgmr.msra.gmra.mxu0 %vm268_vm0, %v273_v5 }
  0x95   : > { %v292_v7 = vpop.f32.mrf.mxu0 }
  0x96   : > { %v297_v8 = vsel %vm268_vm0, %v292_v7, -inf }
  0x97   : > { %298 = vmax.xlane.f32.xlu0 %v297_v8 }
  0x9d   : > { %v294_v9 = vpop.f32.mrf.mxu0 }
 0x10a   : > { %v299_v13 = vpop.xlane.xlu0 %298 }
 0x10b   : > { %v300_v14 = vmax.f32 %v296_v12, %v299_v13 }
 0x10d   : > { %v301_v15 = vsub.f32 %v296_v12, %v300_v14  ;;  %350 = vst.msk [vmem:[#allocation2] sm:$0xff] %vm265_vm1, %v300_v14  ;;  %306 = vperm.xlu0 %513, %v300_v14  }
 0x10f   : > { %v302_v24 = vmul.f32 1.442695, %v301_v15 }
 0x17f   : > { %v307_v18 = vpop.permute.xlu0 %306 }
 0x180   : > { %v309_v19 = vsub.f32 %v292_v7, %v307_v18 }
 0x182   : > { %v310_v20 = vmul.f32 1.442695, %v309_v19 }
 0x184   : > { %516 = vpow2.f32 %v310_v20 }
 0x185   : > { %518 = vpow2.f32 %v302_v24 }
 0x18a   : > { %v517_v21 = vpop.eup %516 }
 0x18b   : > { %v314_v22 = vsel %vm268_vm0, %v517_v21, 0.0  ;;  %v327_v23 = vpack.c.bf16 %v517_v21, %v517_v21  ;;  %v519_v25 = vpop.eup %518 }
 0x18c   : > { %315 = vadd.xlane.f32.xlu1 %v314_v22  ;;  %v313_v27 = vmul.f32 %v519_v25, %v312_v26 }
 0x18d   : > { %483 = vmatmul.msk.bf16.vlgmr.msra.gmra.mxu1 %vm268_vm0, %v327_v23 }
 0x1a5   : > { %323 = vperm.xlu1 %514, %v519_v25  }
 0x1ff   : > { %v316_v28 = vpop.xlane.xlu1 %315 }
 0x200   : > { %v317_v29 = vadd.f32 %v316_v28, %v313_v27 }
 0x202   : > { %319 = vst.msk [vmem:[#allocation3] sm:$0xff] %vm265_vm1, %v317_v29 }
 0x209   : > { %v355_v30 = vld [vmem:[#allocation3] sm:$0xff] }
 0x20a   : > { %v344_v31 = vpop.f32.mrf.mxu1  ;;  %520 = vrcp.f32 %v355_v30 }
 0x210   : > { %v521_v32 = vpop.eup %520 }
 0x211   : > { %359 = vperm.xlu2 %515, %v521_v32  }
 0x212   : > { %v346_v33 = vpop.f32.mrf.mxu1 }
 0x217   : > { %v324_v35 = vpop.permute.xlu1 %323 }
 0x218   : > { %v326_v36 = vmul.f32 %v324_v35, %v320_v34 }
 0x21a   : > { %v348_v37 = vadd.f32 %v344_v31, %v326_v36 }
 0x21c   : > { %349 = vst.msk [vmem:[#allocation4] sm:$0xff] %vm268_vm0, %v348_v37 }
 0x223   : > { %v354_v38 = vld [vmem:[#allocation4] sm:$0xff] }
 0x26b   : > { %v360_v39 = vpop.permute.xlu2 %359 }
 0x26c   : > { %v362_v40 = vmul.f32 %v360_v39, %v354_v38 }
 0x26e   : > { %v363_v41 = vpack.c.bf16 %v362_v40, %v362_v40 }
 0x270   : > { %365 = vst.msk [vmem:[%s259_s28] sm:$0xf] %vm364_vm3, %v363_v41 }
 0x271 PF: > { %s13_s14 = sadd.s32 1, %s544_s14   ;;  %s629_s12 = smov %s540_s13 }
 0x272   : > { %p10_p5 = scmp.ge.s32.totalorder %s13_s14, 10   ;;  %s630_s13 = smov %s632_s15 }
 0x274   :  { %12 = sbr.rel (!%p10_p5) target bundleno = 2 (0x2), region = 76 }

// kernel: conformer_forward.24
= control target key start
LH: loop header
LB: loop body
LE: loop exit
PB: predicated region body
PF: predicated region fallthrough
CT: control target
= control target key end

     0   :  { %vm45_vm0 = vcmask 261120   ;;  %s139_s2 = inlined_call_operand.vmem [shape: bf16[32,32], index: 2, kind: input, shape index: {}]   ;;  %s140_s3 = inlined_call_operand.vmem [shape: f32[1,32], index: 3, kind: input, shape index: {}]   ;;  %s141_s0 = inlined_call_operand.vmem [shape: bf16[16,32], index: 0, kind: input, shape index: {}]   ;;  %s142_s1 = inlined_call_operand.vmem [shape: f32[16,32], index: 1, kind: input, shape index: {}]   ;;  %s143_s4 = inlined_call_operand.vmem [shape: f32[16,32], index: 4, kind: output, shape index: {}]  }
   0x1   :  { %v88_v0 = vld [vmem:[%s139_s2 + $0x8] sm:$0xff]  ;;  %v87_v1 = vld [vmem:[%s139_s2] sm:$0xff] }
   0x2   :  { %55 = vmatpush.bf16.msra.mxu0 %v88_v0  ;;  %v86_v2 = vld [vmem:[%s141_s0] sm:$0xff]  ;;  %v64_v9 = vld [vmem:[%s142_s1 + $0x8] sm:$0xff] }
   0x3   :  { %v89_v3 = vld [vmem:[%s140_s3] ss:$0 sm:$0xff] }
   0x4   :  { %v63_v5 = vld [vmem:[%s142_s1] sm:$0xff] }
   0x6   :  { %56 = vmatpush.bf16.msra.mxu0 %v87_v1 }
   0x9   :  { %85 = vmatmul.msk.bf16.vlgmr.msra.gmra.mxu0 %vm45_vm0, %v86_v2 }
  0x86   :  { %v58_v4 = vpop.f32.mrf.mxu0 }
  0x87   :  { %v59_v6 = vadd.f32 %v89_v3, %v58_v4 }
  0x89   :  { %v65_v7 = vadd.f32 %v63_v5, %v59_v6 }
  0x8b   :  { %67 = vst.msk [vmem:[%s143_s4] sm:$0xff] %vm45_vm0, %v65_v7 }
  0x8e   :  { %v60_v8 = vpop.f32.mrf.mxu0 }
  0x8f   :  { %v61_v10 = vadd.f32 %v89_v3, %v60_v8 }
  0x91   :  { %v66_v11 = vadd.f32 %v64_v9, %v61_v10 }
  0x93   :  { %68 = vst.msk [vmem:[%s143_s4 + $0x8] sm:$0xff] %vm45_vm0, %v66_v11 }

// kernel: conformer_forward.25
= control target key start
LH: loop header
LB: loop body
LE: loop exit
PB: predicated region body
PF: predicated region fallthrough
CT: control target
= control target key end

     0   :  { %s867_s25 = smov 0   ;;  %s944_s0 = inlined_call_operand.vmem [shape: f32[2,8,32], index: 0, kind: input, shape index: {}]   ;;  %s945_s1 = inlined_call_operand.vmem [shape: f32[1,32], index: 1, kind: input, shape index: {}]   ;;  %s946_s2 = inlined_call_operand.vmem [shape: f32[1,32], index: 2, kind: input, shape index: {}]   ;;  %s947_s3 = inlined_call_operand.vmem [shape: bf16[32,64], index: 3, kind: input, shape index: {}]   ;;  %s948_s4 = inlined_call_operand.vmem [shape: f32[1,64], index: 4, kind: input, shape index: {}]   ;;  %s949_s5 = inlined_call_operand.vmem [shape: f32[7,32], index: 5, kind: input, shape index: {}]   ;;  %s950_s6 = inlined_call_operand.vmem [shape: f32[1,32], index: 6, kind: input, shape index: {}]   ;;  %s951_s7 = inlined_call_operand.vmem [shape: f32[1,32], index: 7, kind: input, shape index: {}]   ;;  %s952_s8 = inlined_call_operand.vmem [shape: f32[1,32], index: 8, kind: input, shape index: {}]   ;;  %s953_s9 = inlined_call_operand.vmem [shape: f32[1,32], index: 9, kind: input, shape index: {}]   ;;  %s954_s10 = inlined_call_operand.vmem [shape: f32[1,32], index: 10, kind: input, shape index: {}]   ;;  %s955_s11 = inlined_call_operand.vmem [shape: bf16[32,32], index: 11, kind: input, shape index: {}]   ;;  %s956_s12 = inlined_call_operand.vmem [shape: f32[1,32], index: 12, kind: input, shape index: {}]   ;;  %s957_s13 = inlined_call_operand.vmem [shape: f32[2,8,32], index: 13, kind: output, shape index: {}]  }
   0x1 LB: > { %s720_s26 = sadd.s32 4294967295, %s792_s25   ;;  %p724_p0 = scmp.ge.s32.totalorder %s792_s25, 1  ;;  %s792_s25 = sphi %s867_s25, %s23_s25  }
   0x2   : > { %p386_p1 = scmp.lt.s32.totalorder %s792_s25, 3 }
   0x4   : > { %p387_p2 = pnand %p724_p0, %p386_p1 }
   0x5   : > { %p428_p3 = scmp.lt.s32.totalorder (!%p387_p2), %s720_s26, 1  ;;  %s795_s24 = smov (!%p387_p2), 96  }
   0x6   : > { %390 = sbr.rel (%p387_p2) target bundleno = 757 (0x2f5), region = 72 }
   0xb   : > { %s959_s26 = smov (!%p428_p3, %s720_s26), 1  ;;  %vm440_vm0 = vcmask 261120   ;;  %v794_v2 = vmov 32.0   ;;  %v750_v14 = vld [vmem:[%s947_s3 + $0x8] sm:$0xff]  ;;  %v749_v15 = vld [vmem:[%s947_s3] sm:$0xff]  ;;  %vm539_vm9 = vcmask 256000  }
   0xc   : > { %s725_s27 = sshll.u32 %s959_s26, 3  ;;  %772 = vrcp.f32 %v794_v2  ;;  %508 = vmatpush.bf16.msra.mxu0 %v750_v14  ;;  %v764_v25 = vld [vmem:[%s945_s1] ss:$0 sm:$0xff]  ;;  %v752_v49 = vld [vmem:[%s955_s11 + $0x8] sm:$0xff]  ;;  %v796_v50 = vmov 0.0  }
   0xd   : > { %s431_s30 = scalar_lea.vmem %s944_s0, %s725_s27  ;;  %v765_v28 = vld [vmem:[%s946_s2] ss:$0 sm:$0xff]  ;;  %540 = vst.msk [vmem:[#allocation2 + $0x5] sm:$0x7] %vm539_vm9, %v796_v50  ;;  %658 = vmatpush.bf16.msra.mxu1 %v752_v49  ;;  %s435_s17 = scalar_lea.vmem %s957_s13, %s725_s27 }
   0xe   : > { %v883_v0 = vld [vmem:[%s431_s30] sm:$0xff]  ;;  %541 = vst.msk [vmem:[#allocation2 + $0x10] sm:$0x7] %vm539_vm9, %v796_v50 }
   0xf   : > { %v441_v1 = vsel %vm440_vm0, %v883_v0, 0.0  ;;  %v766_v32 = vld [vmem:[%s948_s4] ss:$0 sm:$0xff] }
  0x10   : > { %442 = vadd.xlane.f32.xlu0 %v441_v1  ;;  %509 = vmatpush.bf16.msra.mxu0 %v749_v15  ;;  %v751_v51 = vld [vmem:[%s955_s11] sm:$0xff] }
  0x11   : > { %659 = vmatpush.bf16.msra.mxu1 %v751_v51  ;;  %v582_v52 = vld [vmem:[%s954_s10] sm:$0x1] }
  0x12   : > { %v773_v3 = vpop.eup %772  ;;  %v583_v53 = vadd.f32 1e-05, %v582_v52  ;;  %v543_v58 = vld [vmem:[%s949_s5] sm:$0x7f] }
  0x13   : > { %v445_v4 = vmul.f32 32.0, %v773_v3  ;;  %vm449_vm1 = vweird.f32 %v773_v3  ;;  %v545_v60 = vperm.slane %v543_v58, 0  ;;  %v549_v61 = vperm.slane %v543_v58, 1 }
  0x14   : > { %v553_v62 = vperm.slane %v543_v58, 2  ;;  %v565_v15 = vperm.slane %v543_v58, 5  ;;  %vm590_vm10 = vweird.f32 %v583_v53 }
  0x15   : > { %v446_v5 = vsub.f32 1.0, %v445_v4 }
  0x17   : > { %v447_v6 = vmul.f32 %v773_v3, %v446_v5 }
  0x19   : > { %v448_v7 = vadd.f32 %v773_v3, %v447_v6  ;;  %v557_v6 = vperm.slane %v543_v58, 3 }
  0x1b   : > { %v450_v8 = vsel %vm449_vm1, %v773_v3, %v448_v7 }
  0x83   : > { %v443_v9 = vpop.xlane.xlu0 %442 }
  0x84   : > { %v451_v10 = vmul.f32 %v450_v8, %v443_v9 }
  0x86   : > { %v452_v11 = vsub.f32 %v883_v0, %v451_v10  ;;  %v561_v10 = vperm.slane %v543_v58, 4 }
  0x88   : > { %v453_v12 = vmul.f32 %v452_v11, %v452_v11 }
  0x8a   : > { %v454_v13 = vsel %vm440_vm0, %v453_v12, 0.0 }
  0x8b   : > { %455 = vadd.xlane.f32.xlu0 %v454_v13 }
  0xfe   : > { %v456_v16 = vpop.xlane.xlu0 %455 }
  0xff   : > { %v457_v17 = vmul.f32 %v456_v16, %v450_v8 }
 0x101   : > { %v458_v18 = vadd.f32 1e-05, %v457_v17 }
 0x103   : > { %774 = vrsqrt.f32 %v458_v18  ;;  %vm465_vm3 = vweird.f32 %v458_v18 }
 0x109   : > { %v775_v19 = vpop.eup %774 }
 0x10a   : > { %v460_v20 = vmul.f32 %v775_v19, %v458_v18  ;;  %vm466_vm2 = vweird.f32 %v775_v19 }
 0x10b   : > { %vm467_vm4 = vmor %vm465_vm3, %vm466_vm2 }
 0x10c   : > { %v461_v21 = vmul.f32 %v775_v19, %v460_v20 }
 0x10e   : > { %v462_v22 = vmul.f32 0.5, %v461_v21 }
 0x110   : > { %v463_v23 = vsub.f32 1.5, %v462_v22 }
 0x112   : > { %v464_v24 = vmul.f32 %v775_v19, %v463_v23 }
 0x114   : > { %v468_v26 = vsel %vm467_vm4, %v775_v19, %v464_v24  ;;  %v569_v19 = vperm.slane %v543_v58, 6 }
 0x115   : > { %v469_v27 = vmul.f32 %v468_v26, %v452_v11  ;;  %v767_v26 = vld [vmem:[%s950_s6] ss:$0 sm:$0xff] }
 0x117   : > { %v473_v29 = vmul.f32 %v764_v25, %v469_v27 }
 0x119   : > { %v477_v30 = vadd.f32 %v765_v28, %v473_v29  ;;  %v768_v29 = vld [vmem:[%s953_s9] ss:$0 sm:$0xff] }
 0x11b   : > { %v482_v31 = vpack.c.bf16 %v477_v30, %v477_v30 }
 0x11d   : > { %735 = vmatmul.msk.bf16.vlgmr.msra.gmra.mxu0 %vm440_vm0, %v482_v31 }
 0x19a   : > { %v511_v33 = vpop.f32.mrf.mxu0 }
 0x19b   : > { %v512_v34 = vadd.f32 %v766_v32, %v511_v33  ;;  %v769_v33 = vld [vmem:[%s951_s7] ss:$0 sm:$0xff] }
 0x19d   : > { %v736_v35 = vmul.f32 -1.442695, %v512_v34 }
 0x19f   : > { %776 = vpow2.f32 %v736_v35  ;;  %v770_v35 = vld [vmem:[%s952_s8] ss:$0 sm:$0xff] }
 0x1a2   : > { %v513_v36 = vpop.f32.mrf.mxu0 }
 0x1a5   : > { %v777_v37 = vpop.eup %776 }
 0x1a6   : > { %v518_v38 = vadd.f32 1.0, %v777_v37 }
 0x1a8   : > { %778 = vrcp.f32 %v518_v38  ;;  %v530_v42 = vand.u32 2147483648, %v518_v38  ;;  %v528_v44 = vand.u32 2147483647, %v518_v38  ;;  %vm524_vm6 = vweird.f32 %v518_v38 }
 0x1a9   : > { %780 = vrsqrt.f32 %v583_v53 }
 0x1aa   : > { %v531_v46 = vor.u32 1.1754944e-38, %v530_v42  ;;  %vm529_vm8 = vcmp.eq.f32.partialorder %v528_v44, 8.507059e+37 }
 0x1ae   : > { %v779_v39 = vpop.eup %778 }
 0x1af   : > { %v520_v40 = vmul.f32 %v779_v39, %v518_v38  ;;  %vm525_vm5 = vweird.f32 %v779_v39  ;;  %v781_v54 = vpop.eup %780 }
 0x1b0   : > { %vm526_vm7 = vmor %vm524_vm6, %vm525_vm5  ;;  %v585_v57 = vmul.f32 %v781_v54, %v583_v53  ;;  %vm591_vm11 = vweird.f32 %v781_v54  ;;  %v771_v53 = vld [vmem:[%s956_s12] ss:$0 sm:$0xff] }
 0x1b1   : > { %v521_v41 = vsub.f32 1.0, %v520_v40  ;;  %vm592_vm12 = vmor %vm590_vm10, %vm591_vm11 }
 0x1b2   : > { %v586_v59 = vmul.f32 %v781_v54, %v585_v57 }
 0x1b3   : > { %v522_v43 = vmul.f32 %v779_v39, %v521_v41 }
 0x1b4   : > { %v587_v3 = vmul.f32 0.5, %v586_v59 }
 0x1b5   : > { %v523_v45 = vadd.f32 %v779_v39, %v522_v43 }
 0x1b6   : > { %v588_v12 = vsub.f32 1.5, %v587_v3 }
 0x1b7   : > { %v527_v47 = vsel %vm526_vm7, %v779_v39, %v523_v45 }
 0x1b8   : > { %v532_v48 = vsel %vm529_vm8, %v531_v46, %v527_v47  ;;  %v589_v21 = vmul.f32 %v781_v54, %v588_v12 }
 0x1b9   : > { %535 = vrot.lane.b32.xlu1 %v532_v48, %s795_s24 }
 0x1ba   : > { %v593_v27 = vsel %vm592_vm12, %v781_v54, %v589_v21 }
 0x1bb   : > { %v595_v31 = vperm.slane %v593_v27, 0 }
 0x22b   : > { %v536_v55 = vpop.permute.xlu1 %535 }
 0x22c   : > { %v538_v56 = vmul.f32 %v536_v55, %v512_v34 }
 0x22e   : > { %542 = vst.msk [vmem:[#allocation2 + $0x8] sm:$0xff] %vm440_vm0, %v538_v56 }
 0x235   : > { %v544_v63 = vld [vmem:[#allocation2 + $0x5] sm:$0xff] }
 0x236   : > { %v548_v1 = vld [vmem:[#allocation2 + $0x6] sm:$0xff]  ;;  %v546_v4 = vmul.f32 %v545_v60, %v544_v63 }
 0x237   : > { %v552_v2 = vld [vmem:[#allocation2 + $0x7] sm:$0xff]  ;;  %v550_v5 = vmul.f32 %v549_v61, %v548_v1 }
 0x238   : > { %v556_v7 = vld [vmem:[#allocation2 + $0x8] sm:$0xff]  ;;  %v554_v9 = vmul.f32 %v553_v62, %v552_v2 }
 0x239   : > { %v551_v8 = vadd.f32 %v550_v5, %v546_v4  ;;  %v560_v11 = vld [vmem:[#allocation2 + $0x9] sm:$0xff]  ;;  %v558_v14 = vmul.f32 %v557_v6, %v556_v7 }
 0x23a   : > { %v564_v16 = vld [vmem:[#allocation2 + $0xa] sm:$0xff]  ;;  %v562_v18 = vmul.f32 %v561_v10, %v560_v11 }
 0x23b   : > { %v555_v13 = vadd.f32 %v554_v9, %v551_v8  ;;  %v568_v20 = vld [vmem:[#allocation2 + $0xb] sm:$0xff]  ;;  %v566_v23 = vmul.f32 %v565_v15, %v564_v16 }
 0x23c   : > { %v570_v25 = vmul.f32 %v569_v19, %v568_v20 }
 0x23d   : > { %v559_v17 = vadd.f32 %v558_v14, %v555_v13 }
 0x23f   : > { %v563_v22 = vadd.f32 %v562_v18, %v559_v17 }
 0x241   : > { %v567_v24 = vadd.f32 %v566_v23, %v563_v22 }
 0x243   : > { %v571_v28 = vadd.f32 %v570_v25, %v567_v24 }
 0x245   : > { %v576_v30 = vadd.f32 %v767_v26, %v571_v28 }
 0x247   : > { %v581_v32 = vsub.f32 %v576_v30, %v768_v29 }
 0x249   : > { %v597_v34 = vmul.f32 %v595_v31, %v581_v32 }
 0x24b   : > { %v602_v36 = vmul.f32 %v769_v33, %v597_v34 }
 0x24d   : > { %v607_v37 = vadd.f32 %v770_v35, %v602_v36 }
 0x24f   : > { %v737_v38 = vmul.f32 -1.442695, %v607_v37 }
 0x251   : > { %782 = vpow2.f32 %v737_v38 }
 0x257   : > { %v783_v39 = vpop.eup %782 }
 0x258   : > { %v611_v40 = vadd.f32 1.0, %v783_v39 }
 0x25a   : > { %784 = vrcp.f32 %v611_v40  ;;  %v623_v44 = vand.u32 2147483648, %v611_v40  ;;  %v621_v46 = vand.u32 2147483647, %v611_v40  ;;  %vm617_vm14 = vweird.f32 %v611_v40 }
 0x25c   : > { %v624_v48 = vor.u32 1.1754944e-38, %v623_v44  ;;  %vm622_vm1 = vcmp.eq.f32.partialorder %v621_v46, 8.507059e+37 }
 0x260   : > { %v785_v41 = vpop.eup %784 }
 0x261   : > { %v613_v42 = vmul.f32 %v785_v41, %v611_v40  ;;  %vm618_vm13 = vweird.f32 %v785_v41 }
 0x262   : > { %vm619_vm15 = vmor %vm617_vm14, %vm618_vm13 }
 0x263   : > { %v614_v43 = vsub.f32 1.0, %v613_v42 }
 0x265   : > { %v615_v45 = vmul.f32 %v785_v41, %v614_v43 }
 0x267   : > { %v616_v47 = vadd.f32 %v785_v41, %v615_v45 }
 0x269   : > { %v620_v49 = vsel %vm619_vm15, %v785_v41, %v616_v47 }
 0x26a   : > { %v625_v50 = vsel %vm622_vm1, %v624_v48, %v620_v49 }
 0x26b   : > { %v627_v51 = vmul.f32 %v625_v50, %v607_v37 }
 0x26d   : > { %v632_v52 = vpack.c.bf16 %v627_v51, %v627_v51 }
 0x26f   : > { %746 = vmatmul.msk.bf16.vlgmr.msra.gmra.mxu1 %vm440_vm0, %v632_v52 }
 0x2ec   : > { %v661_v54 = vpop.f32.mrf.mxu1 }
 0x2ed   : > { %v662_v55 = vadd.f32 %v771_v53, %v661_v54 }
 0x2ef   : > { %v665_v56 = vadd.f32 %v662_v55, %v883_v0 }
 0x2f1   : > { %666 = vst.msk [vmem:[%s435_s17] sm:$0xff] %vm440_vm0, %v665_v56 }
 0x2f4   : > { %v663_v57 = vpop.f32.mrf.mxu1 }
 0x2f5 PF: > { %s23_s25 = sadd.s32 1, %s792_s25  }
 0x2f6   : > { %p20_p4 = scmp.ge.s32.totalorder %s23_s25, 4  }
 0x2f8   :  { %22 = sbr.rel (!%p20_p4) target bundleno = 1 (0x1), region = 102 }

// kernel: conformer_forward.33
= control target key start
LH: loop header
LB: loop body
LE: loop exit
PB: predicated region body
PF: predicated region fallthrough
CT: control target
= control target key end

     0   :  { %vm38_vm0 = vcmask 261120   ;;  %s115_s1 = inlined_call_operand.vmem [shape: bf16[32,128], index: 1, kind: input, shape index: {}]   ;;  %s116_s0 = inlined_call_operand.vmem [shape: f32[16,32], index: 0, kind: input, shape index: {}]   ;;  %s117_s2 = inlined_call_operand.vmem [shape: f32[1,128], index: 2, kind: input, shape index: {}]   ;;  %s118_s3 = inlined_call_operand.vmem [shape: f32[16,128], index: 3, kind: output, shape index: {}]  }
   0x1   :  { %v72_v0 = vld [vmem:[%s115_s1 + $0x8] sm:$0xff]  ;;  %v71_v1 = vld [vmem:[%s115_s1] sm:$0xff] }
   0x2   :  { %48 = vmatpush.bf16.msra.mxu0 %v72_v0  ;;  %v15_v2 = vld [vmem:[%s116_s0] sm:$0xff]  ;;  %v16_v3 = vld [vmem:[%s116_s0 + $0x8] sm:$0xff] }
   0x3   :  { %v21_v4 = vpack.c.bf16 %v16_v3, %v15_v2  ;;  %v73_v5 = vld [vmem:[%s117_s2] ss:$0 sm:$0xff] }
   0x6   :  { %49 = vmatpush.bf16.msra.mxu0 %v71_v1 }
   0x9   :  { %70 = vmatmul.msk.bf16.vlgmr.msra.gmra.mxu0 %vm38_vm0, %v21_v4 }
  0x86   :  { %v51_v6 = vpop.f32.mrf.mxu0 }
  0x87   :  { %v52_v7 = vadd.f32 %v73_v5, %v51_v6 }
  0x89   :  { %56 = vst [vmem:[%s118_s3] sm:$0xff] %v52_v7 }
  0x8e   :  { %v53_v8 = vpop.f32.mrf.mxu0 }
  0x8f   :  { %v54_v9 = vadd.f32 %v73_v5, %v53_v8 }
  0x91   :  { %57 = vst [vmem:[%s118_s3 + $0x8] sm:$0xff] %v54_v9 }

// kernel: conformer_forward.26
= control target key start
LH: loop header
LB: loop body
LE: loop exit
PB: predicated region body
PF: predicated region fallthrough
CT: control target
= control target key end

     0   :  { %vm37_vm0 = vcmask 261120   ;;  %v357_v4 = vmov 32.0   ;;  %s487_s0 = inlined_call_operand.vmem [shape: f32[16,32], index: 0, kind: input, shape index: {}]   ;;  %s488_s1 = inlined_call_operand.vmem [shape: f32[1,32], index: 1, kind: input, shape index: {}]   ;;  %s489_s2 = inlined_call_operand.vmem [shape: f32[1,32], index: 2, kind: input, shape index: {}]   ;;  %s490_s4 = inlined_call_operand.vmem [shape: f32[1,64], index: 4, kind: input, shape index: {}]   ;;  %s491_s3 = inlined_call_operand.vmem [shape: bf16[32,64], index: 3, kind: input, shape index: {}]   ;;  %s492_s6 = inlined_call_operand.vmem [shape: f32[1,32], index: 6, kind: input, shape index: {}]   ;;  %s493_s5 = inlined_call_operand.vmem [shape: bf16[64,32], index: 5, kind: input, shape index: {}]   ;;  %s494_s7 = inlined_call_operand.vmem [shape: f32[1,32], index: 7, kind: input, shape index: {}]   ;;  %s495_s8 = inlined_call_operand.vmem [shape: f32[1,32], index: 8, kind: input, shape index: {}]   ;;  %s496_s9 = inlined_call_operand.vmem [shape: f32[16,32], index: 9, kind: output, shape index: {}]  }
   0x1   :  { %v411_v0 = vld [vmem:[%s487_s0] sm:$0xff]  ;;  %v418_v2 = vld [vmem:[%s487_s0 + $0x8] sm:$0xff]  ;;  %339 = vrcp.f32 %v357_v4  ;;  %v331_v52 = vld [vmem:[%s493_s5 + $0x18] sm:$0xff] }
   0x2   :  { %v38_v1 = vsel %vm37_vm0, %v411_v0, 0.0  ;;  %v41_v3 = vsel %vm37_vm0, %v418_v2, 0.0  ;;  %v327_v21 = vld [vmem:[%s491_s3 + $0x8] sm:$0xff]  ;;  %v326_v23 = vld [vmem:[%s491_s3] sm:$0xff]  ;;  %222 = vmatpush.bf16.msra.mxu1 %v331_v52  ;;  %v330_v54 = vld [vmem:[%s493_s5 + $0x10] sm:$0xff] }
   0x3   :  { %39 = vadd.xlane.f32.xlu0 %v38_v1  ;;  %129 = vmatpush.bf16.msra.mxu0 %v327_v21  ;;  %v333_v42 = vld [vmem:[%s488_s1] ss:$0 sm:$0xff]  ;;  %v329_v57 = vld [vmem:[%s493_s5 + $0x8] sm:$0xff] }
   0x4   :  { %v334_v47 = vld [vmem:[%s489_s2] ss:$0 sm:$0xff] }
   0x5   :  { %v335_v53 = vld [vmem:[%s490_s4] ss:$0 sm:$0xff] }
   0x6   :  { %223 = vmatpush.bf16.msra.mxu1 %v330_v54  ;;  %v328_v59 = vld [vmem:[%s493_s5] sm:$0xff] }
   0x7   :  { %v340_v5 = vpop.eup %339  ;;  %130 = vmatpush.bf16.msra.mxu0 %v326_v23 }
   0x8   :  { %v45_v6 = vmul.f32 32.0, %v340_v5  ;;  %vm49_vm1 = vweird.f32 %v340_v5 }
   0xa   :  { %v46_v7 = vsub.f32 1.0, %v45_v6  ;;  %224 = vmatpush.bf16.msra.mxu1 %v329_v57 }
   0xb   :  { %42 = vadd.xlane.f32.xlu0 %v41_v3 }
   0xc   :  { %v47_v8 = vmul.f32 %v340_v5, %v46_v7 }
   0xe   :  { %v48_v9 = vadd.f32 %v340_v5, %v47_v8  ;;  %225 = vmatpush.bf16.msra.mxu1 %v328_v59 }
  0x10   :  { %v422_v10 = vsel %vm49_vm1, %v340_v5, %v48_v9  ;;  %vm214_vm1 = vcmask 523264  }
  0x76   :  { %v40_v11 = vpop.xlane.xlu0 %39 }
  0x77   :  { %v51_v12 = vmul.f32 %v422_v10, %v40_v11 }
  0x79   :  { %v53_v13 = vsub.f32 %v411_v0, %v51_v12 }
  0x7b   :  { %v55_v14 = vmul.f32 %v53_v13, %v53_v13 }
  0x7d   :  { %v57_v15 = vsel %vm37_vm0, %v55_v14, 0.0 }
  0x7e   :  { %58 = vadd.xlane.f32.xlu1 %v57_v15  ;;  %v43_v16 = vpop.xlane.xlu0 %42 }
  0x7f   :  { %v52_v17 = vmul.f32 %v422_v10, %v43_v16 }
  0x81   :  { %v54_v18 = vsub.f32 %v418_v2, %v52_v17 }
  0x83   :  { %v56_v19 = vmul.f32 %v54_v18, %v54_v18 }
  0x85   :  { %v60_v20 = vsel %vm37_vm0, %v56_v19, 0.0 }
  0x86   :  { %61 = vadd.xlane.f32.xlu1 %v60_v20 }
  0xf1   :  { %v59_v22 = vpop.xlane.xlu1 %58 }
  0xf2   :  { %v63_v24 = vmul.f32 %v59_v22, %v422_v10 }
  0xf4   :  { %v65_v25 = vadd.f32 1e-05, %v63_v24 }
  0xf6   :  { %341 = vrsqrt.f32 %v65_v25  ;;  %vm73_vm3 = vweird.f32 %v65_v25 }
  0xf9   :  { %v62_v26 = vpop.xlane.xlu1 %61 }
  0xfa   :  { %v64_v27 = vmul.f32 %v62_v26, %v422_v10 }
  0xfc   :  { %v342_v28 = vpop.eup %341  ;;  %v66_v29 = vadd.f32 1e-05, %v64_v27 }
  0xfd   :  { %v68_v30 = vmul.f32 %v342_v28, %v65_v25  ;;  %vm74_vm2 = vweird.f32 %v342_v28 }
  0xfe   :  { %343 = vrsqrt.f32 %v66_v29  ;;  %vm75_vm4 = vmor %vm73_vm3, %vm74_vm2  ;;  %vm83_vm6 = vweird.f32 %v66_v29 }
  0xff   :  { %v69_v31 = vmul.f32 %v342_v28, %v68_v30 }
 0x101   :  { %v70_v32 = vmul.f32 0.5, %v69_v31 }
 0x103   :  { %v71_v33 = vsub.f32 1.5, %v70_v32 }
 0x104   :  { %v344_v34 = vpop.eup %343 }
 0x105   :  { %v72_v35 = vmul.f32 %v342_v28, %v71_v33  ;;  %v78_v36 = vmul.f32 %v344_v34, %v66_v29  ;;  %vm84_vm5 = vweird.f32 %v344_v34  ;;  %v336_v29 = vld [vmem:[%s492_s6] ss:$0 sm:$0xff] }
 0x106   :  { %vm85_vm7 = vmor %vm83_vm6, %vm84_vm5 }
 0x107   :  { %v79_v37 = vmul.f32 %v344_v34, %v78_v36  ;;  %v76_v38 = vsel %vm75_vm4, %v342_v28, %v72_v35 }
 0x108   :  { %v87_v41 = vmul.f32 %v76_v38, %v53_v13 }
 0x109   :  { %v80_v39 = vmul.f32 0.5, %v79_v37 }
 0x10a   :  { %v92_v46 = vmul.f32 %v333_v42, %v87_v41 }
 0x10b   :  { %v81_v40 = vsub.f32 1.5, %v80_v39 }
 0x10c   :  { %v97_v49 = vadd.f32 %v334_v47, %v92_v46 }
 0x10d   :  { %v82_v43 = vmul.f32 %v344_v34, %v81_v40 }
 0x10f   :  { %v86_v44 = vsel %vm85_vm7, %v344_v34, %v82_v43 }
 0x110   :  { %v88_v45 = vmul.f32 %v86_v44, %v54_v18 }
 0x112   :  { %v93_v48 = vmul.f32 %v333_v42, %v88_v45 }
 0x114   :  { %v98_v50 = vadd.f32 %v334_v47, %v93_v48 }
 0x116   :  { %v103_v51 = vpack.c.bf16 %v98_v50, %v97_v49 }
 0x118   :  { %306 = vmatmul.msk.bf16.vlgmr.msra.gmra.mxu0 %vm37_vm0, %v103_v51 }
 0x195   :  { %v132_v55 = vpop.f32.mrf.mxu0 }
 0x196   :  { %v133_v56 = vadd.f32 %v335_v53, %v132_v55 }
 0x198   :  { %v307_v58 = vmul.f32 -1.442695, %v133_v56 }
 0x19a   :  { %345 = vpow2.f32 %v307_v58 }
 0x19d   :  { %v134_v60 = vpop.f32.mrf.mxu0 }
 0x19e   :  { %v135_v61 = vadd.f32 %v335_v53, %v134_v60 }
 0x1a0   :  { %v346_v62 = vpop.eup %345  ;;  %v308_v63 = vmul.f32 -1.442695, %v135_v61 }
 0x1a1   :  { %v143_v1 = vadd.f32 1.0, %v346_v62  ;;  %v337_v62 = vld [vmem:[%s494_s7] ss:$0 sm:$0xff] }
 0x1a2   :  { %347 = vpow2.f32 %v308_v63 }
 0x1a3   :  { %349 = vrcp.f32 %v143_v1  ;;  %v156_v13 = vand.u32 2147483648, %v143_v1  ;;  %vm150_vm9 = vweird.f32 %v143_v1  ;;  %v154_v14 = vand.u32 2147483647, %v143_v1 }
 0x1a5   :  { %v157_v20 = vor.u32 1.1754944e-38, %v156_v13  ;;  %vm155_vm12 = vcmp.eq.f32.partialorder %v154_v14, 8.507059e+37 }
 0x1a8   :  { %v348_v3 = vpop.eup %347 }
 0x1a9   :  { %v350_v4 = vpop.eup %349  ;;  %v144_v5 = vadd.f32 1.0, %v348_v3 }
 0x1aa   :  { %v146_v6 = vmul.f32 %v350_v4, %v143_v1  ;;  %vm151_vm8 = vweird.f32 %v350_v4 }
 0x1ab   :  { %351 = vrcp.f32 %v144_v5  ;;  %vm152_vm10 = vmor %vm150_vm9, %vm151_vm8  ;;  %v171_v16 = vand.u32 2147483648, %v144_v5  ;;  %v169_v19 = vand.u32 2147483647, %v144_v5  ;;  %vm165_vm13 = vweird.f32 %v144_v5 }
 0x1ac   :  { %v147_v7 = vsub.f32 1.0, %v146_v6 }
 0x1ad   :  { %v172_v23 = vor.u32 1.1754944e-38, %v171_v16  ;;  %vm170_vm15 = vcmp.eq.f32.partialorder %v169_v19, 8.507059e+37 }
 0x1ae   :  { %v148_v8 = vmul.f32 %v350_v4, %v147_v7 }
 0x1b0   :  { %v149_v11 = vadd.f32 %v350_v4, %v148_v8 }
 0x1b1   :  { %v352_v9 = vpop.eup %351 }
 0x1b2   :  { %v161_v12 = vmul.f32 %v352_v9, %v144_v5  ;;  %v153_v17 = vsel %vm152_vm10, %v350_v4, %v149_v11  ;;  %vm166_vm11 = vweird.f32 %v352_v9 }
 0x1b3   :  { %v158_v22 = vsel %vm155_vm12, %v157_v20, %v153_v17  ;;  %vm167_vm14 = vmor %vm165_vm13, %vm166_vm11 }
 0x1b4   :  { %v162_v15 = vsub.f32 1.0, %v161_v12  ;;  %v175_v26 = vmul.f32 %v158_v22, %v133_v56 }
 0x1b6   :  { %v163_v18 = vmul.f32 %v352_v9, %v162_v15 }
 0x1b8   :  { %v164_v21 = vadd.f32 %v352_v9, %v163_v18 }
 0x1ba   :  { %v168_v24 = vsel %vm167_vm14, %v352_v9, %v164_v21 }
 0x1bb   :  { %v173_v25 = vsel %vm170_vm15, %v172_v23, %v168_v24 }
 0x1bc   :  { %v176_v27 = vmul.f32 %v173_v25, %v135_v61 }
 0x1be   :  { %v185_v28 = vpack.c.bf16 %v176_v27, %v175_v26 }
 0x1c0   :  { %325 = vmatmul.msk.bf16.vlgmr.msra.gmra.mxu1 %vm214_vm1, %v185_v28 }
 0x23d   :  { %v227_v30 = vpop.f32.mrf.mxu1 }
 0x23e   :  { %v228_v31 = vadd.f32 %v336_v29, %v227_v30 }
 0x240   :  { %v232_v32 = vmul.f32 0.5, %v228_v31 }
 0x242   :  { %v234_v33 = vadd.f32 %v232_v32, %v411_v0 }
 0x244   :  { %v238_v34 = vsel %vm37_vm0, %v234_v33, 0.0 }
 0x245   :  { %v229_v35 = vpop.f32.mrf.mxu1  ;;  %239 = vadd.xlane.f32.xlu2 %v238_v34 }
 0x246   :  { %v230_v36 = vadd.f32 %v336_v29, %v229_v35 }
 0x248   :  { %v233_v37 = vmul.f32 0.5, %v230_v36 }
 0x24a   :  { %v235_v38 = vadd.f32 %v233_v37, %v418_v2 }
 0x24c   :  { %v241_v39 = vsel %vm37_vm0, %v235_v38, 0.0 }
 0x24d   :  { %242 = vadd.xlane.f32.xlu2 %v241_v39 }
 0x2b8   :  { %v240_v40 = vpop.xlane.xlu2 %239 }
 0x2b9   :  { %v244_v41 = vmul.f32 %v240_v40, %v422_v10 }
 0x2bb   :  { %v246_v42 = vsub.f32 %v234_v33, %v244_v41 }
 0x2bd   :  { %v248_v43 = vmul.f32 %v246_v42, %v246_v42 }
 0x2bf   :  { %v250_v44 = vsel %vm37_vm0, %v248_v43, 0.0 }
 0x2c0   :  { %251 = vadd.xlane.f32.xlu0 %v250_v44  ;;  %v243_v0 = vpop.xlane.xlu2 %242 }
 0x2c1   :  { %v245_v45 = vmul.f32 %v243_v0, %v422_v10 }
 0x2c3   :  { %v247_v46 = vsub.f32 %v235_v38, %v245_v45 }
 0x2c5   :  { %v249_v47 = vmul.f32 %v247_v46, %v247_v46 }
 0x2c7   :  { %v253_v48 = vsel %vm37_vm0, %v249_v47, 0.0 }
 0x2c8   :  { %254 = vadd.xlane.f32.xlu1 %v253_v48 }
 0x333   :  { %v252_v2 = vpop.xlane.xlu0 %251 }
 0x334   :  { %v256_v49 = vmul.f32 %v252_v2, %v422_v10 }
 0x336   :  { %v258_v50 = vadd.f32 1e-05, %v256_v49 }
 0x338   :  { %353 = vrsqrt.f32 %v258_v50  ;;  %vm266_vm3 = vweird.f32 %v258_v50 }
 0x33b   :  { %v255_v51 = vpop.xlane.xlu1 %254 }
 0x33c   :  { %v257_v52 = vmul.f32 %v255_v51, %v422_v10  ;;  %v338_v10 = vld [vmem:[%s495_s8] ss:$0 sm:$0xff] }
 0x33e   :  { %v354_v53 = vpop.eup %353  ;;  %v259_v54 = vadd.f32 1e-05, %v257_v52 }
 0x33f   :  { %v261_v55 = vmul.f32 %v354_v53, %v258_v50  ;;  %vm267_vm2 = vweird.f32 %v354_v53 }
 0x340   :  { %355 = vrsqrt.f32 %v259_v54  ;;  %vm268_vm4 = vmor %vm266_vm3, %vm267_vm2  ;;  %vm276_vm6 = vweird.f32 %v259_v54 }
 0x341   :  { %v262_v56 = vmul.f32 %v354_v53, %v261_v55 }
 0x343   :  { %v263_v57 = vmul.f32 0.5, %v262_v56 }
 0x345   :  { %v264_v58 = vsub.f32 1.5, %v263_v57 }
 0x346   :  { %v356_v59 = vpop.eup %355 }
 0x347   :  { %v265_v60 = vmul.f32 %v354_v53, %v264_v58  ;;  %v271_v61 = vmul.f32 %v356_v59, %v259_v54  ;;  %vm277_vm5 = vweird.f32 %v356_v59 }
 0x348   :  { %vm278_vm7 = vmor %vm276_vm6, %vm277_vm5 }
 0x349   :  { %v269_v63 = vsel %vm268_vm4, %v354_v53, %v265_v60  ;;  %v272_v1 = vmul.f32 %v356_v59, %v271_v61 }
 0x34a   :  { %v280_v3 = vmul.f32 %v269_v63, %v246_v42 }
 0x34b   :  { %v273_v4 = vmul.f32 0.5, %v272_v1 }
 0x34c   :  { %v285_v5 = vmul.f32 %v337_v62, %v280_v3 }
 0x34d   :  { %v274_v6 = vsub.f32 1.5, %v273_v4 }
 0x34e   :  { %v290_v7 = vadd.f32 %v338_v10, %v285_v5 }
 0x34f   :  { %v275_v8 = vmul.f32 %v356_v59, %v274_v6 }
 0x350   :  { %292 = vst.msk [vmem:[%s496_s9] sm:$0xff] %vm37_vm0, %v290_v7 }
 0x351   :  { %v279_v9 = vsel %vm278_vm7, %v356_v59, %v275_v8 }
 0x352   :  { %v281_v11 = vmul.f32 %v279_v9, %v247_v46 }
 0x354   :  { %v286_v12 = vmul.f32 %v337_v62, %v281_v11 }
 0x356   :  { %v291_v13 = vadd.f32 %v338_v10, %v286_v12 }
 0x358   :  { %293 = vst.msk [vmem:[%s496_s9 + $0x8] sm:$0xff] %vm37_vm0, %v291_v13 }

// kernel: conformer_forward.34
= control target key start
LH: loop header
LB: loop body
LE: loop exit
PB: predicated region body
PF: predicated region fallthrough
CT: control target
= control target key end

     0   :  { %vm16_vm0 = vcmask 254976   ;;  %v173_v0 = vmov 0.0   ;;  %s214_s17 = smov 0   ;;  %s245_s0 = inlined_call_operand.vmem [shape: f32[8,2,128], index: 0, kind: input, shape index: {}]   ;;  %s246_s1 = inlined_call_operand.vmem [shape: bf16[32,128], index: 1, kind: input, shape index: {}]   ;;  %s247_s2 = inlined_call_operand.vmem [shape: f32[8,2,32], index: 2, kind: output, shape index: {}]  }
   0x1   :  { %17 = vst.msk [vmem:[#allocation2] sm:$0x3] %vm16_vm0, %v173_v0  ;;  %v196_v1 = vld [vmem:[%s246_s1] sm:$0xf]  ;;  %v201_v2 = vld [vmem:[%s246_s1] sm:$0xf0] }
   0x2   :  { %18 = vst.msk [vmem:[#allocation3] sm:$0x3] %vm16_vm0, %v173_v0  ;;  %v207_v3 = vld [vmem:[%s246_s1 + $0x8] sm:$0xf]  ;;  %v212_v4 = vld [vmem:[%s246_s1 + $0x8] sm:$0xf0] }
   0x3 LB: > { %v140_v5 = vor.u32 %v212_v4, %v207_v3  ;;  %v136_v6 = vor.u32 %v201_v2, %v196_v1  ;;  %vm46_vm1 = vcmask 261120   ;;  %s132_s1 = sshll.u32 %s171_s17, 1  ;;  %s174_s21 = smov 64   ;;  %s171_s17 = sphi %s214_s17, %s28_s17  }
   0x4   : > { %s30_s20 = scalar_lea.vmem %s245_s0, %s132_s1  ;;  %s175_s22 = smov 32  }
   0x5   : > { %56 = vmatpush.bf16.msra.mxu0 %v140_v5  ;;  %v31_v9 = vld [vmem:[%s30_s20] sm:$0x3]  ;;  %s176_s23 = smov 96   ;;  %s117_s26 = scalar_lea.vmem %s247_s2, %s132_s1 }
   0x6   : > { %s28_s17 = sadd.s32 1, %s171_s17  }
   0x7   : > { %p25_p0 = scmp.ge.s32.totalorder %s28_s17, 8  }
   0x8   : > { %v32_v7 = vld [vmem:[#allocation2] sm:$0x3] }
   0x9   : > { %v33_v8 = vpack.c.bf16 %v32_v7, %v32_v7  ;;  %57 = vmatpush.bf16.msra.mxu0 %v136_v6  ;;  %v84_v14 = vld [vmem:[#allocation3] sm:$0x3] }
   0xc   : > { %141 = vmatmul.msk.bf16.vlgmr.msra.gmra.mxu0 %vm46_vm1, %v33_v8 }
  0x89   : > { %v59_v10 = vpop.f32.mrf.mxu0 }
  0x8a   : > { %v63_v11 = vadd.f32 %v59_v10, %v31_v9 }
  0x8c   : > { %157 = vtanh.f32 %v63_v11  ;;  %v142_v15 = vmul.f32 -1.442695, %v63_v11 }
  0x8e   : > { %159 = vpow2.f32 %v142_v15 }
  0x91   : > { %v61_v12 = vpop.f32.mrf.mxu0 }
  0x92   : > { %v158_v13 = vpop.eup %157 }
  0x93   : > { %91 = vrot.lane.b32.xlu0 %v158_v13, %s174_s21 }
  0x94   : > { %v160_v16 = vpop.eup %159 }
  0x95   : > { %v67_v17 = vadd.f32 1.0, %v160_v16 }
  0x97   : > { %161 = vrcp.f32 %v67_v17  ;;  %v79_v23 = vand.u32 2147483648, %v67_v17  ;;  %vm73_vm3 = vweird.f32 %v67_v17  ;;  %v77_v24 = vand.u32 2147483647, %v67_v17 }
  0x99   : > { %v80_v26 = vor.u32 1.1754944e-38, %v79_v23  ;;  %vm78_vm5 = vcmp.eq.f32.partialorder %v77_v24, 8.507059e+37 }
  0x9b   : > { %86 = vrot.lane.b32.xlu0 %v84_v14, %s175_s22 }
  0x9d   : > { %v162_v18 = vpop.eup %161 }
  0x9e   : > { %v69_v19 = vmul.f32 %v162_v18, %v67_v17  ;;  %vm74_vm2 = vweird.f32 %v162_v18 }
  0x9f   : > { %vm75_vm4 = vmor %vm73_vm3, %vm74_vm2 }
  0xa0   : > { %v70_v20 = vsub.f32 1.0, %v69_v19 }
  0xa2   : > { %v71_v21 = vmul.f32 %v162_v18, %v70_v20 }
  0xa4   : > { %v72_v22 = vadd.f32 %v162_v18, %v71_v21 }
  0xa6   : > { %v76_v25 = vsel %vm75_vm4, %v162_v18, %v72_v22 }
  0xa7   : > { %v81_v28 = vsel %vm78_vm5, %v80_v26, %v76_v25 }
 0x105   : > { %v92_v27 = vpop.permute.xlu0 %91 }
 0x106   : > { %v94_v29 = vmul.f32 %v92_v27, %v81_v28 }
 0x108   : > { %96 = vrot.lane.b32.xlu1 %v94_v29, %s175_s22 }
 0x10d   : > { %v87_v30 = vpop.permute.xlu0 %86 }
 0x10e   : > { %v89_v31 = vmul.f32 %v87_v30, %v81_v28 }
 0x17a   : > { %v97_v32 = vpop.permute.xlu1 %96 }
 0x17b   : > { %v99_v33 = vadd.f32 %v97_v32, %v89_v31 }
 0x17d   : > { %163 = vtanh.f32 %v99_v33  ;;  %107 = vrot.lane.b32.xlu2 %v99_v33, %s176_s23 }
 0x183   : > { %v164_v34 = vpop.eup %163 }
 0x184   : > { %102 = vrot.lane.b32.xlu1 %v164_v34, %s174_s21 }
 0x1d7   : > { %v108_v35 = vpop.permute.xlu2 %107 }
 0x1d8   : > { %111 = vst.msk [vmem:[#allocation3] sm:$0x3] %vm16_vm0, %v108_v35 }
 0x1f6   : > { %v103_v36 = vpop.permute.xlu1 %102 }
 0x1f7   : > { %v105_v37 = vmul.f32 %v103_v36, %v81_v28 }
 0x1f9   : > { %113 = vrot.lane.b32.xlu2 %v105_v37, %s175_s22 }
 0x251   :  { %27 = sbr.rel (!%p25_p0) target bundleno = 3 (0x3), region = 41 }
 0x253   : > { %v114_v38 = vpop.permute.xlu2 %113 }
 0x254   : > { %116 = vst.msk [vmem:[#allocation2] sm:$0x3] %vm16_vm0, %v114_v38 }
 0x255   : > { %118 = vst.msk [vmem:[%s117_s26] sm:$0x3] %vm16_vm0, %v114_v38 }

</bundles_post_ra>
